<compile_context>
chip_gen: v7x
topology: tpu7x:2x2x1
jax: 0.10.0
libtpu: 0.0.40
codegen_flags: <defaults>
</compile_context>

<pallas_src>
import functools

import jax
import jax.numpy as jnp
from jax import lax
from jax.experimental import pallas as pl
from jax.experimental.pallas import tpu as pltpu

_K = 3          # conv kernel size
_BN_EPS = 1e-5


def _round_up(x, m):
    return (x + m - 1) // m * m


def _latent_dw_xcorr_kernel(kimg_ref, simg_ref, wk_ref, ws_ref, wh_ref,
                            bk_ref, bs_ref, bh_ref, out_ref, patch_ref,
                            *, Hk, Wk, Ws, L_zk, L_zs, L_feat):
    # Per-batch-element shapes (channel-major, batch squeezed by the grid):
    #   kimg: (Cin, Hk*Wk)      simg: (Cin, L_xs)  (zero padded at the end)
    #   wk/ws: (hidden, 9*Cin)  wh: (hidden, hidden)   (BN scale pre-folded)
    #   bk/bs/bh: (hidden, 1)   folded BN shifts
    #   patch_ref: (9*Cin, L_zs) VMEM im2col scratch
    Cin = kimg_ref.shape[0]
    Hkp, Wkp = Hk - _K + 1, Wk - _K + 1

    def conv3x3_bias_relu(x_flat, w, bias, w_in, l_out):
        # Full-width im2col: tap (p, q) contributes the contiguous lane window
        # x_flat[:, p*w_in+q : p*w_in+q + l_out].  All taps are written into the
        # shared patch buffer and contracted in a single MXU matmul (K = 9*Cin).
        # Column m of the result is the conv output at flat position m (row
        # stride w_in); columns whose window wraps a row are junk and are never
        # consumed downstream.
        for t in range(_K * _K):              # 9 taps, Python-unrolled (small)
            p, q = divmod(t, _K)
            off = p * w_in + q
            patch_ref[t * Cin:(t + 1) * Cin, :l_out] = x_flat[:, off:off + l_out]
        z = jnp.dot(w, patch_ref[:, :l_out],
                    preferred_element_type=jnp.float32)       # (hidden, l_out)
        return jnp.maximum(z + bias, 0.0)                      # BN scale folded in w

    zk = conv3x3_bias_relu(kimg_ref[...], wk_ref[...], bk_ref[...], Wk, L_zk)
    zs = conv3x3_bias_relu(simg_ref[...], ws_ref[...], bs_ref[...], Ws, L_zs)

    # Depthwise cross-correlation on the full-width zs (stride Ws):
    #   feat[c, m] = sum_{p,q} zs[c, m + p*Ws + q] * zk[c, p*Wk + q]
    # Each tap is a contiguous lane-window slice times a per-channel column of
    # zk (implicit lane broadcast).  36 taps, Python-unrolled.
    hidden = zs.shape[0]
    feat = jnp.zeros((hidden, L_feat), jnp.float32)
    for p in range(Hkp):
        for q in range(Wkp):
            off = p * Ws + q
            zc = zk[:, p * Wk + q:p * Wk + q + 1]              # (hidden, 1)
            feat = feat + zs[:, off:off + L_feat] * zc

    # 1x1 head conv (pure channel-mixing matmul) + folded BN shift + ReLU.
    head = jnp.dot(wh_ref[...], feat,
                   preferred_element_type=jnp.float32) + bh_ref[...]
    out_ref[...] = jnp.maximum(head, 0.0).astype(out_ref.dtype)


def _fold_bn(bn):
    gamma, beta, mean, var = bn
    scale = gamma / jnp.sqrt(var + _BN_EPS)
    shift = beta - mean * scale
    return scale.astype(jnp.float32), shift.astype(jnp.float32)


def latent_dw_xcorr_loc_forward(params, kernel_nchw, search_nchw,
                                compute_dtype=jnp.float32):
    """Pallas implementation of LatentDepthwiseXCorrLoc.forward (NCHW in/out).

    compute_dtype: dtype fed to the MXU for inputs / conv weights.  Use
    jnp.bfloat16 on v6e/v7x (native MXU dtype, half the DMA bytes); all
    accumulation and post-conv math stay float32.
    """
    B, Cin, Hk, Wk = kernel_nchw.shape
    _, _, Hs, Ws = search_nchw.shape
    hidden = params['w_head'].shape[0]
    Hkp, Wkp = Hk - _K + 1, Wk - _K + 1          # conv_kernel output spatial
    Hsp, Wsp = Hs - _K + 1, Ws - _K + 1          # conv_search output spatial
    Ho, Wo = Hsp - Hkp + 1, Wsp - Wkp + 1        # xcorr / head output spatial
    KKC = _K * _K * Cin

    # Flat ("full-width") sizes: everything downstream of the search conv keeps
    # the original row stride Ws, so every tap window is a contiguous lane
    # slice; wrapped-window columns are junk that is never read.
    L_feat = Ho * Ws                                   # stored head-slab width
    off_max = (Hkp - 1) * Ws + (Wkp - 1)               # largest xcorr offset
    L_zs = _round_up(L_feat + off_max, 128)            # search-conv width
    L_xs = L_zs + (_K - 1) * Ws + (_K - 1)             # zero-padded search len
    L_zk = (Hkp - 1) * Wk + Wkp                        # template-conv width
    assert L_zk + (_K - 1) * Wk + (_K - 1) <= Hk * Wk  # template needs no pad

    # NCHW inputs consumed directly as (B, Cin, H*W) channel-major flats:
    # no NCHW<->NHWC transposes anywhere in the pipeline.
    xk = kernel_nchw.reshape(B, Cin, Hk * Wk).astype(compute_dtype)
    xs = search_nchw.reshape(B, Cin, Hs * Ws).astype(compute_dtype)
    xs = jnp.pad(xs, ((0, 0), (0, 0), (0, L_xs - Hs * Ws)))

    # Conv weights -> (hidden, 9*Cin), column order (p*3+q)*Cin + c (matches the
    # im2col row order), with the folded BN scale multiplied into the rows.
    def prep_conv(w_oihw, bn):
        scale, shift = _fold_bn(bn)
        w = jnp.transpose(w_oihw, (0, 2, 3, 1)).reshape(hidden, KKC)
        return (w * scale[:, None]).astype(compute_dtype), shift.reshape(hidden, 1)

    wk, bk = prep_conv(params['w_conv_kernel'], params['bn_kernel'])
    ws, bs = prep_conv(params['w_conv_search'], params['bn_search'])
    scale_h, shift_h = _fold_bn(params['bn_head'])
    wh = (params['w_head'][:, :, 0, 0] * scale_h[:, None]).astype(compute_dtype)
    bh = shift_h.reshape(hidden, 1)

    def full(shape):
        return pl.BlockSpec(shape, lambda b: (0,) * len(shape))

    kernel = functools.partial(
        _latent_dw_xcorr_kernel,
        Hk=Hk, Wk=Wk, Ws=Ws, L_zk=L_zk, L_zs=L_zs, L_feat=L_feat)

    grid_spec = pltpu.PrefetchScalarGridSpec(
        num_scalar_prefetch=0,
        # One batch element per grid step; marked "parallel" so v7x can spread
        # steps across both TensorCores (per-step overhead ~0.35us is tiny here).
        grid=(B,),
        in_specs=[
            pl.BlockSpec((None, Cin, Hk * Wk), lambda b: (b, 0, 0)),
            pl.BlockSpec((None, Cin, L_xs), lambda b: (b, 0, 0)),
            full((hidden, KKC)),
            full((hidden, KKC)),
            full((hidden, hidden)),
            full((hidden, 1)), full((hidden, 1)), full((hidden, 1)),
        ],
        out_specs=pl.BlockSpec((None, hidden, L_feat), lambda b: (b, 0, 0)),
        scratch_shapes=[pltpu.VMEM((KKC, L_zs), compute_dtype)],
    )

    out_slab = pl.pallas_call(
        kernel,
        out_shape=jax.ShapeDtypeStruct((B, hidden, L_feat), jnp.float32),
        grid_spec=grid_spec,
        compiler_params=pltpu.CompilerParams(
            dimension_semantics=("parallel",)),
    )(xk, xs, wk, ws, wh, bk, bs, bh)

    # Lane-dense slab -> NCHW: output row i lives at flat offset i*Ws, so a free
    # reshape plus a tiny slice recovers (B, hidden, Ho, Wo); no transpose.
    return out_slab.reshape(B, hidden, Ho, Ws)[:, :, :, :Wo]


# ---------------- pure-JAX reference (for correctness check) ----------------
def _ref_forward(params, kernel_nchw, search_nchw):
    def conv_bn_relu(x, w_oihw, bn):
        y = lax.conv_general_dilated(x, w_oihw, (1, 1), 'VALID',
                                     dimension_numbers=('NCHW', 'OIHW', 'NCHW'))
        gamma, beta, mean, var = bn
        scale = (gamma / jnp.sqrt(var + _BN_EPS)).reshape(1, -1, 1, 1)
        shift = (beta - mean * gamma / jnp.sqrt(var + _BN_EPS)).reshape(1, -1, 1, 1)
        return jnp.maximum(y * scale + shift, 0.0)

    zk = conv_bn_relu(kernel_nchw, params['w_conv_kernel'], params['bn_kernel'])
    zs = conv_bn_relu(search_nchw, params['w_conv_search'], params['bn_search'])

    B, C, Hkp, Wkp = zk.shape
    _, _, Hsp, Wsp = zs.shape
    Ho, Wo = Hsp - Hkp + 1, Wsp - Wkp + 1
    feat = jnp.zeros((B, C, Ho, Wo), jnp.float32)
    for p in range(Hkp):
        for q in range(Wkp):
            feat = feat + zs[:, :, p:p + Ho, q:q + Wo] * zk[:, :, p:p + 1, q:q + 1]

    return conv_bn_relu(feat, params['w_head'], params['bn_head'])


if __name__ == "__main__":
    key = jax.random.PRNGKey(0)
    B, Cin, hidden = 2, 4, 32
    Hk = Wk = 8      # template ("kernel") input spatial
    Hs = Ws = 16     # search input spatial
    ks = jax.random.split(key, 8)

    def bn_params(k):
        kg, kb, km, kv = jax.random.split(k, 4)
        gamma = 1.0 + 0.1 * jax.random.normal(kg, (hidden,), jnp.float32)
        beta = 0.1 * jax.random.normal(kb, (hidden,), jnp.float32)
        mean = 0.1 * jax.random.normal(km, (hidden,), jnp.float32)
        var = 0.5 + jax.random.uniform(kv, (hidden,), dtype=jnp.float32)
        return gamma, beta, mean, var

    params = {
        'w_conv_kernel': 0.1 * jax.random.normal(ks[0], (hidden, Cin, 3, 3), jnp.float32),
        'w_conv_search': 0.1 * jax.random.normal(ks[1], (hidden, Cin, 3, 3), jnp.float32),
        'w_head': 0.1 * jax.random.normal(ks[2], (hidden, hidden, 1, 1), jnp.float32),
        'bn_kernel': bn_params(ks[3]),
        'bn_search': bn_params(ks[4]),
        'bn_head': bn_params(ks[5]),
    }

    kernel_img = jax.random.normal(ks[6], (B, Cin, Hk, Wk), jnp.float32)
    search_img = jax.random.normal(ks[7], (B, Cin, Hs, Ws), jnp.float32)

    out = latent_dw_xcorr_loc_forward(params, kernel_img, search_img)
    out = jax.block_until_ready(out)

    ref = _ref_forward(params, kernel_img, search_img)
    assert out.shape == (B, hidden, Hs - Hk + 1, Ws - Wk + 1), out.shape
    max_err = float(jnp.abs(out - ref).max())
    assert jnp.allclose(out, ref, atol=1e-3, rtol=1e-3), max_err

    print("KERNEL_OK")
</pallas_src>

<mosaic_0001>
module attributes {stable_mosaic.version = 11 : i64} {
  func.func @_latent_dw_xcorr_kernel(%arg0: i32, %arg1: memref<1x4x64xf32, #tpu.memory_space<vmem>>, %arg2: memref<1x4x290xf32, #tpu.memory_space<vmem>>, %arg3: memref<32x36xf32, #tpu.memory_space<vmem>>, %arg4: memref<32x36xf32, #tpu.memory_space<vmem>>, %arg5: memref<32x32xf32, #tpu.memory_space<vmem>>, %arg6: memref<32x1xf32, #tpu.memory_space<vmem>>, %arg7: memref<32x1xf32, #tpu.memory_space<vmem>>, %arg8: memref<32x1xf32, #tpu.memory_space<vmem>>, %arg9: memref<1x32x144xf32, #tpu.memory_space<vmem>>, %arg10: memref<36x256xf32, #tpu.memory_space<vmem>>) attributes {dimension_semantics = [#tpu.dimension_semantics<parallel>], iteration_bounds = array<i64: 2>, scalar_prefetch = 0 : i64, scratch_operands = 1 : i64, tpu.core_type = #tpu.core_type<tc>, window_params = [{transform_indices = @transform_0, window_bounds = array<i64: 1, 4, 64>}, {transform_indices = @transform_1, window_bounds = array<i64: 1, 4, 290>}, {pipeline_mode = #tpu.pipeline_mode<synchronous>, transform_indices = @transform_2, window_bounds = array<i64: 32, 36>}, {pipeline_mode = #tpu.pipeline_mode<synchronous>, transform_indices = @transform_3, window_bounds = array<i64: 32, 36>}, {pipeline_mode = #tpu.pipeline_mode<synchronous>, transform_indices = @transform_4, window_bounds = array<i64: 32, 32>}, {pipeline_mode = #tpu.pipeline_mode<synchronous>, transform_indices = @transform_5, window_bounds = array<i64: 32, 1>}, {pipeline_mode = #tpu.pipeline_mode<synchronous>, transform_indices = @transform_6, window_bounds = array<i64: 32, 1>}, {pipeline_mode = #tpu.pipeline_mode<synchronous>, transform_indices = @transform_7, window_bounds = array<i64: 32, 1>}, {transform_indices = @transform_8, window_bounds = array<i64: 1, 32, 144>}]} {
    %c0 = arith.constant 0 : index
    %c0_0 = arith.constant 0 : index
    %c0_1 = arith.constant 0 : index
    %0 = vector.load %arg1[%c0, %c0_0, %c0_1] : memref<1x4x64xf32, #tpu.memory_space<vmem>>, vector<1x4x64xf32>
    %1 = vector.shape_cast %0 : vector<1x4x64xf32> to vector<4x64xf32>
    %c0_2 = arith.constant 0 : index
    %c0_3 = arith.constant 0 : index
    %2 = vector.load %arg3[%c0_2, %c0_3] : memref<32x36xf32, #tpu.memory_space<vmem>>, vector<32x36xf32>
    %c0_4 = arith.constant 0 : index
    %c0_5 = arith.constant 0 : index
    %3 = vector.load %arg6[%c0_4, %c0_5] : memref<32x1xf32, #tpu.memory_space<vmem>>, vector<32x1xf32>
    %4 = vector.extract_strided_slice %1 {offsets = [0, 0], sizes = [4, 46], strides = [1, 1]} : vector<4x64xf32> to vector<4x46xf32>
    %c0_6 = arith.constant 0 : index
    %c0_7 = arith.constant 0 : index
    %5 = vector.load %arg10[%c0_6, %c0_7] : memref<36x256xf32, #tpu.memory_space<vmem>>, vector<4x46xf32>
    tpu.vector_store %arg10[%c0_6, %c0_7], %4 {strides = array<i32>} : memref<36x256xf32, #tpu.memory_space<vmem>>, vector<4x46xf32>,
    %6 = vector.extract_strided_slice %1 {offsets = [0, 1], sizes = [4, 46], strides = [1, 1]} : vector<4x64xf32> to vector<4x46xf32>
    %c4 = arith.constant 4 : index
    %c0_8 = arith.constant 0 : index
    %7 = vector.load %arg10[%c4, %c0_8] : memref<36x256xf32, #tpu.memory_space<vmem>>, vector<4x46xf32>
    tpu.vector_store %arg10[%c4, %c0_8], %6 {strides = array<i32>} : memref<36x256xf32, #tpu.memory_space<vmem>>, vector<4x46xf32>,
    %8 = vector.extract_strided_slice %1 {offsets = [0, 2], sizes = [4, 46], strides = [1, 1]} : vector<4x64xf32> to vector<4x46xf32>
    %c8 = arith.constant 8 : index
    %c0_9 = arith.constant 0 : index
    %9 = vector.load %arg10[%c8, %c0_9] : memref<36x256xf32, #tpu.memory_space<vmem>>, vector<4x46xf32>
    tpu.vector_store %arg10[%c8, %c0_9], %8 {strides = array<i32>} : memref<36x256xf32, #tpu.memory_space<vmem>>, vector<4x46xf32>,
    %10 = vector.extract_strided_slice %1 {offsets = [0, 8], sizes = [4, 46], strides = [1, 1]} : vector<4x64xf32> to vector<4x46xf32>
    %c12 = arith.constant 12 : index
    %c0_10 = arith.constant 0 : index
    %11 = vector.load %arg10[%c12, %c0_10] : memref<36x256xf32, #tpu.memory_space<vmem>>, vector<4x46xf32>
    tpu.vector_store %arg10[%c12, %c0_10], %10 {strides = array<i32>} : memref<36x256xf32, #tpu.memory_space<vmem>>, vector<4x46xf32>,
    %12 = vector.extract_strided_slice %1 {offsets = [0, 9], sizes = [4, 46], strides = [1, 1]} : vector<4x64xf32> to vector<4x46xf32>
    %c16 = arith.constant 16 : index
    %c0_11 = arith.constant 0 : index
    %13 = vector.load %arg10[%c16, %c0_11] : memref<36x256xf32, #tpu.memory_space<vmem>>, vector<4x46xf32>
    tpu.vector_store %arg10[%c16, %c0_11], %12 {strides = array<i32>} : memref<36x256xf32, #tpu.memory_space<vmem>>, vector<4x46xf32>,
    %14 = vector.extract_strided_slice %1 {offsets = [0, 10], sizes = [4, 46], strides = [1, 1]} : vector<4x64xf32> to vector<4x46xf32>
    %c20 = arith.constant 20 : index
    %c0_12 = arith.constant 0 : index
    %15 = vector.load %arg10[%c20, %c0_12] : memref<36x256xf32, #tpu.memory_space<vmem>>, vector<4x46xf32>
    tpu.vector_store %arg10[%c20, %c0_12], %14 {strides = array<i32>} : memref<36x256xf32, #tpu.memory_space<vmem>>, vector<4x46xf32>,
    %16 = vector.extract_strided_slice %1 {offsets = [0, 16], sizes = [4, 46], strides = [1, 1]} : vector<4x64xf32> to vector<4x46xf32>
    %c24 = arith.constant 24 : index
    %c0_13 = arith.constant 0 : index
    %17 = vector.load %arg10[%c24, %c0_13] : memref<36x256xf32, #tpu.memory_space<vmem>>, vector<4x46xf32>
    tpu.vector_store %arg10[%c24, %c0_13], %16 {strides = array<i32>} : memref<36x256xf32, #tpu.memory_space<vmem>>, vector<4x46xf32>,
    %18 = vector.extract_strided_slice %1 {offsets = [0, 17], sizes = [4, 46], strides = [1, 1]} : vector<4x64xf32> to vector<4x46xf32>
    %c28 = arith.constant 28 : index
    %c0_14 = arith.constant 0 : index
    %19 = vector.load %arg10[%c28, %c0_14] : memref<36x256xf32, #tpu.memory_space<vmem>>, vector<4x46xf32>
    tpu.vector_store %arg10[%c28, %c0_14], %18 {strides = array<i32>} : memref<36x256xf32, #tpu.memory_space<vmem>>, vector<4x46xf32>,
    %20 = vector.extract_strided_slice %1 {offsets = [0, 18], sizes = [4, 46], strides = [1, 1]} : vector<4x64xf32> to vector<4x46xf32>
    %c32 = arith.constant 32 : index
    %c0_15 = arith.constant 0 : index
    %21 = vector.load %arg10[%c32, %c0_15] : memref<36x256xf32, #tpu.memory_space<vmem>>, vector<4x46xf32>
    tpu.vector_store %arg10[%c32, %c0_15], %20 {strides = array<i32>} : memref<36x256xf32, #tpu.memory_space<vmem>>, vector<4x46xf32>,
    %c0_16 = arith.constant 0 : index
    %c0_17 = arith.constant 0 : index
    %22 = vector.load %arg10[%c0_16, %c0_17] : memref<36x256xf32, #tpu.memory_space<vmem>>, vector<36x46xf32>
    %cst = arith.constant dense<0.000000e+00> : vector<32x46xf32>
    %23 = tpu.matmul %2, %22, %cst {dimension_numbers = #tpu.dot_dimension_numbers<[1], [0], [0], [1], [0, 0, 1, 1], [], []>} : vector<32x36xf32>, vector<36x46xf32>, vector<32x46xf32> -> vector<32x46xf32>
    %24 = vector.broadcast %3 : vector<32x1xf32> to vector<32x46xf32>
    %25 = arith.addf %23, %24 : vector<32x46xf32>
    %cst_18 = arith.constant 0.000000e+00 : f32
    %26 = vector.broadcast %cst_18 : f32 to vector<32x46xf32>
    %27 = arith.maximumf %25, %26 : vector<32x46xf32>
    %c0_19 = arith.constant 0 : index
    %c0_20 = arith.constant 0 : index
    %c0_21 = arith.constant 0 : index
    %28 = vector.load %arg2[%c0_19, %c0_20, %c0_21] : memref<1x4x290xf32, #tpu.memory_space<vmem>>, vector<1x4x290xf32>
    %29 = vector.shape_cast %28 : vector<1x4x290xf32> to vector<4x290xf32>
    %c0_22 = arith.constant 0 : index
    %c0_23 = arith.constant 0 : index
    %30 = vector.load %arg4[%c0_22, %c0_23] : memref<32x36xf32, #tpu.memory_space<vmem>>, vector<32x36xf32>
    %c0_24 = arith.constant 0 : index
    %c0_25 = arith.constant 0 : index
    %31 = vector.load %arg7[%c0_24, %c0_25] : memref<32x1xf32, #tpu.memory_space<vmem>>, vector<32x1xf32>
    %32 = vector.extract_strided_slice %29 {offsets = [0, 0], sizes = [4, 256], strides = [1, 1]} : vector<4x290xf32> to vector<4x256xf32>
    %c0_26 = arith.constant 0 : index
    %c0_27 = arith.constant 0 : index
    %33 = vector.load %arg10[%c0_26, %c0_27] : memref<36x256xf32, #tpu.memory_space<vmem>>, vector<4x256xf32>
    tpu.vector_store %arg10[%c0_26, %c0_27], %32 {strides = array<i32>} : memref<36x256xf32, #tpu.memory_space<vmem>>, vector<4x256xf32>,
    %34 = vector.extract_strided_slice %29 {offsets = [0, 1], sizes = [4, 256], strides = [1, 1]} : vector<4x290xf32> to vector<4x256xf32>
    %c4_28 = arith.constant 4 : index
    %c0_29 = arith.constant 0 : index
    %35 = vector.load %arg10[%c4_28, %c0_29] : memref<36x256xf32, #tpu.memory_space<vmem>>, vector<4x256xf32>
    tpu.vector_store %arg10[%c4_28, %c0_29], %34 {strides = array<i32>} : memref<36x256xf32, #tpu.memory_space<vmem>>, vector<4x256xf32>,
    %36 = vector.extract_strided_slice %29 {offsets = [0, 2], sizes = [4, 256], strides = [1, 1]} : vector<4x290xf32> to vector<4x256xf32>
    %c8_30 = arith.constant 8 : index
    %c0_31 = arith.constant 0 : index
    %37 = vector.load %arg10[%c8_30, %c0_31] : memref<36x256xf32, #tpu.memory_space<vmem>>, vector<4x256xf32>
    tpu.vector_store %arg10[%c8_30, %c0_31], %36 {strides = array<i32>} : memref<36x256xf32, #tpu.memory_space<vmem>>, vector<4x256xf32>,
    %38 = vector.extract_strided_slice %29 {offsets = [0, 16], sizes = [4, 256], strides = [1, 1]} : vector<4x290xf32> to vector<4x256xf32>
    %c12_32 = arith.constant 12 : index
    %c0_33 = arith.constant 0 : index
    %39 = vector.load %arg10[%c12_32, %c0_33] : memref<36x256xf32, #tpu.memory_space<vmem>>, vector<4x256xf32>
    tpu.vector_store %arg10[%c12_32, %c0_33], %38 {strides = array<i32>} : memref<36x256xf32, #tpu.memory_space<vmem>>, vector<4x256xf32>,
    %40 = vector.extract_strided_slice %29 {offsets = [0, 17], sizes = [4, 256], strides = [1, 1]} : vector<4x290xf32> to vector<4x256xf32>
    %c16_34 = arith.constant 16 : index
    %c0_35 = arith.constant 0 : index
    %41 = vector.load %arg10[%c16_34, %c0_35] : memref<36x256xf32, #tpu.memory_space<vmem>>, vector<4x256xf32>
    tpu.vector_store %arg10[%c16_34, %c0_35], %40 {strides = array<i32>} : memref<36x256xf32, #tpu.memory_space<vmem>>, vector<4x256xf32>,
    %42 = vector.extract_strided_slice %29 {offsets = [0, 18], sizes = [4, 256], strides = [1, 1]} : vector<4x290xf32> to vector<4x256xf32>
    %c20_36 = arith.constant 20 : index
    %c0_37 = arith.constant 0 : index
    %43 = vector.load %arg10[%c20_36, %c0_37] : memref<36x256xf32, #tpu.memory_space<vmem>>, vector<4x256xf32>
    tpu.vector_store %arg10[%c20_36, %c0_37], %42 {strides = array<i32>} : memref<36x256xf32, #tpu.memory_space<vmem>>, vector<4x256xf32>,
    %44 = vector.extract_strided_slice %29 {offsets = [0, 32], sizes = [4, 256], strides = [1, 1]} : vector<4x290xf32> to vector<4x256xf32>
    %c24_38 = arith.constant 24 : index
    %c0_39 = arith.constant 0 : index
    %45 = vector.load %arg10[%c24_38, %c0_39] : memref<36x256xf32, #tpu.memory_space<vmem>>, vector<4x256xf32>
    tpu.vector_store %arg10[%c24_38, %c0_39], %44 {strides = array<i32>} : memref<36x256xf32, #tpu.memory_space<vmem>>, vector<4x256xf32>,
    %46 = vector.extract_strided_slice %29 {offsets = [0, 33], sizes = [4, 256], strides = [1, 1]} : vector<4x290xf32> to vector<4x256xf32>
    %c28_40 = arith.constant 28 : index
    %c0_41 = arith.constant 0 : index
    %47 = vector.load %arg10[%c28_40, %c0_41] : memref<36x256xf32, #tpu.memory_space<vmem>>, vector<4x256xf32>
    tpu.vector_store %arg10[%c28_40, %c0_41], %46 {strides = array<i32>} : memref<36x256xf32, #tpu.memory_space<vmem>>, vector<4x256xf32>,
    %48 = vector.extract_strided_slice %29 {offsets = [0, 34], sizes = [4, 256], strides = [1, 1]} : vector<4x290xf32> to vector<4x256xf32>
    %c32_42 = arith.constant 32 : index
    %c0_43 = arith.constant 0 : index
    %49 = vector.load %arg10[%c32_42, %c0_43] : memref<36x256xf32, #tpu.memory_space<vmem>>, vector<4x256xf32>
    tpu.vector_store %arg10[%c32_42, %c0_43], %48 {strides = array<i32>} : memref<36x256xf32, #tpu.memory_space<vmem>>, vector<4x256xf32>,
    %c0_44 = arith.constant 0 : index
    %c0_45 = arith.constant 0 : index
    %50 = vector.load %arg10[%c0_44, %c0_45] : memref<36x256xf32, #tpu.memory_space<vmem>>, vector<36x256xf32>
    %cst_46 = arith.constant dense<0.000000e+00> : vector<32x256xf32>
    %51 = tpu.matmul %30, %50, %cst_46 {dimension_numbers = #tpu.dot_dimension_numbers<[1], [0], [0], [1], [0, 0, 1, 1], [], []>} : vector<32x36xf32>, vector<36x256xf32>, vector<32x256xf32> -> vector<32x256xf32>
    %52 = vector.broadcast %31 : vector<32x1xf32> to vector<32x256xf32>
    %53 = arith.addf %51, %52 : vector<32x256xf32>
    %cst_47 = arith.constant 0.000000e+00 : f32
    %54 = vector.broadcast %cst_47 : f32 to vector<32x256xf32>
    %55 = arith.maximumf %53, %54 : vector<32x256xf32>
    %cst_48 = arith.constant 0.000000e+00 : f32
    %56 = vector.broadcast %cst_48 : f32 to vector<32x144xf32>
    %57 = vector.extract_strided_slice %27 {offsets = [0, 0], sizes = [32, 1], strides = [1, 1]} : vector<32x46xf32> to vector<32x1xf32>
    %58 = vector.extract_strided_slice %55 {offsets = [0, 0], sizes = [32, 144], strides = [1, 1]} : vector<32x256xf32> to vector<32x144xf32>
    %59 = vector.broadcast %57 : vector<32x1xf32> to vector<32x144xf32>
    %60 = arith.mulf %58, %59 : vector<32x144xf32>
    %61 = arith.addf %56, %60 : vector<32x144xf32>
    %62 = vector.extract_strided_slice %27 {offsets = [0, 1], sizes = [32, 1], strides = [1, 1]} : vector<32x46xf32> to vector<32x1xf32>
    %63 = vector.extract_strided_slice %55 {offsets = [0, 1], sizes = [32, 144], strides = [1, 1]} : vector<32x256xf32> to vector<32x144xf32>
    %64 = vector.broadcast %62 : vector<32x1xf32> to vector<32x144xf32>
    %65 = arith.mulf %63, %64 : vector<32x144xf32>
    %66 = arith.addf %61, %65 : vector<32x144xf32>
    %67 = vector.extract_strided_slice %27 {offsets = [0, 2], sizes = [32, 1], strides = [1, 1]} : vector<32x46xf32> to vector<32x1xf32>
    %68 = vector.extract_strided_slice %55 {offsets = [0, 2], sizes = [32, 144], strides = [1, 1]} : vector<32x256xf32> to vector<32x144xf32>
    %69 = vector.broadcast %67 : vector<32x1xf32> to vector<32x144xf32>
    %70 = arith.mulf %68, %69 : vector<32x144xf32>
    %71 = arith.addf %66, %70 : vector<32x144xf32>
    %72 = vector.extract_strided_slice %27 {offsets = [0, 3], sizes = [32, 1], strides = [1, 1]} : vector<32x46xf32> to vector<32x1xf32>
    %73 = vector.extract_strided_slice %55 {offsets = [0, 3], sizes = [32, 144], strides = [1, 1]} : vector<32x256xf32> to vector<32x144xf32>
    %74 = vector.broadcast %72 : vector<32x1xf32> to vector<32x144xf32>
    %75 = arith.mulf %73, %74 : vector<32x144xf32>
    %76 = arith.addf %71, %75 : vector<32x144xf32>
    %77 = vector.extract_strided_slice %27 {offsets = [0, 4], sizes = [32, 1], strides = [1, 1]} : vector<32x46xf32> to vector<32x1xf32>
    %78 = vector.extract_strided_slice %55 {offsets = [0, 4], sizes = [32, 144], strides = [1, 1]} : vector<32x256xf32> to vector<32x144xf32>
    %79 = vector.broadcast %77 : vector<32x1xf32> to vector<32x144xf32>
    %80 = arith.mulf %78, %79 : vector<32x144xf32>
    %81 = arith.addf %76, %80 : vector<32x144xf32>
    %82 = vector.extract_strided_slice %27 {offsets = [0, 5], sizes = [32, 1], strides = [1, 1]} : vector<32x46xf32> to vector<32x1xf32>
    %83 = vector.extract_strided_slice %55 {offsets = [0, 5], sizes = [32, 144], strides = [1, 1]} : vector<32x256xf32> to vector<32x144xf32>
    %84 = vector.broadcast %82 : vector<32x1xf32> to vector<32x144xf32>
    %85 = arith.mulf %83, %84 : vector<32x144xf32>
    %86 = arith.addf %81, %85 : vector<32x144xf32>
    %87 = vector.extract_strided_slice %27 {offsets = [0, 8], sizes = [32, 1], strides = [1, 1]} : vector<32x46xf32> to vector<32x1xf32>
    %88 = vector.extract_strided_slice %55 {offsets = [0, 16], sizes = [32, 144], strides = [1, 1]} : vector<32x256xf32> to vector<32x144xf32>
    %89 = vector.broadcast %87 : vector<32x1xf32> to vector<32x144xf32>
    %90 = arith.mulf %88, %89 : vector<32x144xf32>
    %91 = arith.addf %86, %90 : vector<32x144xf32>
    %92 = vector.extract_strided_slice %27 {offsets = [0, 9], sizes = [32, 1], strides = [1, 1]} : vector<32x46xf32> to vector<32x1xf32>
    %93 = vector.extract_strided_slice %55 {offsets = [0, 17], sizes = [32, 144], strides = [1, 1]} : vector<32x256xf32> to vector<32x144xf32>
    %94 = vector.broadcast %92 : vector<32x1xf32> to vector<32x144xf32>
    %95 = arith.mulf %93, %94 : vector<32x144xf32>
    %96 = arith.addf %91, %95 : vector<32x144xf32>
    %97 = vector.extract_strided_slice %27 {offsets = [0, 10], sizes = [32, 1], strides = [1, 1]} : vector<32x46xf32> to vector<32x1xf32>
    %98 = vector.extract_strided_slice %55 {offsets = [0, 18], sizes = [32, 144], strides = [1, 1]} : vector<32x256xf32> to vector<32x144xf32>
    %99 = vector.broadcast %97 : vector<32x1xf32> to vector<32x144xf32>
    %100 = arith.mulf %98, %99 : vector<32x144xf32>
    %101 = arith.addf %96, %100 : vector<32x144xf32>
    %102 = vector.extract_strided_slice %27 {offsets = [0, 11], sizes = [32, 1], strides = [1, 1]} : vector<32x46xf32> to vector<32x1xf32>
    %103 = vector.extract_strided_slice %55 {offsets = [0, 19], sizes = [32, 144], strides = [1, 1]} : vector<32x256xf32> to vector<32x144xf32>
    %104 = vector.broadcast %102 : vector<32x1xf32> to vector<32x144xf32>
    %105 = arith.mulf %103, %104 : vector<32x144xf32>
    %106 = arith.addf %101, %105 : vector<32x144xf32>
    %107 = vector.extract_strided_slice %27 {offsets = [0, 12], sizes = [32, 1], strides = [1, 1]} : vector<32x46xf32> to vector<32x1xf32>
    %108 = vector.extract_strided_slice %55 {offsets = [0, 20], sizes = [32, 144], strides = [1, 1]} : vector<32x256xf32> to vector<32x144xf32>
    %109 = vector.broadcast %107 : vector<32x1xf32> to vector<32x144xf32>
    %110 = arith.mulf %108, %109 : vector<32x144xf32>
    %111 = arith.addf %106, %110 : vector<32x144xf32>
    %112 = vector.extract_strided_slice %27 {offsets = [0, 13], sizes = [32, 1], strides = [1, 1]} : vector<32x46xf32> to vector<32x1xf32>
    %113 = vector.extract_strided_slice %55 {offsets = [0, 21], sizes = [32, 144], strides = [1, 1]} : vector<32x256xf32> to vector<32x144xf32>
    %114 = vector.broadcast %112 : vector<32x1xf32> to vector<32x144xf32>
    %115 = arith.mulf %113, %114 : vector<32x144xf32>
    %116 = arith.addf %111, %115 : vector<32x144xf32>
    %117 = vector.extract_strided_slice %27 {offsets = [0, 16], sizes = [32, 1], strides = [1, 1]} : vector<32x46xf32> to vector<32x1xf32>
    %118 = vector.extract_strided_slice %55 {offsets = [0, 32], sizes = [32, 144], strides = [1, 1]} : vector<32x256xf32> to vector<32x144xf32>
    %119 = vector.broadcast %117 : vector<32x1xf32> to vector<32x144xf32>
    %120 = arith.mulf %118, %119 : vector<32x144xf32>
    %121 = arith.addf %116, %120 : vector<32x144xf32>
    %122 = vector.extract_strided_slice %27 {offsets = [0, 17], sizes = [32, 1], strides = [1, 1]} : vector<32x46xf32> to vector<32x1xf32>
    %123 = vector.extract_strided_slice %55 {offsets = [0, 33], sizes = [32, 144], strides = [1, 1]} : vector<32x256xf32> to vector<32x144xf32>
    %124 = vector.broadcast %122 : vector<32x1xf32> to vector<32x144xf32>
    %125 = arith.mulf %123, %124 : vector<32x144xf32>
    %126 = arith.addf %121, %125 : vector<32x144xf32>
    %127 = vector.extract_strided_slice %27 {offsets = [0, 18], sizes = [32, 1], strides = [1, 1]} : vector<32x46xf32> to vector<32x1xf32>
    %128 = vector.extract_strided_slice %55 {offsets = [0, 34], sizes = [32, 144], strides = [1, 1]} : vector<32x256xf32> to vector<32x144xf32>
    %129 = vector.broadcast %127 : vector<32x1xf32> to vector<32x144xf32>
    %130 = arith.mulf %128, %129 : vector<32x144xf32>
    %131 = arith.addf %126, %130 : vector<32x144xf32>
    %132 = vector.extract_strided_slice %27 {offsets = [0, 19], sizes = [32, 1], strides = [1, 1]} : vector<32x46xf32> to vector<32x1xf32>
    %133 = vector.extract_strided_slice %55 {offsets = [0, 35], sizes = [32, 144], strides = [1, 1]} : vector<32x256xf32> to vector<32x144xf32>
    %134 = vector.broadcast %132 : vector<32x1xf32> to vector<32x144xf32>
    %135 = arith.mulf %133, %134 : vector<32x144xf32>
    %136 = arith.addf %131, %135 : vector<32x144xf32>
    %137 = vector.extract_strided_slice %27 {offsets = [0, 20], sizes = [32, 1], strides = [1, 1]} : vector<32x46xf32> to vector<32x1xf32>
    %138 = vector.extract_strided_slice %55 {offsets = [0, 36], sizes = [32, 144], strides = [1, 1]} : vector<32x256xf32> to vector<32x144xf32>
    %139 = vector.broadcast %137 : vector<32x1xf32> to vector<32x144xf32>
    %140 = arith.mulf %138, %139 : vector<32x144xf32>
    %141 = arith.addf %136, %140 : vector<32x144xf32>
    %142 = vector.extract_strided_slice %27 {offsets = [0, 21], sizes = [32, 1], strides = [1, 1]} : vector<32x46xf32> to vector<32x1xf32>
    %143 = vector.extract_strided_slice %55 {offsets = [0, 37], sizes = [32, 144], strides = [1, 1]} : vector<32x256xf32> to vector<32x144xf32>
    %144 = vector.broadcast %142 : vector<32x1xf32> to vector<32x144xf32>
    %145 = arith.mulf %143, %144 : vector<32x144xf32>
    %146 = arith.addf %141, %145 : vector<32x144xf32>
    %147 = vector.extract_strided_slice %27 {offsets = [0, 24], sizes = [32, 1], strides = [1, 1]} : vector<32x46xf32> to vector<32x1xf32>
    %148 = vector.extract_strided_slice %55 {offsets = [0, 48], sizes = [32, 144], strides = [1, 1]} : vector<32x256xf32> to vector<32x144xf32>
    %149 = vector.broadcast %147 : vector<32x1xf32> to vector<32x144xf32>
    %150 = arith.mulf %148, %149 : vector<32x144xf32>
    %151 = arith.addf %146, %150 : vector<32x144xf32>
    %152 = vector.extract_strided_slice %27 {offsets = [0, 25], sizes = [32, 1], strides = [1, 1]} : vector<32x46xf32> to vector<32x1xf32>
    %153 = vector.extract_strided_slice %55 {offsets = [0, 49], sizes = [32, 144], strides = [1, 1]} : vector<32x256xf32> to vector<32x144xf32>
    %154 = vector.broadcast %152 : vector<32x1xf32> to vector<32x144xf32>
    %155 = arith.mulf %153, %154 : vector<32x144xf32>
    %156 = arith.addf %151, %155 : vector<32x144xf32>
    %157 = vector.extract_strided_slice %27 {offsets = [0, 26], sizes = [32, 1], strides = [1, 1]} : vector<32x46xf32> to vector<32x1xf32>
    %158 = vector.extract_strided_slice %55 {offsets = [0, 50], sizes = [32, 144], strides = [1, 1]} : vector<32x256xf32> to vector<32x144xf32>
    %159 = vector.broadcast %157 : vector<32x1xf32> to vector<32x144xf32>
    %160 = arith.mulf %158, %159 : vector<32x144xf32>
    %161 = arith.addf %156, %160 : vector<32x144xf32>
    %162 = vector.extract_strided_slice %27 {offsets = [0, 27], sizes = [32, 1], strides = [1, 1]} : vector<32x46xf32> to vector<32x1xf32>
    %163 = vector.extract_strided_slice %55 {offsets = [0, 51], sizes = [32, 144], strides = [1, 1]} : vector<32x256xf32> to vector<32x144xf32>
    %164 = vector.broadcast %162 : vector<32x1xf32> to vector<32x144xf32>
    %165 = arith.mulf %163, %164 : vector<32x144xf32>
    %166 = arith.addf %161, %165 : vector<32x144xf32>
    %167 = vector.extract_strided_slice %27 {offsets = [0, 28], sizes = [32, 1], strides = [1, 1]} : vector<32x46xf32> to vector<32x1xf32>
    %168 = vector.extract_strided_slice %55 {offsets = [0, 52], sizes = [32, 144], strides = [1, 1]} : vector<32x256xf32> to vector<32x144xf32>
    %169 = vector.broadcast %167 : vector<32x1xf32> to vector<32x144xf32>
    %170 = arith.mulf %168, %169 : vector<32x144xf32>
    %171 = arith.addf %166, %170 : vector<32x144xf32>
    %172 = vector.extract_strided_slice %27 {offsets = [0, 29], sizes = [32, 1], strides = [1, 1]} : vector<32x46xf32> to vector<32x1xf32>
    %173 = vector.extract_strided_slice %55 {offsets = [0, 53], sizes = [32, 144], strides = [1, 1]} : vector<32x256xf32> to vector<32x144xf32>
    %174 = vector.broadcast %172 : vector<32x1xf32> to vector<32x144xf32>
    %175 = arith.mulf %173, %174 : vector<32x144xf32>
    %176 = arith.addf %171, %175 : vector<32x144xf32>
    %177 = vector.extract_strided_slice %27 {offsets = [0, 32], sizes = [32, 1], strides = [1, 1]} : vector<32x46xf32> to vector<32x1xf32>
    %178 = vector.extract_strided_slice %55 {offsets = [0, 64], sizes = [32, 144], strides = [1, 1]} : vector<32x256xf32> to vector<32x144xf32>
    %179 = vector.broadcast %177 : vector<32x1xf32> to vector<32x144xf32>
    %180 = arith.mulf %178, %179 : vector<32x144xf32>
    %181 = arith.addf %176, %180 : vector<32x144xf32>
    %182 = vector.extract_strided_slice %27 {offsets = [0, 33], sizes = [32, 1], strides = [1, 1]} : vector<32x46xf32> to vector<32x1xf32>
    %183 = vector.extract_strided_slice %55 {offsets = [0, 65], sizes = [32, 144], strides = [1, 1]} : vector<32x256xf32> to vector<32x144xf32>
    %184 = vector.broadcast %182 : vector<32x1xf32> to vector<32x144xf32>
    %185 = arith.mulf %183, %184 : vector<32x144xf32>
    %186 = arith.addf %181, %185 : vector<32x144xf32>
    %187 = vector.extract_strided_slice %27 {offsets = [0, 34], sizes = [32, 1], strides = [1, 1]} : vector<32x46xf32> to vector<32x1xf32>
    %188 = vector.extract_strided_slice %55 {offsets = [0, 66], sizes = [32, 144], strides = [1, 1]} : vector<32x256xf32> to vector<32x144xf32>
    %189 = vector.broadcast %187 : vector<32x1xf32> to vector<32x144xf32>
    %190 = arith.mulf %188, %189 : vector<32x144xf32>
    %191 = arith.addf %186, %190 : vector<32x144xf32>
    %192 = vector.extract_strided_slice %27 {offsets = [0, 35], sizes = [32, 1], strides = [1, 1]} : vector<32x46xf32> to vector<32x1xf32>
    %193 = vector.extract_strided_slice %55 {offsets = [0, 67], sizes = [32, 144], strides = [1, 1]} : vector<32x256xf32> to vector<32x144xf32>
    %194 = vector.broadcast %192 : vector<32x1xf32> to vector<32x144xf32>
    %195 = arith.mulf %193, %194 : vector<32x144xf32>
    %196 = arith.addf %191, %195 : vector<32x144xf32>
    %197 = vector.extract_strided_slice %27 {offsets = [0, 36], sizes = [32, 1], strides = [1, 1]} : vector<32x46xf32> to vector<32x1xf32>
    %198 = vector.extract_strided_slice %55 {offsets = [0, 68], sizes = [32, 144], strides = [1, 1]} : vector<32x256xf32> to vector<32x144xf32>
    %199 = vector.broadcast %197 : vector<32x1xf32> to vector<32x144xf32>
    %200 = arith.mulf %198, %199 : vector<32x144xf32>
    %201 = arith.addf %196, %200 : vector<32x144xf32>
    %202 = vector.extract_strided_slice %27 {offsets = [0, 37], sizes = [32, 1], strides = [1, 1]} : vector<32x46xf32> to vector<32x1xf32>
    %203 = vector.extract_strided_slice %55 {offsets = [0, 69], sizes = [32, 144], strides = [1, 1]} : vector<32x256xf32> to vector<32x144xf32>
    %204 = vector.broadcast %202 : vector<32x1xf32> to vector<32x144xf32>
    %205 = arith.mulf %203, %204 : vector<32x144xf32>
    %206 = arith.addf %201, %205 : vector<32x144xf32>
    %207 = vector.extract_strided_slice %27 {offsets = [0, 40], sizes = [32, 1], strides = [1, 1]} : vector<32x46xf32> to vector<32x1xf32>
    %208 = vector.extract_strided_slice %55 {offsets = [0, 80], sizes = [32, 144], strides = [1, 1]} : vector<32x256xf32> to vector<32x144xf32>
    %209 = vector.broadcast %207 : vector<32x1xf32> to vector<32x144xf32>
    %210 = arith.mulf %208, %209 : vector<32x144xf32>
    %211 = arith.addf %206, %210 : vector<32x144xf32>
    %212 = vector.extract_strided_slice %27 {offsets = [0, 41], sizes = [32, 1], strides = [1, 1]} : vector<32x46xf32> to vector<32x1xf32>
    %213 = vector.extract_strided_slice %55 {offsets = [0, 81], sizes = [32, 144], strides = [1, 1]} : vector<32x256xf32> to vector<32x144xf32>
    %214 = vector.broadcast %212 : vector<32x1xf32> to vector<32x144xf32>
    %215 = arith.mulf %213, %214 : vector<32x144xf32>
    %216 = arith.addf %211, %215 : vector<32x144xf32>
    %217 = vector.extract_strided_slice %27 {offsets = [0, 42], sizes = [32, 1], strides = [1, 1]} : vector<32x46xf32> to vector<32x1xf32>
    %218 = vector.extract_strided_slice %55 {offsets = [0, 82], sizes = [32, 144], strides = [1, 1]} : vector<32x256xf32> to vector<32x144xf32>
    %219 = vector.broadcast %217 : vector<32x1xf32> to vector<32x144xf32>
    %220 = arith.mulf %218, %219 : vector<32x144xf32>
    %221 = arith.addf %216, %220 : vector<32x144xf32>
    %222 = vector.extract_strided_slice %27 {offsets = [0, 43], sizes = [32, 1], strides = [1, 1]} : vector<32x46xf32> to vector<32x1xf32>
    %223 = vector.extract_strided_slice %55 {offsets = [0, 83], sizes = [32, 144], strides = [1, 1]} : vector<32x256xf32> to vector<32x144xf32>
    %224 = vector.broadcast %222 : vector<32x1xf32> to vector<32x144xf32>
    %225 = arith.mulf %223, %224 : vector<32x144xf32>
    %226 = arith.addf %221, %225 : vector<32x144xf32>
    %227 = vector.extract_strided_slice %27 {offsets = [0, 44], sizes = [32, 1], strides = [1, 1]} : vector<32x46xf32> to vector<32x1xf32>
    %228 = vector.extract_strided_slice %55 {offsets = [0, 84], sizes = [32, 144], strides = [1, 1]} : vector<32x256xf32> to vector<32x144xf32>
    %229 = vector.broadcast %227 : vector<32x1xf32> to vector<32x144xf32>
    %230 = arith.mulf %228, %229 : vector<32x144xf32>
    %231 = arith.addf %226, %230 : vector<32x144xf32>
    %232 = vector.extract_strided_slice %27 {offsets = [0, 45], sizes = [32, 1], strides = [1, 1]} : vector<32x46xf32> to vector<32x1xf32>
    %233 = vector.extract_strided_slice %55 {offsets = [0, 85], sizes = [32, 144], strides = [1, 1]} : vector<32x256xf32> to vector<32x144xf32>
    %234 = vector.broadcast %232 : vector<32x1xf32> to vector<32x144xf32>
    %235 = arith.mulf %233, %234 : vector<32x144xf32>
    %236 = arith.addf %231, %235 : vector<32x144xf32>
    %c0_49 = arith.constant 0 : index
    %c0_50 = arith.constant 0 : index
    %237 = vector.load %arg5[%c0_49, %c0_50] : memref<32x32xf32, #tpu.memory_space<vmem>>, vector<32x32xf32>
    %cst_51 = arith.constant dense<0.000000e+00> : vector<32x144xf32>
    %238 = tpu.matmul %237, %236, %cst_51 {dimension_numbers = #tpu.dot_dimension_numbers<[1], [0], [0], [1], [0, 0, 1, 1], [], []>} : vector<32x32xf32>, vector<32x144xf32>, vector<32x144xf32> -> vector<32x144xf32>
    %c0_52 = arith.constant 0 : index
    %c0_53 = arith.constant 0 : index
    %239 = vector.load %arg8[%c0_52, %c0_53] : memref<32x1xf32, #tpu.memory_space<vmem>>, vector<32x1xf32>
    %240 = vector.broadcast %239 : vector<32x1xf32> to vector<32x144xf32>
    %241 = arith.addf %238, %240 : vector<32x144xf32>
    %cst_54 = arith.constant 0.000000e+00 : f32
    %242 = vector.broadcast %cst_54 : f32 to vector<32x144xf32>
    %243 = arith.maximumf %241, %242 : vector<32x144xf32>
    %c0_55 = arith.constant 0 : index
    %c0_56 = arith.constant 0 : index
    %c0_57 = arith.constant 0 : index
    %244 = vector.load %arg9[%c0_55, %c0_56, %c0_57] : memref<1x32x144xf32, #tpu.memory_space<vmem>>, vector<1x32x144xf32>
    %245 = vector.shape_cast %244 : vector<1x32x144xf32> to vector<32x144xf32>
    %246 = vector.shape_cast %243 : vector<32x144xf32> to vector<1x32x144xf32>
    tpu.vector_store %arg9[%c0_55, %c0_56, %c0_57], %246 {strides = array<i32>} : memref<1x32x144xf32, #tpu.memory_space<vmem>>, vector<1x32x144xf32>,
    return
  }
  func.func @transform_0(%arg0: i32) -> (i32, i32, i32) {
    %c0_i32 = arith.constant 0 : i32
    %c0_i32_0 = arith.constant 0 : i32
    %c0_i32_1 = arith.constant 0 : i32
    return %arg0, %c0_i32, %c0_i32_0 : i32, i32, i32
  }
  func.func @transform_1(%arg0: i32) -> (i32, i32, i32) {
    %c0_i32 = arith.constant 0 : i32
    %c0_i32_0 = arith.constant 0 : i32
    %c0_i32_1 = arith.constant 0 : i32
    return %arg0, %c0_i32, %c0_i32_0 : i32, i32, i32
  }
  func.func @transform_2(%arg0: i32) -> (i32, i32) {
    %c0_i32 = arith.constant 0 : i32
    %c0_i32_0 = arith.constant 0 : i32
    %c0_i32_1 = arith.constant 0 : i32
    return %c0_i32, %c0_i32_0 : i32, i32
  }
  func.func @transform_3(%arg0: i32) -> (i32, i32) {
    %c0_i32 = arith.constant 0 : i32
    %c0_i32_0 = arith.constant 0 : i32
    %c0_i32_1 = arith.constant 0 : i32
    return %c0_i32, %c0_i32_0 : i32, i32
  }
  func.func @transform_4(%arg0: i32) -> (i32, i32) {
    %c0_i32 = arith.constant 0 : i32
    %c0_i32_0 = arith.constant 0 : i32
    %c0_i32_1 = arith.constant 0 : i32
    return %c0_i32, %c0_i32_0 : i32, i32
  }
  func.func @transform_5(%arg0: i32) -> (i32, i32) {
    %c0_i32 = arith.constant 0 : i32
    %c0_i32_0 = arith.constant 0 : i32
    %c0_i32_1 = arith.constant 0 : i32
    return %c0_i32, %c0_i32_0 : i32, i32
  }
  func.func @transform_6(%arg0: i32) -> (i32, i32) {
    %c0_i32 = arith.constant 0 : i32
    %c0_i32_0 = arith.constant 0 : i32
    %c0_i32_1 = arith.constant 0 : i32
    return %c0_i32, %c0_i32_0 : i32, i32
  }
  func.func @transform_7(%arg0: i32) -> (i32, i32) {
    %c0_i32 = arith.constant 0 : i32
    %c0_i32_0 = arith.constant 0 : i32
    %c0_i32_1 = arith.constant 0 : i32
    return %c0_i32, %c0_i32_0 : i32, i32
  }
  func.func @transform_8(%arg0: i32) -> (i32, i32, i32) {
    %c0_i32 = arith.constant 0 : i32
    %c0_i32_0 = arith.constant 0 : i32
    %c0_i32_1 = arith.constant 0 : i32
    return %arg0, %c0_i32, %c0_i32_0 : i32, i32, i32
  }
}

</mosaic_0001>

<bundles_post_ra>
// kernel: tpu_custom_call.1
= control target key start
LH: loop header
LB: loop body
LE: loop exit
PB: predicated region body
PF: predicated region fallthrough
CT: control target
= control target key end

     0   :  { %s6644_s0 = inlined_call_operand.hbm [shape: f32[2,4,64], index: 0, kind: input, shape index: {}]   ;;  %s6645_s1 = inlined_call_operand.hbm [shape: f32[2,4,290], index: 1, kind: input, shape index: {}]   ;;  %s6646_s2 = inlined_call_operand.vmem [shape: f32[32,36], index: 2, kind: input, shape index: {}]   ;;  %s6647_s3 = inlined_call_operand.vmem [shape: f32[32,36], index: 3, kind: input, shape index: {}]   ;;  %s6648_s4 = inlined_call_operand.vmem [shape: f32[32,32], index: 4, kind: input, shape index: {}]   ;;  %s6649_s5 = inlined_call_operand.vmem [shape: f32[32,1], index: 5, kind: input, shape index: {}]   ;;  %s6650_s6 = inlined_call_operand.vmem [shape: f32[32,1], index: 6, kind: input, shape index: {}]   ;;  %s6651_s7 = inlined_call_operand.vmem [shape: f32[32,1], index: 7, kind: input, shape index: {}]   ;;  %s6652_s8 = inlined_call_operand.hbm [shape: f32[2,32,144], index: 8, kind: output, shape index: {}]  }
   0x1   :  { %6779 = sst [smem:[#allocation175_spill]] %s6644_s0 }
   0x2   :  { %13 = vsyncpa [#allocation4], 0 }
   0x3   :  { %15 = vsyncpa [#allocation4 + $0x1], 0 }
   0x4   :  { %16 = vsyncpa [#allocation7], 0 }
   0x5   :  { %18 = vsyncpa [#allocation7 + $0x1], 0 }
   0x6   :  { %19 = vsyncpa [#allocation5], 0 }
   0x7   :  { %21 = vsyncpa [#allocation5 + $0x1], 0  ;;  %s4093_s27 = smov 0   ;;  %s4095_s28 = smov 0  }
   0x8   :  { %s4097_s29 = smov 0   ;;  %s4099_s30 = smov 0  }
   0x9 LB: > { %s4114_s9 = sadd.s32 4294967295, %s3966_s30   ;;  %s3503_s10 = sadd.s32 4294967294, %s3966_s30   ;;  %s3966_s30 = sphi %s4099_s30, %s7175_s30   ;;  %s3962_s29 = sphi %s4097_s29, %s7174_s29   ;;  %s3958_s28 = sphi %s4095_s28, %s7173_s28   ;;  %s3954_s27 = sphi %s4093_s27, %s7172_s27  }
   0xa   : > { %s4118_s11 = sadd.s32 1, %s3966_s30   ;;  %s34_s12 = sadd.s32 1, %s3962_s29 }
   0xb   : > { %s31_s13 = ssub.s32 %s3966_s30, %s4118_s11  ;;  %p41_p0 = scmp.ne.s32.totalorder %s3962_s29, %s3958_s28 }
   0xc   : > { %p32_p1 = scmp.eq.s32.totalorder %s31_s13, 0  ;;  %p42_p2 = scmp.eq.s32.totalorder %s3966_s30, 0 }
   0xd   : > { %p47_p3 = scmp.ne.s32.totalorder %s3958_s28, %s3954_s27  ;;  %p48_p4 = scmp.eq.s32.totalorder %s4114_s9, 0 }
   0xe   : > { %s4130_s14 = scalar_select %p32_p1, %s3962_s29, %s34_s12  }
   0xf   : > { %p4132_p5 = por %p42_p2, %p41_p0  ;;  %p4136_p6 = por %p48_p4, %p47_p3 }
  0x10   : > { %6780 = sst [smem:[#allocation12_spill]] %s4130_s14  ;;  %p223_p7 = scmp.eq.s32.totalorder %s4114_s9, 1 }
  0x11   : > { %s6782_s16 = scalar_select %p4136_p6, 1, 0 }
  0x12   : > { %p229_p8 = scmp.eq.s32.totalorder %s3503_s10, 1  ;;  %p3606_p10 = scmp.lt.s32.totalorder %s3966_s30, 2 }
  0x13   : > { %p4143_p11 = por %p223_p7, %p41_p0  ;;  %s4152_s19 = sand.u32 1, %s3962_s29  }
  0x14   : > { %p4147_p12 = por %p229_p8, %p47_p3  ;;  %s3507_s20 = sshll.u32 %s3966_s30, 6 }
  0x15   : > { %s6783_s17 = scalar_select %p4143_p11, 1, 0 }
  0x16   : > { %s6784_s18 = scalar_select %p4147_p12, 1, 0 }
  0x17   : > { %s3506_s21 = sshll.u32 %s4152_s19, 2  ;;  %s6785_s0 = sld [smem:[#allocation175_spill]] }
  0x18   : > { %s271_s25 = scalar_lea.vmem [#allocation3], %s3506_s21  ;;  %p4163_p13 = pnand %p3606_p10, %p4132_p5 }
  0x19   : > { %s278_s26 = sshll.u32 %s271_s25, 4  ;;  %s268_s12 = scalar_lea.sflag [#allocation4], %s4152_s19  ;;  %s4167_s26 = int_to_ptr.vmem [resolvable:$true] %s278_s26 }
  0x1a   : > { %p3838_p3 = pneg %p4163_p13 }
  0x1d   : > { %s4159_s24 = scalar_lea.hbm %s6785_s0, %s3507_s20  ;;  %s3841_s21 = scalar_lea.hbm %s6785_s0, 128 }
  0x1e   : > { %s3836_s13 = scalar_lea.hbm %s4159_s24, 64  ;;  %p3842_p5 = scmp.lt.u32.totalorder %s4159_s24, %s6785_s0 }
  0x1f   : > { %p3837_p2 = scmp.ne.s32.totalorder %s4159_s24, %s3836_s13  ;;  %p3843_p8 = scmp.lt.u32.totalorder %s3841_s21, %s3836_s13 }
  0x20   : > { %p3845_p9 = scmp.lt.u32.totalorder %s3836_s13, %s4159_s24 }
  0x21   : > { %p3839_p4 = pnand %p3838_p3, %p3837_p2  ;;  %p3844_p10 = por %p3843_p8, %p3842_p5 }
  0x23   : > { %p3840_p7 = pneg %p3839_p4  ;;  %p3846_p0 = por %p3845_p9, %p3844_p10 }
  0x25   : > { %p3847_p1 = pnand %p3846_p0, %p3840_p7 }
  0x27   : > { %3850 = shalt.err (!%p3847_p1)
}
  0x28   : > { %s3851_s25 = scalar_lea.vmem %s4167_s26, 64  ;;  %s3968_s15 = smov [#allocation3]  }
  0x29   : > { %p3852_p2 = scmp.ne.s32.totalorder %s4167_s26, %s3851_s25  ;;  %s3856_s20 = sshll.u32 %s3968_s15, 4  ;;  %s3857_s20 = int_to_ptr.vmem [resolvable:$false] %s3856_s20 }
  0x2a   : > { %s3858_s22 = scalar_lea.vmem %s3857_s20, 128  ;;  %p3859_p11 = scmp.lt.s32.totalorder %s4167_s26, %s3857_s20 }
  0x2b   : > { %p3854_p4 = pnand %p3852_p2, %p3838_p3  ;;  %p3860_p5 = scmp.lt.s32.totalorder %s3858_s22, %s3851_s25 }
  0x2d   : > { %p3855_p12 = pneg %p3854_p4  ;;  %p3861_p8 = por %p3860_p5, %p3859_p11 }
  0x2f   : > { %p3862_p9 = pnand %p3861_p8, %p3855_p12 }
  0x31   : > { %3865 = shalt.err (!%p3862_p9)
}
  0x32   : > { %3598 = dma.hbm_to_vmem [thread:$0]  (!%p4163_p13), %s4159_s24, 64, %s4167_s26, %s268_s12  }
  0x33   : > { %p6787_p0 = scmp.lt.s32.totalorder %s3966_s30, 3  ;;  %p6788_p1 = scmp.ge.s32.totalorder %s3966_s30, 1 }
  0x34   : > { %s3586_s21 = smul.u32 12, %s4152_s19  ;;  %s286_s24 = scalar_lea.sflag [#allocation7], %s4152_s19 }
  0x35   : > { %p4201_p7 = pnand %p6788_p1, %p6787_p0  ;;  %s3587_s23 = smul.u32 192, %s3966_s30 }
  0x36   : > { %s289_s22 = scalar_lea.vmem [#allocation6], %s3586_s21  ;;  %s3871_s25 = scalar_lea.hbm %s6645_s1, 384 }
  0x37   : > { %s6789_s13 = scalar_select %p4201_p7, 1, 0 }
  0x38   : > { %s4210_s20 = scalar_lea.hbm %s6645_s1, %s3587_s23  ;;  %s297_s0 = sshll.u32 %s289_s22, 4  ;;  %s298_s0 = int_to_ptr.vmem [resolvable:$true] %s297_s0 }
  0x39   : > { %s3866_s26 = scalar_lea.hbm %s4210_s20, 192  ;;  %p3872_p2 = scmp.lt.u32.totalorder %s4210_s20, %s6645_s1 }
  0x3a   : > { %p3867_p11 = scmp.ne.s32.totalorder %s4210_s20, %s3866_s26  ;;  %p3873_p4 = scmp.lt.u32.totalorder %s3871_s25, %s3866_s26 }
  0x3b   : > { %p3875_p8 = scmp.lt.u32.totalorder %s3866_s26, %s4210_s20 }
  0x3c   : > { %p3869_p12 = pnand %p3867_p11, %p3838_p3  ;;  %p3874_p5 = por %p3873_p4, %p3872_p2 }
  0x3e   : > { %p3870_p10 = pneg %p3869_p12  ;;  %p3876_p9 = por %p3875_p8, %p3874_p5 }
  0x40   : > { %p3877_p0 = pnand %p3876_p9, %p3870_p10 }
  0x42   : > { %3880 = shalt.err (!%p3877_p0)
}
  0x43   : > { %s3881_s19 = scalar_lea.vmem %s298_s0, 192  ;;  %s3969_s21 = smov [#allocation6]  }
  0x44   : > { %p3882_p1 = scmp.ne.s32.totalorder %s298_s0, %s3881_s19  ;;  %s3886_s14 = sshll.u32 %s3969_s21, 4  ;;  %s3887_s14 = int_to_ptr.vmem [resolvable:$false] %s3886_s14 }
  0x45   : > { %s3888_s22 = scalar_lea.vmem %s3887_s14, 384  ;;  %p3889_p6 = scmp.lt.s32.totalorder %s298_s0, %s3887_s14 }
  0x46   : > { %p3884_p11 = pnand %p3882_p1, %p3838_p3  ;;  %p3890_p7 = scmp.lt.s32.totalorder %s3888_s22, %s3881_s19 }
  0x48   : > { %p3885_p12 = pneg %p3884_p11  ;;  %p3891_p2 = por %p3890_p7, %p3889_p6 }
  0x4a   : > { %p3892_p4 = pnand %p3891_p2, %p3885_p12 }
  0x4c   : > { %3895 = shalt.err (!%p3892_p4)
}
  0x4d   : > { %3601 = dma.hbm_to_vmem [thread:$0]  (!%p4163_p13), %s4210_s20, 192, %s298_s0, %s286_s24  }
  0x4e   : > { %p6790_p10 = scmp.ne.s32.totalorder %s6789_s13, 0 }
  0x50   : > { %306 = sbr.rel (%p6790_p10) target bundleno = 2774 (0xad6), region = 52 }
  0x57   : > { %s4235_s26 = sand.u32 1, %s3958_s28   ;;  %p6791_p3 = scmp.ne.s32.totalorder %s6782_s16, 0 }
  0x58   : > { %s3510_s12 = sshll.u32 %s4235_s26, 2  ;;  %s309_s25 = scalar_lea.sflag [#allocation4], %s4235_s26 }
  0x59   : > { %s312_s23 = scalar_lea.vmem [#allocation3], %s3510_s12 }
  0x5a   : > { %3941 = dma.done.wait (%p6791_p3), %s309_s25, 64  }
  0x5b   : > { %3943 = vsyncadd (%p6791_p3), %s309_s25, 4294967232  ;;  %s3588_s0 = smul.u32 12, %s4235_s26  ;;  %s318_s10 = scalar_lea.sflag [#allocation7], %s4235_s26 }
  0x5d   : > { %s4245_s13 = scalar_lea.vmem [#allocation6], %s3588_s0 }
  0x5e   : > { %3945 = dma.done.wait (%p6791_p3), %s318_s10, 192  }
  0x5f   : > { %3947 = vsyncadd (%p6791_p3), %s318_s10, 4294967104  ;;  %v6673_v0 = vmov 0   ;;  %v359_v1 = vld [vmem:[%s312_s23] sm:$0xf]  ;;  %vm368_vm0 = vcmask 371712   ;;  %s3971_s20 = smov 119  }
  0x60   : > { %3718 = vset.pattern.permute.xlu1 %v6673_v0  ;;  %3717 = vset.pattern.permute.xlu0 %v6673_v0  ;;  %s6684_s24 = smov 126   ;;  %v371_v2 = vrot.slane %v359_v1, 4  ;;  %369 = vst.msk [vmem:[#allocation2] sm:$0xf] %vm368_vm0, %v359_v1  ;;  %v4256_v3 = vld [vmem:[%s4245_s13] sm:$0xff]  ;;  %s6690_s16 = smov 112  }
  0x61   : > { %385 = vrot.lane.b32.xlu1 %v359_v1, %s3971_s20  ;;  %377 = vrot.lane.b32.xlu0 %v359_v1, %s6684_s24  ;;  %v547_v4 = vcombine.high %v4256_v3, %v4256_v3  ;;  %s3974_s15 = smov 127   ;;  %s3975_s19 = smov 120   ;;  %v365_v5 = vld [vmem:[%s6649_s5 + $0x8] sm:$0xff]  ;;  %v364_v6 = vld [vmem:[%s6649_s5] sm:$0xff]  ;;  %vm430_vm1 = vcmask 293888   ;;  %v552_v10 = vcombine.low %v4256_v3, %v4256_v3  ;;  %v6669_v17 = vmov 0.0  }
  0x62   : > { %s3976_s21 = smov 118   ;;  %s6655_s14 = smov 110   ;;  %v360_v7 = vld [vmem:[%s6646_s2] sm:$0xff]  ;;  %v366_v8 = vld [vmem:[%s6649_s5 + $0x10] sm:$0xff]  ;;  %v367_v9 = vld [vmem:[%s6649_s5 + $0x18] sm:$0xff]  ;;  %770 = vmatprep.mubr.f32.mxu1 %v6669_v17  ;;  %vm375_vm2 = vcmask 375812  }
  0x63   : > { %550 = vst [vmem:[#allocation2 + $0x8] sm:$0xf] %v547_v4  ;;  %s6667_s22 = smov 111   ;;  %3552 = vmatprep.mubr.msk.f32.mxu0 %vm430_vm1, %v360_v7  ;;  %v537_v11 = vld [vmem:[%s4245_s13 + $0x8] sm:$0xf]  ;;  %s6792_s13 = smov 110  }
  0x64   : > { %v553_v12 = vcombine.low %v537_v11, %v537_v11  ;;  %s6657_s25 = smov 95   ;;  %s6663_s23 = smov 94   ;;  %v542_v13 = vld [vmem:[%s6650_s6] sm:$0xff]  ;;  %v543_v14 = vld [vmem:[%s6650_s6 + $0x8] sm:$0xff]  ;;  %v544_v15 = vld [vmem:[%s6650_s6 + $0x10] sm:$0xff]  ;;  %vm443_vm3 = vcmask 1043456  }
  0x65   : > { %393 = vrot.lane.b32.xlu1 %v359_v1, %s6690_s16  ;;  %372 = vrot.lane.b32.xlu0 %v371_v2, %s3974_s15  ;;  %v545_v16 = vld [vmem:[%s6650_s6 + $0x18] sm:$0xff]  ;;  %v361_v33 = vld [vmem:[%s6646_s2 + $0x8] sm:$0xff]  ;;  %vm560_vm4 = vcmask 1039360   ;;  %vm573_vm5 = vcmask 1031168   ;;  %vm586_vm6 = vcmask 916480   ;;  %vm599_vm7 = vcmask 908288  }
  0x66   : > { %v362_v34 = vld [vmem:[%s6646_s2 + $0x10] sm:$0xff]  ;;  %v363_v37 = vld [vmem:[%s6646_s2 + $0x18] sm:$0xff]  ;;  %vm612_vm8 = vcmask 900096   ;;  %vm625_vm9 = vcmask 785408   ;;  %vm638_vm10 = vcmask 777216   ;;  %vm651_vm11 = vcmask 769024  }
  0x67   : > { %s6691_s12 = smov 124   ;;  %s6679_s0 = smov 108   ;;  %vm1023_vm12 = vcmask 1022976   ;;  %vm1092_vm13 = vcmask 1014784   ;;  %vm1161_vm14 = vcmask 1006592   ;;  %vm1434_vm15 = vcmask 891904  }
  0x68   : > { %s6661_s10 = smov 107   ;;  %s6793_s20 = smov 96  }
  0x69   : > { %381 = vrot.lane.b32.xlu1 %v371_v2, %s3975_s19  ;;  %389 = vrot.lane.b32.xlu0 %v371_v2, %s3976_s21  ;;  %s6685_s21 = smov 125   ;;  %s6794_s19 = smov 95  }
  0x6a   : > { %p7168_p13 = scmp.ne.s32.totalorder %s6783_s17, 0 }
  0x6d   : > { %401 = vrot.lane.b32.xlu1 %v359_v1, %s6655_s14  ;;  %397 = vrot.lane.b32.xlu0 %v371_v2, %s6667_s22  ;;  %s6659_s14 = smov 96  }
  0x71   : > { %417 = vperm.xlu1 %3718, %v365_v5   ;;  %412 = vperm.xlu0 %3717, %v364_v6  }
  0x75   : > { %422 = vperm.xlu1 %3718, %v366_v8   ;;  %427 = vperm.xlu0 %3717, %v367_v9  }
  0x79   : > { %554 = vrot.lane.b32.xlu1 %v552_v10, %s3974_s15  ;;  %556 = vrot.lane.b32.xlu0 %v4256_v3, %s3974_s15 }
  0x7d   : > { %558 = vrot.lane.b32.xlu1 %v553_v12, %s3974_s15  ;;  %567 = vrot.lane.b32.xlu0 %v4256_v3, %s6684_s24 }
  0x81   : > { %569 = vrot.lane.b32.xlu1 %v547_v4, %s6684_s24  ;;  %571 = vrot.lane.b32.xlu0 %v537_v11, %s6684_s24 }
  0x85   : > { %580 = vrot.lane.b32.xlu1 %v552_v10, %s6690_s16  ;;  %582 = vrot.lane.b32.xlu0 %v4256_v3, %s6690_s16 }
  0x89   : > { %584 = vrot.lane.b32.xlu1 %v553_v12, %s6690_s16  ;;  %593 = vrot.lane.b32.xlu0 %v4256_v3, %s6667_s22 }
  0x8d   : > { %595 = vrot.lane.b32.xlu1 %v547_v4, %s6667_s22  ;;  %597 = vrot.lane.b32.xlu0 %v537_v11, %s6667_s22 }
  0x91   : > { %606 = vrot.lane.b32.xlu1 %v552_v10, %s6792_s13  ;;  %608 = vrot.lane.b32.xlu0 %v4256_v3, %s6792_s13 }
  0x95   : > { %610 = vrot.lane.b32.xlu1 %v553_v12, %s6792_s13  ;;  %619 = vrot.lane.b32.xlu0 %v4256_v3, %s6659_s14 }
  0x99   : > { %621 = vrot.lane.b32.xlu1 %v547_v4, %s6659_s14  ;;  %623 = vrot.lane.b32.xlu0 %v537_v11, %s6659_s14  ;;  %s6665_s14 = smov 123  }
  0x9d   : > { %632 = vrot.lane.b32.xlu1 %v552_v10, %s6657_s25  ;;  %634 = vrot.lane.b32.xlu0 %v4256_v3, %s6657_s25 }
  0xa1   : > { %636 = vrot.lane.b32.xlu1 %v553_v12, %s6657_s25  ;;  %645 = vrot.lane.b32.xlu0 %v4256_v3, %s6663_s23  ;;  %s6682_s25 = smov 109  }
  0xa5   : > { %647 = vrot.lane.b32.xlu1 %v547_v4, %s6663_s23  ;;  %649 = vrot.lane.b32.xlu0 %v537_v11, %s6663_s23 }
  0xa9   : > { %670 = vperm.xlu1 %3718, %v542_v13   ;;  %675 = vperm.xlu0 %3717, %v543_v14  }
  0xad   : > { %680 = vperm.xlu1 %3718, %v544_v15   ;;  %685 = vperm.xlu0 %3717, %v545_v16  }
  0xd3   : > { %v386_v18 = vpop.permute.xlu1 %385  ;;  %v378_v19 = vpop.permute.xlu0 %377 }
  0xd4   : > { %388 = vst.msk [vmem:[#allocation2 + $0x20] sm:$0xf] %vm368_vm0, %v386_v18  ;;  %380 = vst.msk [vmem:[#allocation2 + $0x10] sm:$0xf] %vm368_vm0, %v378_v19 }
  0xd7   : > { %v394_v20 = vpop.permute.xlu1 %393  ;;  %v373_v21 = vpop.permute.xlu0 %372 }
  0xd8   : > { %396 = vst.msk [vmem:[#allocation2 + $0x30] sm:$0xf] %vm368_vm0, %v394_v20 }
  0xd9   : > { %376 = vst.msk [vmem:[#allocation2] sm:$0xf0] %vm375_vm2, %v373_v21 }
  0xdb   : > { %v382_v22 = vpop.permute.xlu1 %381  ;;  %v390_v23 = vpop.permute.xlu0 %389 }
  0xdc   : > { %384 = vst.msk [vmem:[#allocation2 + $0x10] sm:$0xf0] %vm375_vm2, %v382_v22  ;;  %392 = vst.msk [vmem:[#allocation2 + $0x20] sm:$0xf0] %vm375_vm2, %v390_v23 }
  0xdf   : > { %v398_v24 = vpop.permute.xlu0 %397  ;;  %v402_v25 = vpop.permute.xlu1 %401 }
  0xe0   : > { %v405_v26 = vld [vmem:[#allocation2] sm:$0xff]  ;;  %400 = vst.msk [vmem:[#allocation2 + $0x30] sm:$0xf0] %vm375_vm2, %v398_v24  ;;  %vm1845_vm2 = vcmask 760832  }
  0xe1   : > { %404 = vst.msk [vmem:[#allocation2 + $0x40] sm:$0xf] %vm368_vm0, %v402_v25  ;;  %549 = vst [vmem:[#allocation2] sm:$0xf] %v4256_v3  ;;  %vm1503_vm0 = vcmask 883712  }
  0xe3   : > { %v406_v27 = vld [vmem:[#allocation2 + $0x10] sm:$0xff]  ;;  %v407_v29 = vld [vmem:[#allocation2 + $0x20] sm:$0xff] }
  0xe4   : > { %v3558_v28 = vpack.c.bf16 %v406_v27, %v405_v26 }
  0xe6   : > { %3559 = vmatprep.subr.bf16.mxu0 %v3558_v28 }
  0xe7   : > { %3561 = vmatpush3.bf16.msra.mxu0 %v3558_v28  ;;  %v408_v30 = vld [vmem:[#allocation2 + $0x30] sm:$0xff] }
  0xe8   : > { %v3562_v31 = vpack.c.bf16 %v408_v30, %v407_v29  ;;  %v409_v32 = vld [vmem:[#allocation2 + $0x40] sm:$0xf] }
  0xea   : > { %3563 = vmatprep.subr.bf16.mxu0 %v3562_v31 }
  0xeb   : > { %3565 = vmatpush3.bf16.msra.mxu0 %v3562_v31 }
  0xec   : > { %3550 = vmatprep.subr.msk.mxu0 %vm443_vm3, %v409_v32 }
  0xef   : > { %3551 = vmatpush3.msk.msra.mxu0 %vm443_vm3, %v409_v32  ;;  %v538_v32 = vld [vmem:[%s6647_s3] sm:$0xff] }
  0xf0   : > { %v4341_v35 = vpop.permute.xlu1 %417  ;;  %3553 = vmatmul.mubr.msk.f32.vlgmr.msra.gmra.mrb[0].mxu0 %vm430_vm1, %v361_v33  ;;  %v4344_v36 = vpop.permute.xlu0 %412  ;;  %v539_v33 = vld [vmem:[%s6647_s3 + $0x8] sm:$0xff] }
  0xf1   : > { %3555 = vmatprep.mubr.msk.f32.mxu0 %vm430_vm1, %v362_v34  ;;  %v540_v34 = vld [vmem:[%s6647_s3 + $0x10] sm:$0xff] }
  0xf4   : > { %v4350_v38 = vpop.permute.xlu1 %422  ;;  %3556 = vmatmul.mubr.msk.f32.gmra.mrb[2].mxu0 %vm430_vm1, %v363_v37  ;;  %v4353_v39 = vpop.permute.xlu0 %427  ;;  %v541_v37 = vld [vmem:[%s6647_s3 + $0x18] sm:$0xff] }
  0xf5   : > { %3351 = vmatprep.mubr.f32.mxu0 %v6669_v17 }
  0xf8   : > { %v555_v40 = vpop.permute.xlu1 %554  ;;  %v557_v41 = vpop.permute.xlu0 %556 }
  0xf9   : > { %v561_v42 = vsel %vm560_vm4, %v555_v40, %v557_v41  ;;  %v3983_v40 = vmov 2  }
  0xfa   : > { %565 = vst [vmem:[#allocation2] sm:$0xf0] %v561_v42  ;;  %3720 = vset.pattern.permute.xlu1 %v3983_v40 }
  0xfc   : > { %v559_v43 = vpop.permute.xlu1 %558  ;;  %v568_v44 = vpop.permute.xlu0 %567 }
  0xfd   : > { %v562_v45 = vsel %vm560_vm4, %v557_v41, %v559_v43  ;;  %v3984_v41 = vmov 1  }
  0xfe   : > { %566 = vst [vmem:[#allocation2 + $0x8] sm:$0xf0] %v562_v45  ;;  %3719 = vset.pattern.permute.xlu0 %v3984_v41 }
 0x100   : > { %v570_v46 = vpop.permute.xlu1 %569  ;;  %v572_v47 = vpop.permute.xlu0 %571 }
 0x101   : > { %v574_v48 = vsel %vm573_vm5, %v568_v44, %v570_v46  ;;  %v575_v49 = vsel %vm573_vm5, %v570_v46, %v572_v47  ;;  %v658_v60 = vld [vmem:[#allocation2] sm:$0xff] }
 0x102   : > { %578 = vst [vmem:[#allocation2 + $0x10] sm:$0xf] %v574_v48  ;;  %579 = vst [vmem:[#allocation2 + $0x18] sm:$0xf] %v575_v49  ;;  %v3985_v48 = vmov 4   ;;  %v3986_v49 = vmov 3  }
 0x104   : > { %v581_v50 = vpop.permute.xlu1 %580  ;;  %v583_v51 = vpop.permute.xlu0 %582 }
 0x105   : > { %v587_v52 = vsel %vm586_vm6, %v581_v50, %v583_v51  ;;  %v659_v62 = vld [vmem:[#allocation2 + $0x8] sm:$0xff]  ;;  %v3988_v50 = vmov 5  }
 0x106   : > { %591 = vst [vmem:[#allocation2 + $0x10] sm:$0xf0] %v587_v52  ;;  %v3990_v52 = vmov 9  }
 0x108   : > { %v585_v53 = vpop.permute.xlu1 %584  ;;  %v594_v54 = vpop.permute.xlu0 %593 }
 0x109   : > { %v588_v55 = vsel %vm586_vm6, %v583_v51, %v585_v53  ;;  %v3989_v51 = vmov 10   ;;  %v3991_v53 = vmov 12  }
 0x10a   : > { %592 = vst [vmem:[#allocation2 + $0x18] sm:$0xf0] %v588_v55  ;;  %v3993_v55 = vmov 16  }
 0x10c   : > { %v596_v56 = vpop.permute.xlu1 %595  ;;  %v598_v57 = vpop.permute.xlu0 %597 }
 0x10d   : > { %v600_v58 = vsel %vm599_vm7, %v594_v54, %v596_v56  ;;  %v601_v59 = vsel %vm599_vm7, %v596_v56, %v598_v57  ;;  %v660_v61 = vld [vmem:[#allocation2 + $0x10] sm:$0xff]  ;;  %v3992_v54 = vmov 11   ;;  %v3994_v56 = vmov 13  }
 0x10e   : > { %604 = vst [vmem:[#allocation2 + $0x20] sm:$0xf] %v600_v58  ;;  %605 = vst [vmem:[#allocation2 + $0x28] sm:$0xf] %v601_v59  ;;  %v3568_v4 = vpack.c.bf16 %v660_v61, %v658_v60  ;;  %v3995_v57 = vmov 18   ;;  %v3996_v58 = vmov 17  }
 0x10f   : > { %v3997_v60 = vmov 20   ;;  %v3998_v61 = vmov 19  }
 0x110   : > { %v607_v63 = vpop.permute.xlu1 %606  ;;  %v609_v1 = vpop.permute.xlu0 %608 }
 0x111   : > { %v613_v2 = vsel %vm612_vm8, %v607_v63, %v609_v1  ;;  %v661_v3 = vld [vmem:[#allocation2 + $0x18] sm:$0xff] }
 0x112   : > { %617 = vst [vmem:[#allocation2 + $0x20] sm:$0xf0] %v613_v2  ;;  %v3566_v5 = vpack.c.bf16 %v661_v3, %v659_v62 }
 0x114   : > { %v611_v6 = vpop.permute.xlu1 %610  ;;  %v620_v7 = vpop.permute.xlu0 %619  ;;  %3567 = vmatprep.subr.bf16.mxu1 %v3566_v5 }
 0x115   : > { %v614_v8 = vsel %vm612_vm8, %v609_v1, %v611_v6  ;;  %3569 = vmatpush1.bf16.msra.mxu1 %v3568_v4 }
 0x116   : > { %618 = vst [vmem:[#allocation2 + $0x28] sm:$0xf0] %v614_v8 }
 0x118   : > { %v622_v9 = vpop.permute.xlu1 %621  ;;  %v624_v10 = vpop.permute.xlu0 %623 }
 0x119   : > { %v626_v11 = vsel %vm625_vm9, %v620_v7, %v622_v9  ;;  %v627_v12 = vsel %vm625_vm9, %v622_v9, %v624_v10  ;;  %v662_v24 = vld [vmem:[#allocation2 + $0x20] sm:$0xff] }
 0x11a   : > { %630 = vst [vmem:[#allocation2 + $0x30] sm:$0xf] %v626_v11  ;;  %631 = vst [vmem:[#allocation2 + $0x38] sm:$0xf] %v627_v12 }
 0x11c   : > { %v633_v13 = vpop.permute.xlu1 %632  ;;  %v635_v14 = vpop.permute.xlu0 %634 }
 0x11d   : > { %v639_v15 = vsel %vm638_vm10, %v633_v13, %v635_v14  ;;  %v663_v26 = vld [vmem:[#allocation2 + $0x28] sm:$0xff] }
 0x11e   : > { %643 = vst [vmem:[#allocation2 + $0x30] sm:$0xf0] %v639_v15 }
 0x120   : > { %v637_v16 = vpop.permute.xlu1 %636  ;;  %v646_v18 = vpop.permute.xlu0 %645 }
 0x121   : > { %v640_v19 = vsel %vm638_vm10, %v635_v14, %v637_v16 }
 0x122   : > { %644 = vst [vmem:[#allocation2 + $0x38] sm:$0xf0] %v640_v19 }
 0x124   : > { %v648_v20 = vpop.permute.xlu1 %647  ;;  %v650_v21 = vpop.permute.xlu0 %649 }
 0x125   : > { %v652_v22 = vsel %vm651_vm11, %v646_v18, %v648_v20  ;;  %v653_v23 = vsel %vm651_vm11, %v648_v20, %v650_v21  ;;  %v664_v25 = vld [vmem:[#allocation2 + $0x30] sm:$0xff] }
 0x126   : > { %656 = vst [vmem:[#allocation2 + $0x40] sm:$0xf] %v652_v22  ;;  %657 = vst [vmem:[#allocation2 + $0x48] sm:$0xf] %v653_v23  ;;  %v3572_v28 = vpack.c.bf16 %v664_v25, %v662_v24 }
 0x128   : > { %v676_v9 = vpop.permute.xlu0 %675 }
 0x129   : > { %v665_v27 = vld [vmem:[#allocation2 + $0x38] sm:$0xff] }
 0x12a   : > { %v3570_v29 = vpack.c.bf16 %v665_v27, %v663_v26 }
 0x12c   : > { %3571 = vmatprep.subr.bf16.mxu1 %v3570_v29  ;;  %v4524_v13 = vpop.permute.xlu0 %685 }
 0x12d   : > { %3573 = vmatpush1.bf16.msra.mxu1 %v3572_v28  ;;  %v667_v30 = vld [vmem:[#allocation2 + $0x48] sm:$0xf]  ;;  %v666_v31 = vld [vmem:[#allocation2 + $0x40] sm:$0xf] }
 0x12e   : > { %3517 = vmatprep.subr.msk.mxu1 %vm443_vm3, %v667_v30 }
 0x131   : > { %3518 = vmatpush1.msk.msra.mxu1 %vm443_vm3, %v666_v31  ;;  %vm1914_vm3 = vcmask 752640  }
 0x132   : > { %3519 = vmatmul.mubr.msk.f32.vlgmr.msra.gmra.mrb[0].mxu1 %vm430_vm1, %v538_v32 }
 0x133   : > { %776 = vmatprep.mubr.f32.mxu1 %v6669_v17 }
 0x136   : > { %3520 = vmatmul.mubr.msk.f32.gmra.mrb[2].mxu1 %vm430_vm1, %v539_v33 }
 0x137   : > { %782 = vmatprep.mubr.f32.mxu1 %v6669_v17 }
 0x13a   : > { %3521 = vmatmul.mubr.msk.f32.gmra.mrb[4].mxu1 %vm430_vm1, %v540_v34 }
 0x13b   : > { %788 = vmatprep.mubr.f32.mxu1 %v6669_v17 }
 0x13e   : > { %3522 = vmatmul.mubr.msk.f32.gmra.mrb[6].mxu1 %vm430_vm1, %v541_v37  ;;  %vm1572_vm1 = vcmask 875520  }
 0x13f   : > { %3369 = vmatprep.mubr.f32.mxu1 %v6669_v17 }
 0x1c3   : > { %v3554_v42 = vpop.f32.mrb[0].mxu0 }
 0x1c4   : > { %v519_v43 = vadd.f32 %v3554_v42, %v4341_v35  ;;  %v513_v44 = vpop.f32.mrb[1].mxu0  ;;  %v3987_v35 = vmov 8  }
 0x1c5   : > { %v514_v59 = vadd.f32 %v513_v44, %v4344_v36 }
 0x1c6   : > { %v4397_v45 = vmax.f32 %v519_v43, 0.0 }
 0x1c7   : > { %v4399_v46 = vpop.f32.mrb[2].mxu0  ;;  %v4434_v62 = vmax.f32 %v514_v59, 0.0 }
 0x1c8   : > { %912 = vperm.xlu1 %3720, %v4397_v45   ;;  %844 = vperm.xlu0 %3719, %v4397_v45   ;;  %v4403_v47 = vpop.f32.mrb[3].mxu0  ;;  %v529_v6 = vadd.f32 %v4399_v46, %v4353_v39  ;;  %v4516_v39 = vpop.permute.xlu1 %670 }
 0x1c9   : > { %v524_v10 = vadd.f32 %v4403_v47, %v4350_v38 }
 0x1ca   : > { %v4482_v8 = vmax.f32 %v529_v6, 0.0 }
 0x1cb   : > { %v4526_v14 = vmax.f32 %v524_v10, 0.0 }
 0x1cc   : > { %3722 = vset.pattern.permute.xlu1 %v3985_v48  ;;  %3721 = vset.pattern.permute.xlu0 %v3986_v49  ;;  %v4522_v12 = vpop.permute.xlu1 %680 }
 0x1cd   : > { %1049 = vperm.xlu1 %3722, %v4397_v45   ;;  %980 = vperm.xlu0 %3721, %v4397_v45  }
 0x1d1   : > { %3724 = vset.pattern.permute.xlu1 %v3987_v35  ;;  %3723 = vset.pattern.permute.xlu0 %v3988_v50 }
 0x1d2   : > { %1187 = vperm.xlu1 %3724, %v4397_v45   ;;  %1118 = vperm.xlu0 %3723, %v4397_v45  }
 0x1d6   : > { %3726 = vset.pattern.permute.xlu1 %v3989_v51  ;;  %3725 = vset.pattern.permute.xlu0 %v3990_v52 }
 0x1d7   : > { %1323 = vperm.xlu1 %3726, %v4397_v45   ;;  %1255 = vperm.xlu0 %3725, %v4397_v45  }
 0x1db   : > { %3728 = vset.pattern.permute.xlu1 %v3991_v53  ;;  %3727 = vset.pattern.permute.xlu0 %v3992_v54 }
 0x1dc   : > { %1460 = vperm.xlu1 %3728, %v4397_v45   ;;  %1391 = vperm.xlu0 %3727, %v4397_v45  }
 0x1e0   : > { %3730 = vset.pattern.permute.xlu1 %v3993_v55  ;;  %3729 = vset.pattern.permute.xlu0 %v3994_v56 }
 0x1e1   : > { %1598 = vperm.xlu1 %3730, %v4397_v45   ;;  %1529 = vperm.xlu0 %3729, %v4397_v45  }
 0x1e5   : > { %3732 = vset.pattern.permute.xlu1 %v3995_v57  ;;  %3731 = vset.pattern.permute.xlu0 %v3996_v58 }
 0x1e6   : > { %1734 = vperm.xlu1 %3732, %v4397_v45   ;;  %1666 = vperm.xlu0 %3731, %v4397_v45  }
 0x1ea   : > { %3734 = vset.pattern.permute.xlu1 %v3997_v60  ;;  %3733 = vset.pattern.permute.xlu0 %v3998_v61 }
 0x1eb   : > { %1871 = vperm.xlu1 %3734, %v4397_v45   ;;  %1802 = vperm.xlu0 %3733, %v4397_v45  }
 0x1ef   : > { %3735 = vset.pattern.permute.xlu1 %v6673_v0  ;;  %3737 = vset.pattern.permute.xlu0 %v3983_v40 }
 0x1f0   : > { %908 = vperm.xlu0 %3737, %v4434_v62   ;;  %805 = vperm.xlu1 %3735, %v4434_v62  }
 0x1f4   : > { %3739 = vset.pattern.permute.xlu0 %v3985_v48  ;;  %3736 = vset.pattern.permute.xlu1 %v3984_v41 }
 0x1f5   : > { %1045 = vperm.xlu0 %3739, %v4434_v62   ;;  %840 = vperm.xlu1 %3736, %v4434_v62  }
 0x1f9   : > { %3741 = vset.pattern.permute.xlu0 %v3987_v35  ;;  %3738 = vset.pattern.permute.xlu1 %v3986_v49 }
 0x1fa   : > { %1183 = vperm.xlu0 %3741, %v4434_v62   ;;  %976 = vperm.xlu1 %3738, %v4434_v62  }
 0x1fe   : > { %3743 = vset.pattern.permute.xlu0 %v3989_v51  ;;  %3740 = vset.pattern.permute.xlu1 %v3988_v50 }
 0x1ff   : > { %1319 = vperm.xlu0 %3743, %v4434_v62   ;;  %1114 = vperm.xlu1 %3740, %v4434_v62  }
 0x203   : > { %3745 = vset.pattern.permute.xlu0 %v3991_v53  ;;  %3742 = vset.pattern.permute.xlu1 %v3990_v52 }
 0x204   : > { %1456 = vperm.xlu0 %3745, %v4434_v62   ;;  %1251 = vperm.xlu1 %3742, %v4434_v62  }
 0x205   : > { %v4456_v36 = vpop.f32.mrb[0].mxu1 }
 0x206   : > { %v4458_v63 = vpop.f32.mrb[1].mxu1 }
 0x208   : > { %3747 = vset.pattern.permute.xlu0 %v3993_v55  ;;  %3744 = vset.pattern.permute.xlu1 %v3992_v54 }
 0x209   : > { %v778_v1 = vpop.f32.mrb[2].mxu1  ;;  %1594 = vperm.xlu0 %3747, %v4434_v62   ;;  %1387 = vperm.xlu1 %3744, %v4434_v62  }
 0x20a   : > { %v780_v2 = vpop.f32.mrb[3].mxu1  ;;  %v779_v11 = vadd.f32 %v778_v1, %v676_v9 }
 0x20b   : > { %v781_v16 = vadd.f32 %v780_v2, %v676_v9 }
 0x20c   : > { %v4530_v15 = vmax.f32 %v779_v11, 0.0 }
 0x20d   : > { %v4464_v3 = vpop.f32.mrb[4].mxu1  ;;  %3749 = vset.pattern.permute.xlu0 %v3995_v57  ;;  %3746 = vset.pattern.permute.xlu1 %v3994_v56  ;;  %v4539_v20 = vmax.f32 %v781_v16, 0.0 }
 0x20e   : > { %v4468_v4 = vpop.f32.mrb[5].mxu1  ;;  %1730 = vperm.xlu0 %3749, %v4434_v62   ;;  %1525 = vperm.xlu1 %3746, %v4434_v62  }
 0x211   : > { %v4472_v5 = vpop.f32.mrb[6].mxu1 }
 0x212   : > { %v4476_v7 = vpop.f32.mrb[7].mxu1  ;;  %3751 = vset.pattern.permute.xlu0 %v3997_v60  ;;  %3748 = vset.pattern.permute.xlu1 %v3996_v58 }
 0x213   : > { %1867 = vperm.xlu0 %3751, %v4434_v62   ;;  %1662 = vperm.xlu1 %3748, %v4434_v62  }
 0x217   : > { %3753 = vset.pattern.permute.xlu0 %v3983_v40  ;;  %3750 = vset.pattern.permute.xlu1 %v3998_v61 }
 0x218   : > { %920 = vperm.xlu0 %3753, %v4482_v8   ;;  %1798 = vperm.xlu1 %3750, %v4434_v62  }
 0x21c   : > { %3755 = vset.pattern.permute.xlu0 %v3985_v48  ;;  %3752 = vset.pattern.permute.xlu1 %v3984_v41 }
 0x21d   : > { %1057 = vperm.xlu0 %3755, %v4482_v8   ;;  %852 = vperm.xlu1 %3752, %v4482_v8  }
 0x221   : > { %3757 = vset.pattern.permute.xlu0 %v3987_v35  ;;  %3754 = vset.pattern.permute.xlu1 %v3986_v49 }
 0x222   : > { %1195 = vperm.xlu0 %3757, %v4482_v8   ;;  %988 = vperm.xlu1 %3754, %v4482_v8  }
 0x226   : > { %3759 = vset.pattern.permute.xlu0 %v3989_v51  ;;  %3756 = vset.pattern.permute.xlu1 %v3988_v50 }
 0x227   : > { %1331 = vperm.xlu0 %3759, %v4482_v8   ;;  %1126 = vperm.xlu1 %3756, %v4482_v8  }
 0x22b   : > { %3761 = vset.pattern.permute.xlu0 %v3991_v53  ;;  %3758 = vset.pattern.permute.xlu1 %v3990_v52 }
 0x22c   : > { %1468 = vperm.xlu0 %3761, %v4482_v8   ;;  %1263 = vperm.xlu1 %3758, %v4482_v8  }
 0x230   : > { %3763 = vset.pattern.permute.xlu0 %v3993_v55  ;;  %3760 = vset.pattern.permute.xlu1 %v3992_v54 }
 0x231   : > { %1606 = vperm.xlu0 %3763, %v4482_v8   ;;  %1399 = vperm.xlu1 %3760, %v4482_v8  }
 0x235   : > { %3765 = vset.pattern.permute.xlu0 %v3995_v57  ;;  %3762 = vset.pattern.permute.xlu1 %v3994_v56 }
 0x236   : > { %1742 = vperm.xlu0 %3765, %v4482_v8   ;;  %1537 = vperm.xlu1 %3762, %v4482_v8  }
 0x23a   : > { %3767 = vset.pattern.permute.xlu0 %v3997_v60  ;;  %3764 = vset.pattern.permute.xlu1 %v3996_v58 }
 0x23b   : > { %1879 = vperm.xlu0 %3767, %v4482_v8   ;;  %1674 = vperm.xlu1 %3764, %v4482_v8  }
 0x23f   : > { %3766 = vset.pattern.permute.xlu1 %v3998_v61 }
 0x240   : > { %1810 = vperm.xlu1 %3766, %v4482_v8  }
 0x244   : > { %3768 = vset.pattern.permute.xlu1 %v6673_v0 }
 0x245   : > { %815 = vperm.xlu1 %3768, %v4526_v14  }
 0x247   : > { %v4532_v18 = vpop.permute.xlu1 %912  ;;  %v4534_v38 = vpop.permute.xlu0 %844 }
 0x248   : > { %v857_v19 = vmul.f32 %v4534_v38, %v4530_v15  ;;  %v926_v21 = vmul.f32 %v4532_v18, %v4539_v20 }
 0x249   : > { %3769 = vset.pattern.permute.xlu1 %v3984_v41 }
 0x24a   : > { %875 = vrot.lane.b32.xlu0 %v857_v19, %s3974_s15  ;;  %848 = vperm.xlu1 %3769, %v4526_v14  }
 0x24c   : > { %v4545_v22 = vpop.permute.xlu1 %1049  ;;  %v4547_v23 = vpop.permute.xlu0 %980 }
 0x24d   : > { %v993_v24 = vmul.f32 %v4547_v23, %v4530_v15  ;;  %v1063_v27 = vmul.f32 %v4545_v22, %v4539_v20 }
 0x24e   : > { %945 = vrot.lane.b32.xlu0 %v926_v21, %s6684_s24  ;;  %3770 = vset.pattern.permute.xlu1 %v3983_v40 }
 0x24f   : > { %916 = vperm.xlu1 %3770, %v4526_v14  }
 0x251   : > { %v4554_v25 = vpop.permute.xlu1 %1187  ;;  %v4556_v26 = vpop.permute.xlu0 %1118 }
 0x252   : > { %1011 = vrot.lane.b32.xlu0 %v993_v24, %s6685_s21  ;;  %v1131_v30 = vmul.f32 %v4556_v26, %v4530_v15  ;;  %v1201_v33 = vmul.f32 %v4554_v25, %v4539_v20 }
 0x253   : > { %3771 = vset.pattern.permute.xlu1 %v3986_v49 }
 0x254   : > { %984 = vperm.xlu1 %3771, %v4526_v14  }
 0x256   : > { %v4563_v28 = vpop.permute.xlu1 %1323  ;;  %v4565_v29 = vpop.permute.xlu0 %1255  ;;  %1082 = vrot.lane.b32.xlu0 %v1063_v27, %s6691_s12 }
 0x257   : > { %v1268_v34 = vmul.f32 %v4565_v29, %v4530_v15  ;;  %v1337_v41 = vmul.f32 %v4563_v28, %v4539_v20 }
 0x258   : > { %3772 = vset.pattern.permute.xlu1 %v3985_v48 }
 0x259   : > { %1053 = vperm.xlu1 %3772, %v4526_v14  }
 0x25a   : > { %1149 = vrot.lane.b32.xlu0 %v1131_v30, %s6665_s14 }
 0x25b   : > { %v4573_v31 = vpop.permute.xlu1 %1460  ;;  %v4575_v32 = vpop.permute.xlu0 %1391 }
 0x25c   : > { %v1404_v44 = vmul.f32 %v4575_v32, %v4530_v15  ;;  %v1474_v48 = vmul.f32 %v4573_v31, %v4539_v20 }
 0x25d   : > { %3773 = vset.pattern.permute.xlu1 %v3988_v50 }
 0x25e   : > { %1220 = vrot.lane.b32.xlu0 %v1201_v33, %s6690_s16  ;;  %1122 = vperm.xlu1 %3773, %v4526_v14  }
 0x260   : > { %v4584_v37 = vpop.permute.xlu1 %1598  ;;  %v4586_v40 = vpop.permute.xlu0 %1529 }
 0x261   : > { %v1542_v50 = vmul.f32 %v4586_v40, %v4530_v15 }
 0x262   : > { %1286 = vrot.lane.b32.xlu0 %v1268_v34, %s6667_s22  ;;  %3774 = vset.pattern.permute.xlu1 %v3987_v35 }
 0x263   : > { %1191 = vperm.xlu1 %3774, %v4526_v14  }
 0x265   : > { %v4593_v42 = vpop.permute.xlu1 %1734  ;;  %v4595_v43 = vpop.permute.xlu0 %1666 }
 0x266   : > { %1356 = vrot.lane.b32.xlu0 %v1337_v41, %s6792_s13  ;;  %v1748_v6 = vmul.f32 %v4593_v42, %v4539_v20 }
 0x267   : > { %3775 = vset.pattern.permute.xlu1 %v3990_v52 }
 0x268   : > { %1259 = vperm.xlu1 %3775, %v4526_v14  }
 0x26a   : > { %v4602_v46 = vpop.permute.xlu1 %1871  ;;  %v4604_v47 = vpop.permute.xlu0 %1802  ;;  %1422 = vrot.lane.b32.xlu0 %v1404_v44, %s6682_s25 }
 0x26b   : > { %v1815_v10 = vmul.f32 %v4604_v47, %v4530_v15  ;;  %v1885_v19 = vmul.f32 %v4602_v46, %v4539_v20 }
 0x26c   : > { %3776 = vset.pattern.permute.xlu1 %v3989_v51  ;;  %v1612_v51 = vmul.f32 %v4584_v37, %v4539_v20 }
 0x26d   : > { %1327 = vperm.xlu1 %3776, %v4526_v14  }
 0x26e   : > { %1493 = vrot.lane.b32.xlu0 %v1474_v48, %s6679_s0 }
 0x26f   : > { %v4612_v49 = vpop.permute.xlu0 %908  ;;  %v4614_v35 = vpop.permute.xlu1 %805 }
 0x271   : > { %3777 = vset.pattern.permute.xlu1 %v3992_v54  ;;  %v1679_v54 = vmul.f32 %v4595_v43, %v4530_v15 }
 0x272   : > { %1560 = vrot.lane.b32.xlu0 %v1542_v50, %s6661_s10  ;;  %1395 = vperm.xlu1 %3777, %v4526_v14   ;;  %s6671_s10 = smov 93  }
 0x274   : > { %v4623_v52 = vpop.permute.xlu0 %1045  ;;  %v4625_v59 = vpop.permute.xlu1 %840 }
 0x276   : > { %1631 = vrot.lane.b32.xlu0 %v1612_v51, %s6793_s20  ;;  %3778 = vset.pattern.permute.xlu1 %v3991_v53 }
 0x277   : > { %1464 = vperm.xlu1 %3778, %v4526_v14  }
 0x279   : > { %v4632_v1 = vpop.permute.xlu0 %1183  ;;  %v4634_v2 = vpop.permute.xlu1 %976 }
 0x27a   : > { %1697 = vrot.lane.b32.xlu0 %v1679_v54, %s6794_s19 }
 0x27b   : > { %3779 = vset.pattern.permute.xlu1 %v3994_v56  ;;  %v773_v56 = vadd.f32 %v4456_v36, %v4516_v39 }
 0x27c   : > { %1533 = vperm.xlu1 %3779, %v4526_v14  }
 0x27d   : > { %v4660_v21 = vmax.f32 %v773_v56, 0.0 }
 0x27e   : > { %1767 = vrot.lane.b32.xlu0 %v1748_v6, %s6663_s23  ;;  %v4642_v53 = vpop.permute.xlu0 %1319  ;;  %v4644_v9 = vpop.permute.xlu1 %1114  ;;  %s6675_s23 = smov 92   ;;  %v994_v6 = vmul.f32 %v4547_v23, %v4539_v20 }
 0x27f   : > { %v855_v36 = vmul.f32 %v4625_v59, %v4660_v21  ;;  %v991_v33 = vmul.f32 %v4634_v2, %v4660_v21  ;;  %v1129_v50 = vmul.f32 %v4644_v9, %v4660_v21 }
 0x280   : > { %3780 = vset.pattern.permute.xlu1 %v3993_v55  ;;  %v775_v55 = vadd.f32 %v4458_v63, %v4516_v39 }
 0x281   : > { %1602 = vperm.xlu1 %3780, %v4526_v14  }
 0x282   : > { %1833 = vrot.lane.b32.xlu0 %v1815_v10, %s6671_s10  ;;  %v4672_v30 = vmax.f32 %v775_v55, 0.0 }
 0x283   : > { %v4653_v11 = vpop.permute.xlu0 %1456  ;;  %v4655_v16 = vpop.permute.xlu1 %1251 }
 0x284   : > { %v1061_v41 = vmul.f32 %v4623_v52, %v4672_v30  ;;  %v1199_v51 = vmul.f32 %v4632_v1, %v4672_v30  ;;  %v1266_v10 = vmul.f32 %v4655_v16, %v4660_v21  ;;  %v1335_v55 = vmul.f32 %v4642_v53, %v4672_v30 }
 0x285   : > { %3781 = vset.pattern.permute.xlu1 %v3996_v58  ;;  %v924_v58 = vmul.f32 %v4612_v49, %v4672_v30 }
 0x286   : > { %1904 = vrot.lane.b32.xlu0 %v1885_v19, %s6675_s23  ;;  %1670 = vperm.xlu1 %3781, %v4526_v14   ;;  %v1062_v19 = vmul.f32 %v4545_v22, %v4530_v15  ;;  %v1200_v22 = vmul.f32 %v4554_v25, %v4530_v15 }
 0x288   : > { %v4668_v24 = vpop.permute.xlu0 %1594  ;;  %v4670_v27 = vpop.permute.xlu1 %1387 }
 0x28a   : > { %3782 = vset.pattern.permute.xlu1 %v3995_v57  ;;  %871 = vrot.lane.b32.xlu0 %v855_v36, %s3974_s15 }
 0x28b   : > { %1738 = vperm.xlu1 %3782, %v4526_v14  }
 0x28d   : > { %v4679_v63 = vpop.permute.xlu0 %1730  ;;  %v4681_v39 = vpop.permute.xlu1 %1525 }
 0x28e   : > { %941 = vrot.lane.b32.xlu0 %v924_v58, %s6684_s24  ;;  %v1132_v58 = vmul.f32 %v4556_v26, %v4539_v20  ;;  %v1269_v26 = vmul.f32 %v4565_v29, %v4539_v20 }
 0x28f   : > { %3783 = vset.pattern.permute.xlu1 %v3998_v61  ;;  %v858_v61 = vmul.f32 %v4534_v38, %v4539_v20 }
 0x290   : > { %1806 = vperm.xlu1 %3783, %v4526_v14  }
 0x292   : > { %v4688_v57 = vpop.permute.xlu0 %1867  ;;  %1007 = vrot.lane.b32.xlu0 %v991_v33, %s6685_s21  ;;  %v4691_v34 = vpop.permute.xlu1 %1662  ;;  %v1402_v33 = vmul.f32 %v4670_v27, %v4660_v21 }
 0x294   : > { %3784 = vset.pattern.permute.xlu1 %v3997_v60  ;;  %v925_v60 = vmul.f32 %v4532_v18, %v4530_v15 }
 0x295   : > { %1875 = vperm.xlu1 %3784, %v4526_v14  }
 0x296   : > { %1078 = vrot.lane.b32.xlu0 %v1061_v41, %s6691_s12 }
 0x297   : > { %v4700_v44 = vpop.permute.xlu0 %920  ;;  %v4702_v48 = vpop.permute.xlu1 %1798 }
 0x299   : > { %877 = vrot.lane.b32.xlu1 %v858_v61, %s3974_s15 }
 0x29a   : > { %1145 = vrot.lane.b32.xlu0 %v1129_v50, %s6665_s14  ;;  %v1472_v50 = vmul.f32 %v4653_v11, %v4672_v30 }
 0x29c   : > { %v4712_v54 = vpop.permute.xlu0 %1057  ;;  %v4714_v38 = vpop.permute.xlu1 %852 }
 0x29d   : > { %943 = vrot.lane.b32.xlu1 %v925_v60, %s6684_s24  ;;  %v1540_v60 = vmul.f32 %v4681_v39, %v4660_v21 }
 0x29e   : > { %1216 = vrot.lane.b32.xlu0 %v1199_v51, %s6690_s16 }
 0x2a1   : > { %v4722_v56 = vpop.permute.xlu0 %1195  ;;  %1013 = vrot.lane.b32.xlu1 %v994_v6, %s6685_s21  ;;  %v4725_v18 = vpop.permute.xlu1 %988  ;;  %v1336_v6 = vmul.f32 %v4563_v28, %v4530_v15 }
 0x2a2   : > { %1282 = vrot.lane.b32.xlu0 %v1266_v10, %s6667_s22  ;;  %v1610_v10 = vmul.f32 %v4668_v24, %v4672_v30 }
 0x2a5   : > { %1080 = vrot.lane.b32.xlu1 %v1062_v19, %s6691_s12 }
 0x2a6   : > { %v4733_v23 = vpop.permute.xlu0 %1331  ;;  %1352 = vrot.lane.b32.xlu0 %v1335_v55, %s6792_s13  ;;  %v4736_v36 = vpop.permute.xlu1 %1126  ;;  %v1405_v55 = vmul.f32 %v4575_v32, %v4539_v20 }
 0x2a9   : > { %1151 = vrot.lane.b32.xlu1 %v1132_v58, %s6665_s14  ;;  %s6795_s14 = smov 107   ;;  %v1677_v58 = vmul.f32 %v4691_v34, %v4660_v21 }
 0x2aa   : > { %1418 = vrot.lane.b32.xlu0 %v1402_v33, %s6682_s25 }
 0x2ab   : > { %v4746_v41 = vpop.permute.xlu0 %1468  ;;  %v4748_v61 = vpop.permute.xlu1 %1263 }
 0x2ad   : > { %1218 = vrot.lane.b32.xlu1 %v1200_v22, %s6690_s16  ;;  %v1473_v22 = vmul.f32 %v4573_v31, %v4530_v15  ;;  %v791_v31 = vadd.f32 %v4472_v5, %v4524_v13 }
 0x2ae   : > { %1489 = vrot.lane.b32.xlu0 %v1472_v50, %s6679_s0  ;;  %v1746_v50 = vmul.f32 %v4679_v63, %v4672_v30 }
 0x2b0   : > { %v4758_v51 = vpop.permute.xlu0 %1606  ;;  %v4760_v25 = vpop.permute.xlu1 %1399 }
 0x2b1   : > { %1288 = vrot.lane.b32.xlu1 %v1269_v26, %s6667_s22  ;;  %s6796_s22 = smov 94   ;;  %v1543_v26 = vmul.f32 %v4586_v40, %v4539_v20  ;;  %v1883_v40 = vmul.f32 %v4688_v57, %v4672_v30 }
 0x2b2   : > { %1556 = vrot.lane.b32.xlu0 %v1540_v60, %s6795_s14 }
 0x2b5   : > { %v4768_v19 = vpop.permute.xlu0 %1742  ;;  %1354 = vrot.lane.b32.xlu1 %v1336_v6, %s6792_s13  ;;  %v4771_v29 = vpop.permute.xlu1 %1537  ;;  %v1813_v6 = vmul.f32 %v4702_v48, %v4660_v21 }
 0x2b6   : > { %1627 = vrot.lane.b32.xlu0 %v1610_v10, %s6793_s20 }
 0x2b9   : > { %1424 = vrot.lane.b32.xlu1 %v1405_v55, %s6682_s25  ;;  %v1611_v55 = vmul.f32 %v4584_v37, %v4530_v15 }
 0x2ba   : > { %v4779_v28 = vpop.permute.xlu0 %1879  ;;  %1693 = vrot.lane.b32.xlu0 %v1677_v58, %s6794_s19  ;;  %v4782_v33 = vpop.permute.xlu1 %1674 }
 0x2bd   : > { %1491 = vrot.lane.b32.xlu1 %v1473_v22, %s6679_s0  ;;  %v4811_v22 = vmax.f32 %v791_v31, 0.0 }
 0x2be   : > { %v4789_v32 = vpop.permute.xlu0 %875  ;;  %1763 = vrot.lane.b32.xlu0 %v1746_v50, %s6796_s22  ;;  %v793_v50 = vadd.f32 %v4476_v7, %v4524_v13  ;;  %v1747_v7 = vmul.f32 %v4593_v42, %v4530_v15 }
 0x2bf   : > { %v4794_v60 = vpop.permute.xlu1 %1810  ;;  %v861_v37 = vmul.f32 %v4714_v38, %v4811_v22 }
 0x2c0   : > { %v4825_v31 = vmax.f32 %v793_v50, 0.0  ;;  %v1816_v50 = vmul.f32 %v4604_v47, %v4539_v20 }
 0x2c1   : > { %1562 = vrot.lane.b32.xlu1 %v1543_v26, %s6795_s14  ;;  %v1680_v26 = vmul.f32 %v4595_v43, %v4539_v20 }
 0x2c2   : > { %v4801_v10 = vpop.permute.xlu0 %945  ;;  %1829 = vrot.lane.b32.xlu0 %v1813_v6, %s6671_s10  ;;  %v930_v13 = vmul.f32 %v4700_v44, %v4825_v31 }
 0x2c4   : > { %v4808_v58 = vpop.permute.xlu1 %815 }
 0x2c5   : > { %1629 = vrot.lane.b32.xlu1 %v1611_v55, %s6793_s20  ;;  %v4007_v55 = vmov 21  }
 0x2c6   : > { %v4815_v5 = vpop.permute.xlu0 %1011  ;;  %1900 = vrot.lane.b32.xlu0 %v1883_v40, %s6675_s23  ;;  %3785 = vset.pattern.permute.xlu1 %v4007_v55 }
 0x2c7   : > { %3786 = vset.pattern.permute.xlu0 %v4007_v55 }
 0x2c9   : > { %1699 = vrot.lane.b32.xlu1 %v1680_v26, %s6794_s19  ;;  %v4823_v6 = vpop.permute.xlu1 %848  ;;  %v997_v26 = vmul.f32 %v4725_v18, %v4811_v22 }
 0x2ca   : > { %v4827_v17 = vpop.permute.xlu0 %1082  ;;  %883 = vrot.lane.b32.xlu0 %v861_v37, %s3974_s15  ;;  %v1884_v37 = vmul.f32 %v4602_v46, %v4530_v15 }
 0x2cd   : > { %1765 = vrot.lane.b32.xlu1 %v1747_v7, %s6796_s22  ;;  %v1067_v7 = vmul.f32 %v4712_v54, %v4825_v31 }
 0x2ce   : > { %v4835_v43 = vpop.permute.xlu0 %1149  ;;  %953 = vrot.lane.b32.xlu0 %v930_v13, %s6684_s24  ;;  %v4838_v40 = vpop.permute.xlu1 %916  ;;  %v856_v13 = vmul.f32 %v4625_v59, %v4672_v30 }
 0x2cf   : > { %6797 = vst [vmem:[#allocation13_spill] sm:$0xff] %v4835_v43 }
 0x2d1   : > { %1835 = vrot.lane.b32.xlu1 %v1816_v50, %s6671_s10  ;;  %v1135_v50 = vmul.f32 %v4736_v36, %v4811_v22  ;;  %s6799_s10 = smov 123  }
 0x2d2   : > { %v4845_v42 = vpop.permute.xlu0 %1220  ;;  %1019 = vrot.lane.b32.xlu0 %v997_v26, %s6685_s21 }
 0x2d3   : > { %v4850_v55 = vpop.permute.xlu1 %984 }
 0x2d5   : > { %1902 = vrot.lane.b32.xlu1 %v1884_v37, %s6675_s23  ;;  %v923_v37 = vmul.f32 %v4612_v49, %v4660_v21  ;;  %s6801_s23 = smov 111  }
 0x2d6   : > { %v4855_v47 = vpop.permute.xlu0 %1286  ;;  %1090 = vrot.lane.b32.xlu0 %v1067_v7, %s6691_s12  ;;  %v1205_v7 = vmul.f32 %v4722_v56, %v4825_v31 }
 0x2d7   : > { %6798 = vst [vmem:[#allocation14_spill] sm:$0xff] %v4855_v47 }
 0x2d8   : > { %v4862_v26 = vpop.permute.xlu1 %1053 }
 0x2d9   : > { %873 = vrot.lane.b32.xlu1 %v856_v13, %s3974_s15  ;;  %v992_v13 = vmul.f32 %v4634_v2, %v4672_v30 }
 0x2da   : > { %v4865_v46 = vpop.permute.xlu0 %1356  ;;  %1157 = vrot.lane.b32.xlu0 %v1135_v50, %s6799_s10  ;;  %v1272_v50 = vmul.f32 %v4748_v61, %v4811_v22 }
 0x2dd   : > { %939 = vrot.lane.b32.xlu1 %v923_v37, %s6684_s24  ;;  %v4873_v59 = vpop.permute.xlu1 %1122  ;;  %v1060_v37 = vmul.f32 %v4623_v52, %v4660_v21 }
 0x2de   : > { %v4875_v0 = vpop.permute.xlu0 %1422  ;;  %1228 = vrot.lane.b32.xlu0 %v1205_v7, %s6690_s16  ;;  %v1341_v7 = vmul.f32 %v4733_v23, %v4825_v31 }
 0x2df   : > { %6800 = vst [vmem:[#allocation15_spill] sm:$0xff] %v4875_v0 }
 0x2e1   : > { %1009 = vrot.lane.b32.xlu1 %v992_v13, %s6685_s21  ;;  %v1130_v13 = vmul.f32 %v4644_v9, %v4672_v30 }
 0x2e2   : > { %v4883_v49 = vpop.permute.xlu0 %1493  ;;  %1294 = vrot.lane.b32.xlu0 %v1272_v50, %s6801_s23  ;;  %v4886_v47 = vpop.permute.xlu1 %1191  ;;  %v1408_v50 = vmul.f32 %v4760_v25, %v4811_v22 }
 0x2e5   : > { %1076 = vrot.lane.b32.xlu1 %v1060_v37, %s6691_s12  ;;  %v1198_v37 = vmul.f32 %v4632_v1, %v4660_v21 }
 0x2e6   : > { %v4893_v2 = vpop.permute.xlu0 %1560  ;;  %1364 = vrot.lane.b32.xlu0 %v1341_v7, %s6792_s13  ;;  %v1478_v7 = vmul.f32 %v4746_v41, %v4825_v31 }
 0x2e7   : > { %6802 = vst [vmem:[#allocation16_spill] sm:$0xff] %v4893_v2  ;;  %v4898_v0 = vpop.permute.xlu1 %1259 }
 0x2e9   : > { %1147 = vrot.lane.b32.xlu1 %v1130_v13, %s6799_s10  ;;  %v1267_v13 = vmul.f32 %v4655_v16, %v4672_v30 }
 0x2ea   : > { %v4903_v52 = vpop.permute.xlu0 %1631  ;;  %1430 = vrot.lane.b32.xlu0 %v1408_v50, %s6682_s25  ;;  %v1546_v50 = vmul.f32 %v4771_v29, %v4811_v22 }
 0x2eb   : > { %6803 = vst [vmem:[#allocation17_spill] sm:$0xff] %v4903_v52 }
 0x2ec   : > { %v4910_v2 = vpop.permute.xlu1 %1327 }
 0x2ed   : > { %1214 = vrot.lane.b32.xlu1 %v1198_v37, %s6690_s16  ;;  %v1334_v37 = vmul.f32 %v4642_v53, %v4660_v21 }
 0x2ee   : > { %v4913_v9 = vpop.permute.xlu0 %1697  ;;  %1501 = vrot.lane.b32.xlu0 %v1478_v7, %s6679_s0  ;;  %v1616_v7 = vmul.f32 %v4758_v51, %v4825_v31 }
 0x2ef   : > { %6804 = vst [vmem:[#allocation18_spill] sm:$0xff] %v4913_v9 }
 0x2f1   : > { %1284 = vrot.lane.b32.xlu1 %v1267_v13, %s6801_s23  ;;  %v4921_v1 = vpop.permute.xlu1 %1395  ;;  %v1403_v13 = vmul.f32 %v4670_v27, %v4672_v30  ;;  %v785_v27 = vadd.f32 %v4464_v3, %v4522_v12 }
 0x2f2   : > { %v4923_v43 = vpop.permute.xlu0 %1767  ;;  %1568 = vrot.lane.b32.xlu0 %v1546_v50, %s6795_s14  ;;  %v1683_v50 = vmul.f32 %v4782_v33, %v4811_v22 }
 0x2f3   : > { %6805 = vst [vmem:[#allocation19_spill] sm:$0xff] %v4923_v43 }
 0x2f5   : > { %1350 = vrot.lane.b32.xlu1 %v1334_v37, %s6792_s13  ;;  %v1471_v37 = vmul.f32 %v4653_v11, %v4660_v21  ;;  %v1819_v11 = vmul.f32 %v4794_v60, %v4811_v22 }
 0x2f6   : > { %v4931_v16 = vpop.permute.xlu0 %1833  ;;  %1639 = vrot.lane.b32.xlu0 %v1616_v7, %s6793_s20  ;;  %v4934_v9 = vpop.permute.xlu1 %1464  ;;  %v1752_v7 = vmul.f32 %v4768_v19, %v4825_v31 }
 0x2f7   : > { %6806 = vst [vmem:[#allocation20_spill] sm:$0xff] %v4931_v16 }
 0x2f9   : > { %1420 = vrot.lane.b32.xlu1 %v1403_v13, %s6682_s25  ;;  %v1541_v13 = vmul.f32 %v4681_v39, %v4672_v30  ;;  %s6811_s25 = smov 92  }
 0x2fa   : > { %v4941_v53 = vpop.permute.xlu0 %1904  ;;  %1705 = vrot.lane.b32.xlu0 %v1683_v50, %s6794_s19 }
 0x2fb   : > { %6807 = vst [vmem:[#allocation21_spill] sm:$0xff] %v4941_v53  ;;  %v4946_v16 = vpop.permute.xlu1 %1533  ;;  %v4963_v53 = vmax.f32 %v785_v27, 0.0 }
 0x2fd   : > { %1487 = vrot.lane.b32.xlu1 %v1471_v37, %s6679_s0  ;;  %v787_v37 = vadd.f32 %v4468_v4, %v4522_v12  ;;  %s6808_s0 = smov 93   ;;  %v859_v39 = vmul.f32 %v4823_v6, %v4963_v53  ;;  %v1678_v4 = vmul.f32 %v4691_v34, %v4672_v30 }
 0x2fe   : > { %v4953_v43 = vpop.permute.xlu0 %871  ;;  %1775 = vrot.lane.b32.xlu0 %v1752_v7, %s6796_s22  ;;  %v1609_v7 = vmul.f32 %v4668_v24, %v4660_v21 }
 0x300   : > { %v4960_v50 = vpop.permute.xlu1 %1602 }
 0x301   : > { %1558 = vrot.lane.b32.xlu1 %v1541_v13, %s6795_s14  ;;  %v4977_v13 = vmax.f32 %v787_v37, 0.0  ;;  %v995_v37 = vmul.f32 %v4850_v55, %v4963_v53 }
 0x302   : > { %v4967_v3 = vpop.permute.xlu0 %941  ;;  %1841 = vrot.lane.b32.xlu0 %v1819_v11, %s6808_s0  ;;  %v1745_v11 = vmul.f32 %v4679_v63, %v4660_v21  ;;  %v1882_v63 = vmul.f32 %v4688_v57, %v4660_v21 }
 0x303   : > { %v928_v12 = vmul.f32 %v4838_v40, %v4977_v13 }
 0x305   : > { %1625 = vrot.lane.b32.xlu1 %v1609_v7, %s6793_s20  ;;  %v4975_v52 = vpop.permute.xlu1 %1670  ;;  %v1814_v7 = vmul.f32 %v4702_v48, %v4672_v30  ;;  %v862_v48 = vmul.f32 %v4714_v38, %v4825_v31  ;;  %v998_v38 = vmul.f32 %v4725_v18, %v4825_v31 }
 0x306   : > { %879 = vrot.lane.b32.xlu0 %v859_v39, %s3974_s15  ;;  %v4984_v27 = vpop.permute.xlu0 %1007 }
 0x307   : > { %6809 = vst [vmem:[#allocation22_spill] sm:$0xff] %v4984_v27 }
 0x309   : > { %1695 = vrot.lane.b32.xlu1 %v1678_v4, %s6794_s19  ;;  %v1065_v4 = vmul.f32 %v4862_v26, %v4977_v13 }
 0x30a   : > { %949 = vrot.lane.b32.xlu0 %v928_v12, %s6684_s24  ;;  %v4988_v24 = vpop.permute.xlu1 %1738  ;;  %v4995_v34 = vpop.permute.xlu0 %1078  ;;  %v1133_v12 = vmul.f32 %v4873_v59, %v4963_v53 }
 0x30d   : > { %1761 = vrot.lane.b32.xlu1 %v1745_v11, %s6796_s22 }
 0x30e   : > { %1015 = vrot.lane.b32.xlu0 %v995_v37, %s6685_s21  ;;  %v5010_v11 = vpop.permute.xlu0 %1145 }
 0x30f   : > { %v5000_v39 = vpop.permute.xlu1 %1806  ;;  %6810 = vst [vmem:[#allocation23_spill] sm:$0xff] %v5010_v11  ;;  %v929_v11 = vmul.f32 %v4700_v44, %v4811_v22  ;;  %v1066_v44 = vmul.f32 %v4712_v54, %v4811_v22  ;;  %v1204_v54 = vmul.f32 %v4722_v56, %v4811_v22 }
 0x311   : > { %1831 = vrot.lane.b32.xlu1 %v1814_v7, %s6808_s0  ;;  %v1203_v7 = vmul.f32 %v4886_v47, %v4977_v13 }
 0x312   : > { %1086 = vrot.lane.b32.xlu0 %v1065_v4, %s6691_s12  ;;  %v5023_v57 = vpop.permute.xlu0 %1216 }
 0x314   : > { %v5012_v37 = vpop.permute.xlu1 %1875 }
 0x315   : > { %1898 = vrot.lane.b32.xlu1 %v1882_v63, %s6811_s25  ;;  %v1270_v63 = vmul.f32 %v4898_v0, %v4963_v53 }
 0x316   : > { %1153 = vrot.lane.b32.xlu0 %v1133_v12, %s6799_s10  ;;  %v5038_v27 = vpop.permute.xlu0 %1282 }
 0x317   : > { %6812 = vst [vmem:[#allocation24_spill] sm:$0xff] %v5038_v27  ;;  %v1136_v27 = vmul.f32 %v4736_v36, %v4825_v31  ;;  %v1273_v36 = vmul.f32 %v4748_v61, %v4825_v31  ;;  %v1409_v61 = vmul.f32 %v4760_v25, %v4825_v31 }
 0x318   : > { %v5020_v4 = vpop.permute.xlu1 %877 }
 0x319   : > { %885 = vrot.lane.b32.xlu1 %v862_v48, %s3974_s15  ;;  %v1339_v48 = vmul.f32 %v4910_v2, %v4977_v13 }
 0x31a   : > { %1224 = vrot.lane.b32.xlu0 %v1203_v7, %s6690_s16  ;;  %v5051_v18 = vpop.permute.xlu0 %1352 }
 0x31b   : > { %6814 = vst [vmem:[#allocation26_spill] sm:$0xff] %v5051_v18 }
 0x31c   : > { %v5030_v12 = vpop.permute.xlu1 %943 }
 0x31d   : > { %951 = vrot.lane.b32.xlu1 %v929_v11, %s6684_s24  ;;  %v1406_v11 = vmul.f32 %v4921_v1, %v4963_v53  ;;  %s6815_s24 = smov 109  }
 0x31e   : > { %1290 = vrot.lane.b32.xlu0 %v1270_v63, %s6801_s23  ;;  %v5066_v18 = vpop.permute.xlu0 %1418 }
 0x31f   : > { %6817 = vst [vmem:[#allocation27_spill] sm:$0xff] %v5066_v18  ;;  %v1340_v18 = vmul.f32 %v4733_v23, %v4811_v22  ;;  %v1477_v23 = vmul.f32 %v4746_v41, %v4811_v22  ;;  %v1615_v41 = vmul.f32 %v4758_v51, %v4811_v22  ;;  %v1751_v51 = vmul.f32 %v4768_v19, %v4811_v22 }
 0x320   : > { %v5040_v7 = vpop.permute.xlu1 %1013 }
 0x321   : > { %1021 = vrot.lane.b32.xlu1 %v998_v38, %s6685_s21  ;;  %v1476_v38 = vmul.f32 %v4934_v9, %v4977_v13  ;;  %s6816_s21 = smov 108  }
 0x322   : > { %1360 = vrot.lane.b32.xlu0 %v1339_v48, %s6792_s13  ;;  %v5079_v56 = vpop.permute.xlu0 %1489 }
 0x323   : > { %6819 = vst [vmem:[#allocation29_spill] sm:$0xff] %v5079_v56 }
 0x324   : > { %v5048_v63 = vpop.permute.xlu1 %1080 }
 0x325   : > { %6813 = vst [vmem:[#allocation25_spill] sm:$0xff] %v5048_v63  ;;  %1088 = vrot.lane.b32.xlu1 %v1066_v44, %s6691_s12  ;;  %v1544_v44 = vmul.f32 %v4946_v16, %v4963_v53  ;;  %s6835_s12 = smov 125  }
 0x326   : > { %1426 = vrot.lane.b32.xlu0 %v1406_v11, %s6815_s24  ;;  %v5094_v56 = vpop.permute.xlu0 %1556 }
 0x327   : > { %6821 = vst [vmem:[#allocation31_spill] sm:$0xff] %v5094_v56  ;;  %v1547_v56 = vmul.f32 %v4771_v29, %v4825_v31  ;;  %v1684_v29 = vmul.f32 %v4782_v33, %v4825_v31 }
 0x328   : > { %v5058_v48 = vpop.permute.xlu1 %1151 }
 0x329   : > { %1159 = vrot.lane.b32.xlu1 %v1136_v27, %s6799_s10  ;;  %v1614_v27 = vmul.f32 %v4960_v50, %v4977_v13 }
 0x32a   : > { %1497 = vrot.lane.b32.xlu0 %v1476_v38, %s6816_s21  ;;  %v5107_v25 = vpop.permute.xlu0 %1627 }
 0x32b   : > { %6823 = vst [vmem:[#allocation33_spill] sm:$0xff] %v5107_v25 }
 0x32c   : > { %v5068_v11 = vpop.permute.xlu1 %1218 }
 0x32d   : > { %6818 = vst [vmem:[#allocation28_spill] sm:$0xff] %v5068_v11  ;;  %1226 = vrot.lane.b32.xlu1 %v1204_v54, %s6690_s16  ;;  %v1681_v54 = vmul.f32 %v4975_v52, %v4963_v53  ;;  %s6833_s16 = smov 126  }
 0x32e   : > { %1564 = vrot.lane.b32.xlu0 %v1544_v44, %s6795_s14  ;;  %v5122_v25 = vpop.permute.xlu0 %1693 }
 0x32f   : > { %6824 = vst [vmem:[#allocation34_spill] sm:$0xff] %v5122_v25 }
 0x330   : > { %v5076_v38 = vpop.permute.xlu1 %1288 }
 0x331   : > { %1296 = vrot.lane.b32.xlu1 %v1273_v36, %s6801_s23  ;;  %v1750_v36 = vmul.f32 %v4988_v24, %v4977_v13 }
 0x332   : > { %1635 = vrot.lane.b32.xlu0 %v1614_v27, %s6793_s20 }
 0x334   : > { %v5086_v44 = vpop.permute.xlu1 %1354 }
 0x335   : > { %6820 = vst [vmem:[#allocation30_spill] sm:$0xff] %v5086_v44  ;;  %1362 = vrot.lane.b32.xlu1 %v1340_v18, %s6792_s13  ;;  %v1817_v18 = vmul.f32 %v5000_v39, %v4963_v53 }
 0x336   : > { %1701 = vrot.lane.b32.xlu0 %v1681_v54, %s6794_s19 }
 0x338   : > { %v5096_v27 = vpop.permute.xlu1 %1424 }
 0x339   : > { %1432 = vrot.lane.b32.xlu1 %v1409_v61, %s6815_s24  ;;  %v1889_v61 = vmul.f32 %v4779_v28, %v4825_v31 }
 0x33a   : > { %1771 = vrot.lane.b32.xlu0 %v1750_v36, %s6796_s22 }
 0x33c   : > { %v5104_v54 = vpop.permute.xlu1 %1491 }
 0x33d   : > { %6822 = vst [vmem:[#allocation32_spill] sm:$0xff] %v5104_v54  ;;  %1499 = vrot.lane.b32.xlu1 %v1477_v23, %s6816_s21  ;;  %v1887_v23 = vmul.f32 %v5012_v37, %v4977_v13 }
 0x33e   : > { %1837 = vrot.lane.b32.xlu0 %v1817_v18, %s6808_s0 }
 0x340   : > { %v5114_v36 = vpop.permute.xlu1 %1562 }
 0x341   : > { %1570 = vrot.lane.b32.xlu1 %v1547_v56, %s6795_s14 }
 0x342   : > { %1912 = vrot.lane.b32.xlu0 %v1889_v61, %s6811_s25  ;;  %v5133_v61 = vpop.permute.xlu0 %1763 }
 0x343   : > { %6827 = vst [vmem:[#allocation37_spill] sm:$0xff] %v5133_v61 }
 0x344   : > { %v5124_v18 = vpop.permute.xlu1 %1629 }
 0x345   : > { %6825 = vst [vmem:[#allocation35_spill] sm:$0xff] %v5124_v18  ;;  %1637 = vrot.lane.b32.xlu1 %v1615_v41, %s6793_s20  ;;  %v1820_v41 = vmul.f32 %v4794_v60, %v4825_v31  ;;  %v996_v60 = vmul.f32 %v4850_v55, %v4977_v13  ;;  %v1202_v55 = vmul.f32 %v4886_v47, %v4963_v53 }
 0x346   : > { %1908 = vrot.lane.b32.xlu0 %v1887_v23, %s6811_s25  ;;  %v5143_v23 = vpop.permute.xlu0 %1829  ;;  %v1407_v47 = vmul.f32 %v4921_v1, %v4977_v13  ;;  %v1613_v1 = vmul.f32 %v4960_v50, %v4963_v53  ;;  %v1818_v50 = vmul.f32 %v5000_v39, %v4977_v13 }
 0x347   : > { %6829 = vst [vmem:[#allocation39_spill] sm:$0xff] %v5143_v23 }
 0x348   : > { %v5130_v56 = vpop.permute.xlu1 %1699 }
 0x349   : > { %6826 = vst [vmem:[#allocation36_spill] sm:$0xff] %v5130_v56  ;;  %1707 = vrot.lane.b32.xlu1 %v1684_v29, %s6794_s19  ;;  %v860_v29 = vmul.f32 %v4823_v6, %v4977_v13  ;;  %v1064_v6 = vmul.f32 %v4862_v26, %v4963_v53  ;;  %v1271_v26 = vmul.f32 %v4898_v0, %v4977_v13 }
 0x34a   : > { %1940 = vperm.xlu0 %3786, %v4397_v45   ;;  %v5153_v19 = vpop.permute.xlu0 %1900  ;;  %v1475_v0 = vmul.f32 %v4934_v9, %v4963_v53  ;;  %v1682_v9 = vmul.f32 %v4975_v52, %v4977_v13  ;;  %v1886_v52 = vmul.f32 %v5012_v37, %v4963_v53 }
 0x34b   : > { %6832 = vst [vmem:[#allocation42_spill] sm:$0xff] %v5153_v19 }
 0x34c   : > { %v5138_v25 = vpop.permute.xlu1 %1765 }
 0x34d   : > { %6828 = vst [vmem:[#allocation38_spill] sm:$0xff] %v5138_v25  ;;  %1773 = vrot.lane.b32.xlu1 %v1751_v51, %s6796_s22  ;;  %v927_v51 = vmul.f32 %v4838_v40, %v4963_v53 }
 0x350   : > { %v5145_v33 = vpop.permute.xlu1 %1835 }
 0x351   : > { %6830 = vst [vmem:[#allocation40_spill] sm:$0xff] %v5145_v33  ;;  %1843 = vrot.lane.b32.xlu1 %v1820_v41, %s6808_s0  ;;  %v5162_v41 = vpop.permute.xlu0 %883 }
 0x354   : > { %v5150_v61 = vpop.permute.xlu1 %1902 }
 0x355   : > { %6831 = vst [vmem:[#allocation41_spill] sm:$0xff] %v5150_v61  ;;  %881 = vrot.lane.b32.xlu1 %v860_v29, %s3974_s15  ;;  %s6836_s15 = smov 124   ;;  %v5172_v40 = vpop.permute.xlu0 %953 }
 0x358   : > { %v5157_v25 = vpop.permute.xlu1 %873 }
 0x359   : > { %947 = vrot.lane.b32.xlu1 %v927_v51, %s6833_s16  ;;  %v1134_v51 = vmul.f32 %v4873_v59, %v4977_v13  ;;  %s6839_s16 = smov 112  }
 0x35c   : > { %v5164_v23 = vpop.permute.xlu1 %939 }
 0x35d   : > { %6834 = vst [vmem:[#allocation43_spill] sm:$0xff] %v5164_v23  ;;  %1017 = vrot.lane.b32.xlu1 %v996_v60, %s6835_s12  ;;  %v5181_v60 = vpop.permute.xlu0 %1019  ;;  %s4019_s12 = smov 76  }
 0x35e   : > { %6838 = vst [vmem:[#allocation45_spill] sm:$0xff] %v5181_v60 }
 0x360   : > { %v5169_v29 = vpop.permute.xlu1 %1009 }
 0x361   : > { %1084 = vrot.lane.b32.xlu1 %v1064_v6, %s6836_s15  ;;  %v5191_v59 = vpop.permute.xlu0 %1090  ;;  %s4038_s15 = smov 59  }
 0x364   : > { %v5176_v19 = vpop.permute.xlu1 %1076 }
 0x365   : > { %6837 = vst [vmem:[#allocation44_spill] sm:$0xff] %v5176_v19  ;;  %1155 = vrot.lane.b32.xlu1 %v1134_v51, %s6799_s10  ;;  %v1338_v51 = vmul.f32 %v4910_v2, %v4963_v53  ;;  %s4035_s10 = smov 62  }
 0x368   : > { %v5183_v61 = vpop.permute.xlu1 %1147 }
 0x369   : > { %1222 = vrot.lane.b32.xlu1 %v1202_v55, %s6839_s16  ;;  %v5200_v55 = vpop.permute.xlu0 %1157  ;;  %s4039_s16 = smov 48  }
 0x36a   : > { %6842 = vst [vmem:[#allocation48_spill] sm:$0xff] %v5200_v55 }
 0x36c   : > { %v5188_v6 = vpop.permute.xlu1 %1214 }
 0x36d   : > { %6840 = vst [vmem:[#allocation46_spill] sm:$0xff] %v5188_v6  ;;  %1292 = vrot.lane.b32.xlu1 %v1271_v26, %s6801_s23  ;;  %v5210_v2 = vpop.permute.xlu0 %1228  ;;  %s4015_s23 = smov 78  }
 0x370   : > { %v5195_v18 = vpop.permute.xlu1 %1284 }
 0x371   : > { %6841 = vst [vmem:[#allocation47_spill] sm:$0xff] %v5195_v18  ;;  %1358 = vrot.lane.b32.xlu1 %v1338_v51, %s6792_s13  ;;  %v1545_v51 = vmul.f32 %v4946_v16, %v4977_v13  ;;  %s4013_s13 = smov 79  }
 0x374   : > { %v5202_v33 = vpop.permute.xlu1 %1350 }
 0x375   : > { %6843 = vst [vmem:[#allocation49_spill] sm:$0xff] %v5202_v33  ;;  %1428 = vrot.lane.b32.xlu1 %v1407_v47, %s6815_s24  ;;  %v5219_v47 = vpop.permute.xlu0 %1294  ;;  %s4009_s24 = smov 91  }
 0x376   : > { %6846 = vst [vmem:[#allocation52_spill] sm:$0xff] %v5219_v47 }
 0x378   : > { %v5207_v26 = vpop.permute.xlu1 %1420 }
 0x379   : > { %6844 = vst [vmem:[#allocation50_spill] sm:$0xff] %v5207_v26  ;;  %1495 = vrot.lane.b32.xlu1 %v1475_v0, %s6816_s21  ;;  %v5229_v16 = vpop.permute.xlu0 %1364  ;;  %s4017_s21 = smov 77  }
 0x37a   : > { %6849 = vst [vmem:[#allocation55_spill] sm:$0xff] %v5229_v16 }
 0x37c   : > { %v5214_v54 = vpop.permute.xlu1 %1487 }
 0x37d   : > { %6845 = vst [vmem:[#allocation51_spill] sm:$0xff] %v5214_v54  ;;  %1566 = vrot.lane.b32.xlu1 %v1545_v51, %s6795_s14  ;;  %v1749_v51 = vmul.f32 %v4988_v24, %v4963_v53  ;;  %s4021_s14 = smov 75  }
 0x380   : > { %v5221_v55 = vpop.permute.xlu1 %1558 }
 0x381   : > { %6847 = vst [vmem:[#allocation53_spill] sm:$0xff] %v5221_v55  ;;  %1633 = vrot.lane.b32.xlu1 %v1613_v1, %s6793_s20  ;;  %v5238_v1 = vpop.permute.xlu0 %1430  ;;  %s4036_s20 = smov 61  }
 0x382   : > { %6851 = vst [vmem:[#allocation57_spill] sm:$0xff] %v5238_v1 }
 0x384   : > { %v5226_v0 = vpop.permute.xlu1 %1625 }
 0x385   : > { %6848 = vst [vmem:[#allocation54_spill] sm:$0xff] %v5226_v0  ;;  %1703 = vrot.lane.b32.xlu1 %v1682_v9, %s6794_s19  ;;  %v5248_v24 = vpop.permute.xlu0 %1501  ;;  %s4037_s19 = smov 60  }
 0x386   : > { %6854 = vst [vmem:[#allocation60_spill] sm:$0xff] %v5248_v24 }
 0x388   : > { %v5233_v54 = vpop.permute.xlu1 %1695 }
 0x389   : > { %6850 = vst [vmem:[#allocation56_spill] sm:$0xff] %v5233_v54  ;;  %1769 = vrot.lane.b32.xlu1 %v1749_v51, %s6796_s22  ;;  %v1888_v51 = vmul.f32 %v4779_v28, %v4811_v22  ;;  %v5255_v39 = vpop.permute.xlu0 %1568  ;;  %s4011_s22 = smov 80  }
 0x38a   : > { %6856 = vst [vmem:[#allocation62_spill] sm:$0xff] %v5255_v39  ;;  %v4008_v39 = vmov 24  }
 0x38b   : > { %3787 = vset.pattern.permute.xlu0 %v4008_v39 }
 0x38c   : > { %v5240_v47 = vpop.permute.xlu1 %1761 }
 0x38d   : > { %6852 = vst [vmem:[#allocation58_spill] sm:$0xff] %v5240_v47  ;;  %1839 = vrot.lane.b32.xlu1 %v1818_v50, %s6808_s0  ;;  %v5263_v50 = vpop.permute.xlu0 %1639  ;;  %s4031_s0 = smov 63  }
 0x38e   : > { %6858 = vst [vmem:[#allocation64_spill] sm:$0xff] %v5263_v50 }
 0x390   : > { %v5245_v9 = vpop.permute.xlu1 %1831 }
 0x391   : > { %6853 = vst [vmem:[#allocation59_spill] sm:$0xff] %v5245_v9  ;;  %1906 = vrot.lane.b32.xlu1 %v1886_v52, %s6811_s25  ;;  %v5268_v28 = vpop.permute.xlu0 %1705 }
 0x392   : > { %6859 = vst [vmem:[#allocation65_spill] sm:$0xff] %v5268_v28 }
 0x394   : > { %v5252_v0 = vpop.permute.xlu1 %1898 }
 0x395   : > { %6855 = vst [vmem:[#allocation61_spill] sm:$0xff] %v5252_v0  ;;  %1910 = vrot.lane.b32.xlu1 %v1888_v51, %s6811_s25  ;;  %v5274_v9 = vpop.permute.xlu0 %1775  ;;  %s4030_s25 = smov 64  }
 0x396   : > { %6861 = vst [vmem:[#allocation67_spill] sm:$0xff] %v5274_v9 }
 0x398   : > { %v5257_v1 = vpop.permute.xlu1 %885 }
 0x399   : > { %1936 = vperm.xlu1 %3785, %v4434_v62   ;;  %v5278_v54 = vpop.permute.xlu0 %1841 }
 0x39a   : > { %6863 = vst [vmem:[#allocation69_spill] sm:$0xff] %v5278_v54 }
 0x39c   : > { %v5260_v37 = vpop.permute.xlu1 %951 }
 0x39d   : > { %6857 = vst [vmem:[#allocation63_spill] sm:$0xff] %v5260_v37  ;;  %1944 = vperm.xlu1 %3785, %v4526_v14   ;;  %v5284_v33 = vpop.permute.xlu0 %879 }
 0x39e   : > { %6865 = vst [vmem:[#allocation71_spill] sm:$0xff] %v5284_v33 }
 0x3a0   : > { %v5265_v52 = vpop.permute.xlu1 %1021 }
 0x3a1   : > { %1948 = vperm.xlu1 %3785, %v4482_v8  }
 0x3a4   : > { %v5270_v0 = vpop.permute.xlu1 %1088 }
 0x3a5   : > { %6860 = vst [vmem:[#allocation66_spill] sm:$0xff] %v5270_v0  ;;  %3788 = vset.pattern.permute.xlu1 %v4008_v39  ;;  %v5288_v0 = vpop.permute.xlu0 %949 }
 0x3a8   : > { %v5272_v51 = vpop.permute.xlu1 %1159 }
 0x3a9   : > { %v5294_v39 = vpop.permute.xlu0 %1015 }
 0x3aa   : > { %6869 = vst [vmem:[#allocation75_spill] sm:$0xff] %v5294_v39 }
 0x3ac   : > { %v5276_v47 = vpop.permute.xlu1 %1226 }
 0x3ad   : > { %6862 = vst [vmem:[#allocation68_spill] sm:$0xff] %v5276_v47  ;;  %v5298_v47 = vpop.permute.xlu0 %1086 }
 0x3ae   : > { %6871 = vst [vmem:[#allocation77_spill] sm:$0xff] %v5298_v47 }
 0x3b0   : > { %v5280_v50 = vpop.permute.xlu1 %1296 }
 0x3b4   : > { %v5282_v55 = vpop.permute.xlu1 %1362 }
 0x3b5   : > { %6864 = vst [vmem:[#allocation70_spill] sm:$0xff] %v5282_v55  ;;  %v5304_v55 = vpop.permute.xlu0 %1153 }
 0x3b6   : > { %6874 = vst [vmem:[#allocation80_spill] sm:$0xff] %v5304_v55 }
 0x3b8   : > { %v5286_v28 = vpop.permute.xlu1 %1432 }
 0x3b9   : > { %6866 = vst [vmem:[#allocation72_spill] sm:$0xff] %v5286_v28  ;;  %v5308_v56 = vpop.permute.xlu0 %1224 }
 0x3ba   : > { %6876 = vst [vmem:[#allocation82_spill] sm:$0xff] %v5308_v56 }
 0x3bc   : > { %v5290_v44 = vpop.permute.xlu1 %1499 }
 0x3bd   : > { %6867 = vst [vmem:[#allocation73_spill] sm:$0xff] %v5290_v44 }
 0x3c0   : > { %v5292_v6 = vpop.permute.xlu1 %1570 }
 0x3c1   : > { %6868 = vst [vmem:[#allocation74_spill] sm:$0xff] %v5292_v6  ;;  %v5314_v6 = vpop.permute.xlu0 %1290 }
 0x3c2   : > { %6878 = vst [vmem:[#allocation84_spill] sm:$0xff] %v5314_v6 }
 0x3c4   : > { %v5296_v9 = vpop.permute.xlu1 %1637 }
 0x3c5   : > { %6870 = vst [vmem:[#allocation76_spill] sm:$0xff] %v5296_v9  ;;  %v5318_v9 = vpop.permute.xlu0 %1360 }
 0x3c6   : > { %6880 = vst [vmem:[#allocation86_spill] sm:$0xff] %v5318_v9 }
 0x3c8   : > { %v5300_v54 = vpop.permute.xlu1 %1707 }
 0x3c9   : > { %6872 = vst [vmem:[#allocation78_spill] sm:$0xff] %v5300_v54 }
 0x3cc   : > { %v5302_v11 = vpop.permute.xlu1 %1773 }
 0x3cd   : > { %6873 = vst [vmem:[#allocation79_spill] sm:$0xff] %v5302_v11  ;;  %v5324_v11 = vpop.permute.xlu0 %1426 }
 0x3ce   : > { %6883 = vst [vmem:[#allocation89_spill] sm:$0xff] %v5324_v11 }
 0x3d0   : > { %v5306_v33 = vpop.permute.xlu1 %1843 }
 0x3d1   : > { %6875 = vst [vmem:[#allocation81_spill] sm:$0xff] %v5306_v33  ;;  %v5328_v33 = vpop.permute.xlu0 %1497 }
 0x3d2   : > { %6885 = vst [vmem:[#allocation91_spill] sm:$0xff] %v5328_v33 }
 0x3d4   : > { %v5310_v24 = vpop.permute.xlu1 %881 }
 0x3d8   : > { %v5312_v44 = vpop.permute.xlu1 %947 }
 0x3d9   : > { %6877 = vst [vmem:[#allocation83_spill] sm:$0xff] %v5312_v44  ;;  %v5334_v44 = vpop.permute.xlu0 %1564 }
 0x3da   : > { %6888 = vst [vmem:[#allocation94_spill] sm:$0xff] %v5334_v44 }
 0x3dc   : > { %v5316_v39 = vpop.permute.xlu1 %1017 }
 0x3dd   : > { %6879 = vst [vmem:[#allocation85_spill] sm:$0xff] %v5316_v39  ;;  %v5338_v47 = vpop.permute.xlu0 %1635  ;;  %v6967_v39 = vmov 45  }
 0x3de   : > { %6890 = vst [vmem:[#allocation96_spill] sm:$0xff] %v5338_v47 }
 0x3e0   : > { %v5320_v60 = vpop.permute.xlu1 %1084 }
 0x3e1   : > { %6881 = vst [vmem:[#allocation87_spill] sm:$0xff] %v5320_v60 }
 0x3e4   : > { %v5322_v54 = vpop.permute.xlu1 %1155 }
 0x3e5   : > { %6882 = vst [vmem:[#allocation88_spill] sm:$0xff] %v5322_v54  ;;  %v5344_v54 = vpop.permute.xlu0 %1701 }
 0x3e6   : > { %6893 = vst [vmem:[#allocation99_spill] sm:$0xff] %v5344_v54 }
 0x3e8   : > { %v5326_v55 = vpop.permute.xlu1 %1222 }
 0x3e9   : > { %6884 = vst [vmem:[#allocation90_spill] sm:$0xff] %v5326_v55  ;;  %v5348_v55 = vpop.permute.xlu0 %1771 }
 0x3ea   : > { %6895 = vst [vmem:[#allocation101_spill] sm:$0xff] %v5348_v55 }
 0x3ec   : > { %v5330_v56 = vpop.permute.xlu1 %1292 }
 0x3ed   : > { %6886 = vst [vmem:[#allocation92_spill] sm:$0xff] %v5330_v56 }
 0x3f0   : > { %v5332_v26 = vpop.permute.xlu1 %1358 }
 0x3f1   : > { %6887 = vst [vmem:[#allocation93_spill] sm:$0xff] %v5332_v26  ;;  %v5354_v26 = vpop.permute.xlu0 %1837 }
 0x3f2   : > { %6898 = vst [vmem:[#allocation104_spill] sm:$0xff] %v5354_v26 }
 0x3f4   : > { %v5336_v6 = vpop.permute.xlu1 %1428 }
 0x3f5   : > { %6889 = vst [vmem:[#allocation95_spill] sm:$0xff] %v5336_v6  ;;  %v5358_v6 = vpop.permute.xlu0 %1912 }
 0x3f6   : > { %6900 = vst [vmem:[#allocation106_spill] sm:$0xff] %v5358_v6 }
 0x3f8   : > { %v5340_v9 = vpop.permute.xlu1 %1495 }
 0x3f9   : > { %6891 = vst [vmem:[#allocation97_spill] sm:$0xff] %v5340_v9 }
 0x3fc   : > { %v5342_v60 = vpop.permute.xlu1 %1566 }
 0x3fd   : > { %6892 = vst [vmem:[#allocation98_spill] sm:$0xff] %v5342_v60  ;;  %v5364_v60 = vpop.permute.xlu0 %1908 }
 0x3fe   : > { %6903 = vst [vmem:[#allocation109_spill] sm:$0xff] %v5364_v60 }
 0x400   : > { %v5346_v11 = vpop.permute.xlu1 %1633 }
 0x401   : > { %6894 = vst [vmem:[#allocation100_spill] sm:$0xff] %v5346_v11 }
 0x404   : > { %v5350_v33 = vpop.permute.xlu1 %1703 }
 0x405   : > { %6896 = vst [vmem:[#allocation102_spill] sm:$0xff] %v5350_v33  ;;  %v1941_v33 = vpop.permute.xlu0 %1940 }
 0x408   : > { %v5352_v56 = vpop.permute.xlu1 %1769 }
 0x409   : > { %6897 = vst [vmem:[#allocation103_spill] sm:$0xff] %v5352_v56  ;;  %v1953_v56 = vmul.f32 %v1941_v33, %v4530_v15 }
 0x40c   : > { %v5356_v44 = vpop.permute.xlu1 %1839 }
 0x40d   : > { %6899 = vst [vmem:[#allocation105_spill] sm:$0xff] %v5356_v44  ;;  %v1954_v44 = vmul.f32 %v1941_v33, %v4539_v20 }
 0x410   : > { %v5360_v47 = vpop.permute.xlu1 %1906 }
 0x411   : > { %6901 = vst [vmem:[#allocation107_spill] sm:$0xff] %v5360_v47 }
 0x414   : > { %v5362_v9 = vpop.permute.xlu1 %1910 }
 0x415   : > { %6902 = vst [vmem:[#allocation108_spill] sm:$0xff] %v5362_v9 }
 0x418   : > { %v1937_v54 = vpop.permute.xlu1 %1936 }
 0x419   : > { %v1951_v11 = vmul.f32 %v1937_v54, %v4660_v21  ;;  %v1952_v55 = vmul.f32 %v1937_v54, %v4672_v30 }
 0x41b   : > { %1969 = vrot.lane.b32.xlu1 %v1952_v55, %s4009_s24  ;;  %1967 = vrot.lane.b32.xlu0 %v1951_v11, %s4009_s24  ;;  %v4010_v11 = vmov 25  }
 0x41c   : > { %v1945_v26 = vpop.permute.xlu1 %1944 }
 0x41d   : > { %v1955_v47 = vmul.f32 %v1945_v26, %v4963_v53  ;;  %v1956_v9 = vmul.f32 %v1945_v26, %v4977_v13 }
 0x41f   : > { %1973 = vrot.lane.b32.xlu1 %v1954_v44, %s4009_s24  ;;  %1971 = vrot.lane.b32.xlu0 %v1953_v56, %s4009_s24 }
 0x420   : > { %v1949_v60 = vpop.permute.xlu1 %1948 }
 0x421   : > { %v1957_v54 = vmul.f32 %v1949_v60, %v4811_v22  ;;  %v1958_v6 = vmul.f32 %v1949_v60, %v4825_v31 }
 0x423   : > { %1977 = vrot.lane.b32.xlu1 %v1956_v9, %s4009_s24  ;;  %1975 = vrot.lane.b32.xlu0 %v1955_v47, %s4009_s24 }
 0x427   : > { %1981 = vrot.lane.b32.xlu1 %v1958_v6, %s4009_s24  ;;  %1979 = vrot.lane.b32.xlu0 %v1957_v54, %s4009_s24  ;;  %s4040_s24 = smov 47  }
 0x42b   : > { %2009 = vperm.xlu1 %3788, %v4397_v45   ;;  %2005 = vperm.xlu0 %3787, %v4434_v62  }
 0x42f   : > { %2013 = vperm.xlu1 %3788, %v4526_v14   ;;  %2017 = vperm.xlu0 %3787, %v4482_v8  }
 0x433   : > { %3789 = vset.pattern.permute.xlu1 %v4010_v11  ;;  %3790 = vset.pattern.permute.xlu0 %v4010_v11 }
 0x48d   : > { %v5378_v44 = vpop.permute.xlu0 %1967  ;;  %v5380_v56 = vpop.permute.xlu1 %1969 }
 0x48e   : > { %6904 = vst [vmem:[#allocation110_spill] sm:$0xff] %v5378_v44  ;;  %6905 = vst [vmem:[#allocation111_spill] sm:$0xff] %v5380_v56 }
 0x491   : > { %v5382_v33 = vpop.permute.xlu0 %1971  ;;  %v5384_v60 = vpop.permute.xlu1 %1973 }
 0x492   : > { %6906 = vst [vmem:[#allocation112_spill] sm:$0xff] %v5382_v33  ;;  %6907 = vst [vmem:[#allocation113_spill] sm:$0xff] %v5384_v60 }
 0x495   : > { %v5386_v6 = vpop.permute.xlu0 %1975  ;;  %v5388_v55 = vpop.permute.xlu1 %1977 }
 0x496   : > { %6908 = vst [vmem:[#allocation114_spill] sm:$0xff] %v5386_v6  ;;  %6909 = vst [vmem:[#allocation115_spill] sm:$0xff] %v5388_v55 }
 0x499   : > { %v5390_v26 = vpop.permute.xlu0 %1979  ;;  %v5392_v47 = vpop.permute.xlu1 %1981 }
 0x49a   : > { %6910 = vst [vmem:[#allocation116_spill] sm:$0xff] %v5390_v26  ;;  %6911 = vst [vmem:[#allocation117_spill] sm:$0xff] %v5392_v47 }
 0x4aa   : > { %v2006_v9 = vpop.permute.xlu0 %2005  ;;  %v2010_v54 = vpop.permute.xlu1 %2009 }
 0x4ab   : > { %v2020_v11 = vmul.f32 %v2006_v9, %v4660_v21  ;;  %v2021_v44 = vmul.f32 %v2006_v9, %v4672_v30  ;;  %v2022_v33 = vmul.f32 %v2010_v54, %v4530_v15  ;;  %v2023_v56 = vmul.f32 %v2010_v54, %v4539_v20 }
 0x4ad   : > { %2038 = vrot.lane.b32.xlu0 %v2021_v44, %s4011_s22  ;;  %2036 = vrot.lane.b32.xlu1 %v2020_v11, %s4011_s22  ;;  %v4012_v44 = vmov 26  }
 0x4ae   : > { %v2014_v6 = vpop.permute.xlu1 %2013  ;;  %v2018_v47 = vpop.permute.xlu0 %2017 }
 0x4af   : > { %v2024_v26 = vmul.f32 %v2014_v6, %v4963_v53  ;;  %v2025_v55 = vmul.f32 %v2014_v6, %v4977_v13  ;;  %v2026_v60 = vmul.f32 %v2018_v47, %v4811_v22  ;;  %v2027_v9 = vmul.f32 %v2018_v47, %v4825_v31 }
 0x4b1   : > { %2042 = vrot.lane.b32.xlu0 %v2023_v56, %s4011_s22  ;;  %2040 = vrot.lane.b32.xlu1 %v2022_v33, %s4011_s22 }
 0x4b5   : > { %2046 = vrot.lane.b32.xlu0 %v2025_v55, %s4011_s22  ;;  %2044 = vrot.lane.b32.xlu1 %v2024_v26, %s4011_s22 }
 0x4b9   : > { %2050 = vrot.lane.b32.xlu0 %v2027_v9, %s4011_s22  ;;  %2048 = vrot.lane.b32.xlu1 %v2026_v60, %s4011_s22  ;;  %s4041_s22 = smov 46  }
 0x4bd   : > { %2078 = vperm.xlu0 %3790, %v4397_v45   ;;  %2074 = vperm.xlu1 %3789, %v4434_v62  }
 0x4c1   : > { %2082 = vperm.xlu1 %3789, %v4526_v14   ;;  %3791 = vset.pattern.permute.xlu0 %v4012_v44 }
 0x4c5   : > { %2086 = vperm.xlu1 %3789, %v4482_v8  }
 0x4c9   : > { %3792 = vset.pattern.permute.xlu1 %v4012_v44 }
 0x51f   : > { %v5406_v56 = vpop.permute.xlu1 %2036  ;;  %v5408_v33 = vpop.permute.xlu0 %2038 }
 0x520   : > { %6912 = vst [vmem:[#allocation118_spill] sm:$0xff] %v5406_v56  ;;  %6913 = vst [vmem:[#allocation119_spill] sm:$0xff] %v5408_v33 }
 0x523   : > { %v5410_v6 = vpop.permute.xlu1 %2040  ;;  %v5412_v55 = vpop.permute.xlu0 %2042 }
 0x524   : > { %6914 = vst [vmem:[#allocation120_spill] sm:$0xff] %v5410_v6  ;;  %6915 = vst [vmem:[#allocation121_spill] sm:$0xff] %v5412_v55 }
 0x527   : > { %v5414_v60 = vpop.permute.xlu1 %2044  ;;  %v5416_v26 = vpop.permute.xlu0 %2046 }
 0x528   : > { %6916 = vst [vmem:[#allocation122_spill] sm:$0xff] %v5414_v60  ;;  %6917 = vst [vmem:[#allocation123_spill] sm:$0xff] %v5416_v26 }
 0x52b   : > { %v5418_v47 = vpop.permute.xlu1 %2048  ;;  %v5420_v54 = vpop.permute.xlu0 %2050 }
 0x52c   : > { %6918 = vst [vmem:[#allocation124_spill] sm:$0xff] %v5418_v47  ;;  %6919 = vst [vmem:[#allocation125_spill] sm:$0xff] %v5420_v54 }
 0x53c   : > { %v2075_v11 = vpop.permute.xlu1 %2074  ;;  %v2079_v56 = vpop.permute.xlu0 %2078 }
 0x53d   : > { %v2089_v9 = vmul.f32 %v2075_v11, %v4660_v21  ;;  %v2090_v44 = vmul.f32 %v2075_v11, %v4672_v30  ;;  %v2091_v33 = vmul.f32 %v2079_v56, %v4530_v15  ;;  %v2092_v60 = vmul.f32 %v2079_v56, %v4539_v20 }
 0x53e   : > { %v4014_v56 = vmov 27  }
 0x53f   : > { %2107 = vrot.lane.b32.xlu1 %v2090_v44, %s4013_s13  ;;  %2105 = vrot.lane.b32.xlu0 %v2089_v9, %s4013_s13 }
 0x540   : > { %v2083_v6 = vpop.permute.xlu1 %2082 }
 0x541   : > { %v2093_v47 = vmul.f32 %v2083_v6, %v4963_v53  ;;  %v2094_v26 = vmul.f32 %v2083_v6, %v4977_v13 }
 0x543   : > { %2111 = vrot.lane.b32.xlu1 %v2092_v60, %s4013_s13  ;;  %2109 = vrot.lane.b32.xlu0 %v2091_v33, %s4013_s13 }
 0x544   : > { %v2087_v54 = vpop.permute.xlu1 %2086 }
 0x545   : > { %v2095_v11 = vmul.f32 %v2087_v54, %v4811_v22  ;;  %v2096_v55 = vmul.f32 %v2087_v54, %v4825_v31 }
 0x547   : > { %2115 = vrot.lane.b32.xlu1 %v2094_v26, %s4013_s13  ;;  %2113 = vrot.lane.b32.xlu0 %v2093_v47, %s4013_s13 }
 0x54b   : > { %2119 = vrot.lane.b32.xlu1 %v2096_v55, %s4013_s13  ;;  %2117 = vrot.lane.b32.xlu0 %v2095_v11, %s4013_s13  ;;  %s4042_s13 = smov 45  }
 0x54f   : > { %2147 = vperm.xlu1 %3792, %v4397_v45   ;;  %2143 = vperm.xlu0 %3791, %v4434_v62  }
 0x553   : > { %2151 = vperm.xlu1 %3792, %v4526_v14   ;;  %2155 = vperm.xlu0 %3791, %v4482_v8  }
 0x557   : > { %3793 = vset.pattern.permute.xlu1 %v4014_v56  ;;  %3794 = vset.pattern.permute.xlu0 %v4014_v56 }
 0x5b1   : > { %v5434_v33 = vpop.permute.xlu0 %2105  ;;  %v5436_v6 = vpop.permute.xlu1 %2107 }
 0x5b2   : > { %6920 = vst [vmem:[#allocation126_spill] sm:$0xff] %v5434_v33  ;;  %6921 = vst [vmem:[#allocation127_spill] sm:$0xff] %v5436_v6 }
 0x5b5   : > { %v5438_v60 = vpop.permute.xlu0 %2109  ;;  %v5440_v26 = vpop.permute.xlu1 %2111 }
 0x5b6   : > { %6922 = vst [vmem:[#allocation128_spill] sm:$0xff] %v5438_v60  ;;  %6923 = vst [vmem:[#allocation129_spill] sm:$0xff] %v5440_v26 }
 0x5b9   : > { %v5442_v55 = vpop.permute.xlu0 %2113  ;;  %v5444_v47 = vpop.permute.xlu1 %2115 }
 0x5ba   : > { %6924 = vst [vmem:[#allocation130_spill] sm:$0xff] %v5442_v55  ;;  %6925 = vst [vmem:[#allocation131_spill] sm:$0xff] %v5444_v47 }
 0x5bd   : > { %v5446_v54 = vpop.permute.xlu0 %2117  ;;  %v5448_v9 = vpop.permute.xlu1 %2119 }
 0x5be   : > { %6926 = vst [vmem:[#allocation132_spill] sm:$0xff] %v5446_v54  ;;  %6927 = vst [vmem:[#allocation133_spill] sm:$0xff] %v5448_v9 }
 0x5ce   : > { %v2144_v44 = vpop.permute.xlu0 %2143  ;;  %v2148_v11 = vpop.permute.xlu1 %2147 }
 0x5cf   : > { %v2158_v56 = vmul.f32 %v2144_v44, %v4660_v21  ;;  %v2159_v33 = vmul.f32 %v2144_v44, %v4672_v30  ;;  %v2160_v60 = vmul.f32 %v2148_v11, %v4530_v15  ;;  %v2161_v6 = vmul.f32 %v2148_v11, %v4539_v20 }
 0x5d1   : > { %2176 = vrot.lane.b32.xlu0 %v2159_v33, %s4015_s23  ;;  %2174 = vrot.lane.b32.xlu1 %v2158_v56, %s4015_s23  ;;  %v4016_v33 = vmov 28  }
 0x5d2   : > { %v2152_v55 = vpop.permute.xlu1 %2151  ;;  %v2156_v9 = vpop.permute.xlu0 %2155 }
 0x5d3   : > { %v2162_v54 = vmul.f32 %v2152_v55, %v4963_v53  ;;  %v2163_v47 = vmul.f32 %v2152_v55, %v4977_v13  ;;  %v2164_v26 = vmul.f32 %v2156_v9, %v4811_v22  ;;  %v2165_v44 = vmul.f32 %v2156_v9, %v4825_v31 }
 0x5d5   : > { %2180 = vrot.lane.b32.xlu0 %v2161_v6, %s4015_s23  ;;  %2178 = vrot.lane.b32.xlu1 %v2160_v60, %s4015_s23 }
 0x5d9   : > { %2184 = vrot.lane.b32.xlu0 %v2163_v47, %s4015_s23  ;;  %2182 = vrot.lane.b32.xlu1 %v2162_v54, %s4015_s23 }
 0x5dd   : > { %2188 = vrot.lane.b32.xlu0 %v2165_v44, %s4015_s23  ;;  %2186 = vrot.lane.b32.xlu1 %v2164_v26, %s4015_s23  ;;  %s4043_s23 = smov 44  }
 0x5e1   : > { %2216 = vperm.xlu0 %3794, %v4397_v45   ;;  %2212 = vperm.xlu1 %3793, %v4434_v62  }
 0x5e5   : > { %2220 = vperm.xlu1 %3793, %v4526_v14   ;;  %3795 = vset.pattern.permute.xlu0 %v4016_v33 }
 0x5e9   : > { %2224 = vperm.xlu1 %3793, %v4482_v8  }
 0x5ed   : > { %3796 = vset.pattern.permute.xlu1 %v4016_v33 }
 0x643   : > { %v5462_v6 = vpop.permute.xlu1 %2174  ;;  %v5464_v60 = vpop.permute.xlu0 %2176 }
 0x644   : > { %6928 = vst [vmem:[#allocation134_spill] sm:$0xff] %v5462_v6  ;;  %6929 = vst [vmem:[#allocation135_spill] sm:$0xff] %v5464_v60 }
 0x647   : > { %v5466_v55 = vpop.permute.xlu1 %2178  ;;  %v5468_v47 = vpop.permute.xlu0 %2180 }
 0x648   : > { %6930 = vst [vmem:[#allocation136_spill] sm:$0xff] %v5466_v55  ;;  %6931 = vst [vmem:[#allocation137_spill] sm:$0xff] %v5468_v47 }
 0x64b   : > { %v5470_v26 = vpop.permute.xlu1 %2182  ;;  %v5472_v54 = vpop.permute.xlu0 %2184 }
 0x64c   : > { %6932 = vst [vmem:[#allocation138_spill] sm:$0xff] %v5470_v26  ;;  %6933 = vst [vmem:[#allocation139_spill] sm:$0xff] %v5472_v54 }
 0x64f   : > { %v5474_v9 = vpop.permute.xlu1 %2186  ;;  %v5476_v11 = vpop.permute.xlu0 %2188 }
 0x650   : > { %6934 = vst [vmem:[#allocation140_spill] sm:$0xff] %v5474_v9  ;;  %6935 = vst [vmem:[#allocation141_spill] sm:$0xff] %v5476_v11 }
 0x660   : > { %v2213_v56 = vpop.permute.xlu1 %2212  ;;  %v2217_v6 = vpop.permute.xlu0 %2216 }
 0x661   : > { %v2227_v44 = vmul.f32 %v2213_v56, %v4660_v21  ;;  %v2228_v33 = vmul.f32 %v2213_v56, %v4672_v30  ;;  %v2229_v60 = vmul.f32 %v2217_v6, %v4530_v15  ;;  %v2230_v26 = vmul.f32 %v2217_v6, %v4539_v20 }
 0x662   : > { %v4018_v6 = vmov 29  }
 0x663   : > { %2245 = vrot.lane.b32.xlu1 %v2228_v33, %s4017_s21  ;;  %2243 = vrot.lane.b32.xlu0 %v2227_v44, %s4017_s21 }
 0x664   : > { %v2221_v55 = vpop.permute.xlu1 %2220 }
 0x665   : > { %v2231_v9 = vmul.f32 %v2221_v55, %v4963_v53  ;;  %v2232_v54 = vmul.f32 %v2221_v55, %v4977_v13 }
 0x667   : > { %2249 = vrot.lane.b32.xlu1 %v2230_v26, %s4017_s21  ;;  %2247 = vrot.lane.b32.xlu0 %v2229_v60, %s4017_s21 }
 0x668   : > { %v2225_v11 = vpop.permute.xlu1 %2224 }
 0x669   : > { %v2233_v56 = vmul.f32 %v2225_v11, %v4811_v22  ;;  %v2234_v47 = vmul.f32 %v2225_v11, %v4825_v31 }
 0x66b   : > { %2253 = vrot.lane.b32.xlu1 %v2232_v54, %s4017_s21  ;;  %2251 = vrot.lane.b32.xlu0 %v2231_v9, %s4017_s21 }
 0x66f   : > { %2257 = vrot.lane.b32.xlu1 %v2234_v47, %s4017_s21  ;;  %2255 = vrot.lane.b32.xlu0 %v2233_v56, %s4017_s21  ;;  %s4044_s21 = smov 43  }
 0x673   : > { %2285 = vperm.xlu1 %3796, %v4397_v45   ;;  %2281 = vperm.xlu0 %3795, %v4434_v62  }
 0x677   : > { %2289 = vperm.xlu1 %3796, %v4526_v14   ;;  %2293 = vperm.xlu0 %3795, %v4482_v8  }
 0x67b   : > { %3797 = vset.pattern.permute.xlu1 %v4018_v6  ;;  %3798 = vset.pattern.permute.xlu0 %v4018_v6 }
 0x6d5   : > { %v5490_v60 = vpop.permute.xlu0 %2243  ;;  %v5492_v55 = vpop.permute.xlu1 %2245 }
 0x6d6   : > { %6936 = vst [vmem:[#allocation142_spill] sm:$0xff] %v5490_v60  ;;  %6937 = vst [vmem:[#allocation143_spill] sm:$0xff] %v5492_v55 }
 0x6d9   : > { %v5494_v26 = vpop.permute.xlu0 %2247  ;;  %v5496_v54 = vpop.permute.xlu1 %2249 }
 0x6da   : > { %6938 = vst [vmem:[#allocation144_spill] sm:$0xff] %v5494_v26  ;;  %6939 = vst [vmem:[#allocation145_spill] sm:$0xff] %v5496_v54 }
 0x6dd   : > { %v5498_v47 = vpop.permute.xlu0 %2251  ;;  %v5500_v9 = vpop.permute.xlu1 %2253 }
 0x6de   : > { %6940 = vst [vmem:[#allocation146_spill] sm:$0xff] %v5498_v47  ;;  %6941 = vst [vmem:[#allocation147_spill] sm:$0xff] %v5500_v9 }
 0x6e1   : > { %v5502_v11 = vpop.permute.xlu0 %2255  ;;  %v5504_v44 = vpop.permute.xlu1 %2257 }
 0x6e2   : > { %6942 = vst [vmem:[#allocation148_spill] sm:$0xff] %v5502_v11  ;;  %6943 = vst [vmem:[#allocation149_spill] sm:$0xff] %v5504_v44 }
 0x6f2   : > { %v2282_v33 = vpop.permute.xlu0 %2281  ;;  %v2286_v56 = vpop.permute.xlu1 %2285 }
 0x6f3   : > { %v2296_v6 = vmul.f32 %v2282_v33, %v4660_v21  ;;  %v2297_v60 = vmul.f32 %v2282_v33, %v4672_v30  ;;  %v2298_v26 = vmul.f32 %v2286_v56, %v4530_v15  ;;  %v2299_v55 = vmul.f32 %v2286_v56, %v4539_v20 }
 0x6f5   : > { %2314 = vrot.lane.b32.xlu0 %v2297_v60, %s4019_s12  ;;  %2312 = vrot.lane.b32.xlu1 %v2296_v6, %s4019_s12  ;;  %v4020_v60 = vmov 32  }
 0x6f6   : > { %v2290_v47 = vpop.permute.xlu1 %2289  ;;  %v2294_v9 = vpop.permute.xlu0 %2293 }
 0x6f7   : > { %v2300_v11 = vmul.f32 %v2290_v47, %v4963_v53  ;;  %v2301_v44 = vmul.f32 %v2290_v47, %v4977_v13  ;;  %v2302_v54 = vmul.f32 %v2294_v9, %v4811_v22  ;;  %v2303_v33 = vmul.f32 %v2294_v9, %v4825_v31 }
 0x6f9   : > { %2318 = vrot.lane.b32.xlu0 %v2299_v55, %s4019_s12  ;;  %2316 = vrot.lane.b32.xlu1 %v2298_v26, %s4019_s12 }
 0x6fd   : > { %2322 = vrot.lane.b32.xlu0 %v2301_v44, %s4019_s12  ;;  %2320 = vrot.lane.b32.xlu1 %v2300_v11, %s4019_s12 }
 0x701   : > { %2326 = vrot.lane.b32.xlu0 %v2303_v33, %s4019_s12  ;;  %2324 = vrot.lane.b32.xlu1 %v2302_v54, %s4019_s12 }
 0x705   : > { %2354 = vperm.xlu0 %3798, %v4397_v45   ;;  %2350 = vperm.xlu1 %3797, %v4434_v62  }
 0x709   : > { %2358 = vperm.xlu1 %3797, %v4526_v14   ;;  %3799 = vset.pattern.permute.xlu0 %v4020_v60 }
 0x70d   : > { %2362 = vperm.xlu1 %3797, %v4482_v8  }
 0x711   : > { %3800 = vset.pattern.permute.xlu1 %v4020_v60 }
 0x767   : > { %v5518_v55 = vpop.permute.xlu1 %2312  ;;  %v5520_v26 = vpop.permute.xlu0 %2314 }
 0x768   : > { %6944 = vst [vmem:[#allocation150_spill] sm:$0xff] %v5518_v55  ;;  %6945 = vst [vmem:[#allocation151_spill] sm:$0xff] %v5520_v26 }
 0x76b   : > { %v5522_v47 = vpop.permute.xlu1 %2316  ;;  %v5524_v9 = vpop.permute.xlu0 %2318 }
 0x76c   : > { %6946 = vst [vmem:[#allocation152_spill] sm:$0xff] %v5522_v47  ;;  %6947 = vst [vmem:[#allocation153_spill] sm:$0xff] %v5524_v9 }
 0x76f   : > { %v5526_v54 = vpop.permute.xlu1 %2320  ;;  %v5528_v11 = vpop.permute.xlu0 %2322 }
 0x770   : > { %6948 = vst [vmem:[#allocation154_spill] sm:$0xff] %v5526_v54  ;;  %6949 = vst [vmem:[#allocation155_spill] sm:$0xff] %v5528_v11 }
 0x773   : > { %v5530_v44 = vpop.permute.xlu1 %2324  ;;  %v5532_v56 = vpop.permute.xlu0 %2326 }
 0x774   : > { %6950 = vst [vmem:[#allocation156_spill] sm:$0xff] %v5530_v44  ;;  %6951 = vst [vmem:[#allocation157_spill] sm:$0xff] %v5532_v56 }
 0x784   : > { %v2351_v6 = vpop.permute.xlu1 %2350  ;;  %v2355_v55 = vpop.permute.xlu0 %2354 }
 0x785   : > { %v2365_v33 = vmul.f32 %v2351_v6, %v4660_v21  ;;  %v2366_v60 = vmul.f32 %v2351_v6, %v4672_v30  ;;  %v2367_v9 = vmul.f32 %v2355_v55, %v4530_v15  ;;  %v2368_v54 = vmul.f32 %v2355_v55, %v4539_v20 }
 0x786   : > { %v4022_v55 = vmov 33  }
 0x787   : > { %2383 = vrot.lane.b32.xlu1 %v2366_v60, %s4021_s14  ;;  %2381 = vrot.lane.b32.xlu0 %v2365_v33, %s4021_s14  ;;  %v6952_v33 = vmov 0  }
 0x788   : > { %v2359_v47 = vpop.permute.xlu1 %2358 }
 0x789   : > { %v2369_v44 = vmul.f32 %v2359_v47, %v4963_v53  ;;  %v2370_v56 = vmul.f32 %v2359_v47, %v4977_v13  ;;  %v4023_v47 = vmov 34  }
 0x78b   : > { %2387 = vrot.lane.b32.xlu1 %v2368_v54, %s4021_s14  ;;  %2385 = vrot.lane.b32.xlu0 %v2367_v9, %s4021_s14  ;;  %v6751_v9 = vmov 37   ;;  %v6747_v54 = vmov 40  }
 0x78c   : > { %v2363_v11 = vpop.permute.xlu1 %2362 }
 0x78d   : > { %v2371_v6 = vmul.f32 %v2363_v11, %v4811_v22  ;;  %v2372_v26 = vmul.f32 %v2363_v11, %v4825_v31  ;;  %v6745_v11 = vmov 42  }
 0x78f   : > { %2391 = vrot.lane.b32.xlu1 %v2370_v56, %s4021_s14  ;;  %2389 = vrot.lane.b32.xlu0 %v2369_v44, %s4021_s14  ;;  %v6743_v44 = vmov 43   ;;  %v6749_v56 = vmov 45  }
 0x793   : > { %2395 = vrot.lane.b32.xlu1 %v2372_v26, %s4021_s14  ;;  %2393 = vrot.lane.b32.xlu0 %v2371_v6, %s4021_s14  ;;  %v4024_v26 = vmov 35  }
 0x797   : > { %2423 = vperm.xlu1 %3800, %v4397_v45   ;;  %2419 = vperm.xlu0 %3799, %v4434_v62  }
 0x79b   : > { %2427 = vperm.xlu1 %3800, %v4526_v14   ;;  %2431 = vperm.xlu0 %3799, %v4482_v8  }
 0x79f   : > { %3801 = vset.pattern.permute.xlu0 %v4022_v55  ;;  %3802 = vset.pattern.permute.xlu1 %v4022_v55 }
 0x7a0   : > { %2488 = vperm.xlu0 %3801, %v4434_v62  }
 0x7a4   : > { %3804 = vset.pattern.permute.xlu0 %v4023_v47 }
 0x7a5   : > { %2561 = vperm.xlu0 %3804, %v4397_v45  }
 0x7a9   : > { %2569 = vperm.xlu0 %3804, %v4482_v8  }
 0x7ad   : > { %3808 = vset.pattern.permute.xlu0 %v4024_v26 }
 0x7ae   : > { %2626 = vperm.xlu0 %3808, %v4434_v62  }
 0x7b2   : > { %2634 = vperm.xlu0 %3808, %v4526_v14  }
 0x7b6   : > { %3812 = vset.pattern.permute.xlu0 %v6751_v9 }
 0x7b7   : > { %2768 = vperm.xlu0 %3812, %v4397_v45  }
 0x7bb   : > { %2776 = vperm.xlu0 %3812, %v4482_v8  }
 0x7bf   : > { %3816 = vset.pattern.permute.xlu0 %v6747_v54 }
 0x7c0   : > { %2833 = vperm.xlu0 %3816, %v4434_v62  }
 0x7c4   : > { %2841 = vperm.xlu0 %3816, %v4526_v14  }
 0x7c8   : > { %3820 = vset.pattern.permute.xlu0 %v6745_v11 }
 0x7c9   : > { %2975 = vperm.xlu0 %3820, %v4397_v45  }
 0x7cd   : > { %2983 = vperm.xlu0 %3820, %v4482_v8  }
 0x7d1   : > { %3824 = vset.pattern.permute.xlu0 %v6743_v44 }
 0x7d2   : > { %3040 = vperm.xlu0 %3824, %v4434_v62  }
 0x7d6   : > { %3048 = vperm.xlu0 %3824, %v4526_v14  }
 0x7da   : > { %3828 = vset.pattern.permute.xlu0 %v6749_v56 }
 0x7db   : > { %3182 = vperm.xlu0 %3828, %v4397_v45  }
 0x7df   : > { %3186 = vperm.xlu0 %3828, %v4526_v14  }
 0x7e3   : > { %3830 = vset.pattern.permute.xlu0 %v6952_v33 }
 0x7e4   : > { %810 = vperm.xlu0 %3830, %v4397_v45  }
 0x7e8   : > { %820 = vperm.xlu0 %3830, %v4482_v8  }
 0x7f9   : > { %v5569_v60 = vpop.permute.xlu0 %2381  ;;  %v5571_v6 = vpop.permute.xlu1 %2383 }
 0x7fa   : > { %6953 = vst [vmem:[#allocation158_spill] sm:$0xff] %v5569_v60  ;;  %6954 = vst [vmem:[#allocation159_spill] sm:$0xff] %v5571_v6 }
 0x7fd   : > { %v5573_v44 = vpop.permute.xlu0 %2385  ;;  %v5575_v11 = vpop.permute.xlu1 %2387 }
 0x7fe   : > { %6955 = vst [vmem:[#allocation160_spill] sm:$0xff] %v5573_v44  ;;  %6956 = vst [vmem:[#allocation161_spill] sm:$0xff] %v5575_v11 }
 0x801   : > { %v5577_v54 = vpop.permute.xlu0 %2389  ;;  %v5579_v56 = vpop.permute.xlu1 %2391 }
 0x802   : > { %6957 = vst [vmem:[#allocation162_spill] sm:$0xff] %v5577_v54  ;;  %6958 = vst [vmem:[#allocation163_spill] sm:$0xff] %v5579_v56 }
 0x805   : > { %v5581_v9 = vpop.permute.xlu0 %2393  ;;  %v5583_v19 = vpop.permute.xlu1 %2395 }
 0x806   : > { %6959 = vst [vmem:[#allocation164_spill] sm:$0xff] %v5581_v9  ;;  %6960 = vst [vmem:[#allocation165_spill] sm:$0xff] %v5583_v19  ;;  %v6964_v19 = vmov 43  }
 0x816   : > { %v2420_v28 = vpop.permute.xlu0 %2419  ;;  %v5587_v60 = vpop.permute.xlu1 %2423 }
 0x817   : > { %v2434_v37 = vmul.f32 %v2420_v28, %v4660_v21  ;;  %v2435_v63 = vmul.f32 %v2420_v28, %v4672_v30  ;;  %v2437_v54 = vmul.f32 %v5587_v60, %v4539_v20 }
 0x819   : > { %2452 = vrot.lane.b32.xlu0 %v2435_v63, %s4030_s25  ;;  %2450 = vrot.lane.b32.xlu1 %v2434_v37, %s4030_s25  ;;  %v4032_v63 = vmov 36   ;;  %v6961_v37 = vmov 37  }
 0x81a   : > { %v5591_v44 = vpop.permute.xlu0 %2431 }
 0x81d   : > { %2492 = vperm.xlu1 %3802, %v4397_v45   ;;  %2456 = vrot.lane.b32.xlu0 %v2437_v54, %s4030_s25 }
 0x81f   : > { %v5597_v9 = vpop.permute.xlu0 %2488 }
 0x820   : > { %v2504_v28 = vmul.f32 %v5597_v9, %v4672_v30 }
 0x821   : > { %3803 = vset.pattern.permute.xlu1 %v4023_v47 }
 0x822   : > { %2557 = vperm.xlu1 %3803, %v4434_v62   ;;  %2521 = vrot.lane.b32.xlu0 %v2504_v28, %s4031_s0  ;;  %v6963_v28 = vmov 42  }
 0x826   : > { %3805 = vset.pattern.permute.xlu1 %v4022_v55  ;;  %v6962_v55 = vmov 40  }
 0x827   : > { %2496 = vperm.xlu1 %3805, %v4526_v14  }
 0x82b   : > { %2500 = vperm.xlu1 %3805, %v4482_v8  }
 0x82f   : > { %3806 = vset.pattern.permute.xlu1 %v4024_v26 }
 0x830   : > { %2630 = vperm.xlu1 %3806, %v4397_v45  }
 0x834   : > { %3807 = vset.pattern.permute.xlu1 %v4023_v47  ;;  %v4033_v47 = vmov 41  }
 0x835   : > { %2565 = vperm.xlu1 %3807, %v4526_v14  }
 0x839   : > { %3809 = vset.pattern.permute.xlu1 %v4032_v63 }
 0x83a   : > { %2695 = vperm.xlu1 %3809, %v4434_v62  }
 0x83e   : > { %2699 = vperm.xlu1 %3809, %v4397_v45  }
 0x842   : > { %3810 = vset.pattern.permute.xlu1 %v4024_v26  ;;  %v5620_v26 = vpop.permute.xlu0 %2561 }
 0x843   : > { %2638 = vperm.xlu1 %3810, %v4482_v8  }
 0x846   : > { %v5624_v54 = vpop.permute.xlu0 %2569 }
 0x847   : > { %3811 = vset.pattern.permute.xlu1 %v6961_v37 }
 0x848   : > { %2764 = vperm.xlu1 %3811, %v4434_v62  }
 0x84c   : > { %3813 = vset.pattern.permute.xlu1 %v4032_v63  ;;  %v5628_v63 = vpop.permute.xlu0 %2626 }
 0x84d   : > { %2703 = vperm.xlu1 %3813, %v4526_v14  }
 0x851   : > { %2707 = vperm.xlu1 %3813, %v4482_v8  }
 0x855   : > { %3814 = vset.pattern.permute.xlu1 %v6962_v55 }
 0x856   : > { %2837 = vperm.xlu1 %3814, %v4397_v45  }
 0x85a   : > { %3815 = vset.pattern.permute.xlu1 %v6961_v37  ;;  %v5632_v37 = vpop.permute.xlu0 %2634 }
 0x85b   : > { %2772 = vperm.xlu1 %3815, %v4526_v14  }
 0x85f   : > { %3817 = vset.pattern.permute.xlu1 %v4033_v47 }
 0x860   : > { %2902 = vperm.xlu1 %3817, %v4434_v62  }
 0x864   : > { %2906 = vperm.xlu1 %3817, %v4397_v45  }
 0x868   : > { %3818 = vset.pattern.permute.xlu1 %v6962_v55  ;;  %v5636_v55 = vpop.permute.xlu0 %2768 }
 0x869   : > { %2845 = vperm.xlu1 %3818, %v4482_v8  }
 0x86c   : > { %v5640_v56 = vpop.permute.xlu0 %2776 }
 0x86d   : > { %3819 = vset.pattern.permute.xlu1 %v6963_v28  ;;  %6965 = vst [vmem:[#allocation166_spill] sm:$0xff] %v5640_v56 }
 0x86e   : > { %2971 = vperm.xlu1 %3819, %v4434_v62  }
 0x870   : > { %v5644_v11 = vpop.permute.xlu0 %2833 }
 0x872   : > { %3821 = vset.pattern.permute.xlu1 %v4033_v47  ;;  %v4034_v47 = vmov 44  }
 0x873   : > { %2910 = vperm.xlu1 %3821, %v4526_v14  }
 0x874   : > { %v5648_v6 = vpop.permute.xlu0 %2841 }
 0x875   : > { %6966 = vst [vmem:[#allocation167_spill] sm:$0xff] %v5648_v6 }
 0x877   : > { %2914 = vperm.xlu1 %3821, %v4482_v8  }
 0x878   : > { %v5652_v56 = vpop.permute.xlu0 %2975 }
 0x879   : > { %6968 = vst [vmem:[#allocation168_spill] sm:$0xff] %v5652_v56 }
 0x87b   : > { %3822 = vset.pattern.permute.xlu1 %v6964_v19 }
 0x87c   : > { %3044 = vperm.xlu1 %3822, %v4397_v45   ;;  %v5657_v23 = vpop.permute.xlu0 %2983 }
 0x87d   : > { %6970 = vst [vmem:[#allocation170_spill] sm:$0xff] %v5657_v23 }
 0x880   : > { %3823 = vset.pattern.permute.xlu1 %v6963_v28  ;;  %v2428_v28 = vpop.permute.xlu1 %2427 }
 0x881   : > { %2979 = vperm.xlu1 %3823, %v4526_v14   ;;  %v2439_v6 = vmul.f32 %v2428_v28, %v4977_v13 }
 0x885   : > { %3825 = vset.pattern.permute.xlu1 %v4034_v47 }
 0x886   : > { %3109 = vperm.xlu1 %3825, %v4434_v62  }
 0x88a   : > { %3113 = vperm.xlu1 %3825, %v4397_v45  }
 0x88b   : > { %v5654_v18 = vpop.permute.xlu1 %2450 }
 0x88c   : > { %6969 = vst [vmem:[#allocation169_spill] sm:$0xff] %v5654_v18  ;;  %v5665_v18 = vpop.permute.xlu0 %3040 }
 0x88d   : > { %6971 = vst [vmem:[#allocation171_spill] sm:$0xff] %v5665_v18  ;;  %v2579_v18 = vmul.f32 %v5624_v54, %v4825_v31 }
 0x88e   : > { %3826 = vset.pattern.permute.xlu1 %v6964_v19 }
 0x88f   : > { %3052 = vperm.xlu1 %3826, %v4482_v8  }
 0x893   : > { %3827 = vset.pattern.permute.xlu1 %v6967_v39 }
 0x894   : > { %3178 = vperm.xlu1 %3827, %v4434_v62  }
 0x898   : > { %3829 = vset.pattern.permute.xlu1 %v4034_v47  ;;  %v2441_v47 = vmul.f32 %v5591_v44, %v4825_v31 }
 0x899   : > { %3117 = vperm.xlu1 %3829, %v4526_v14   ;;  %v2436_v14 = vmul.f32 %v5587_v60, %v4530_v15 }
 0x89c   : > { %v2493_v45 = vpop.permute.xlu1 %2492 }
 0x89d   : > { %v2506_v19 = vmul.f32 %v2493_v45, %v4539_v20  ;;  %3121 = vperm.xlu1 %3829, %v4482_v8  }
 0x89f   : > { %2525 = vrot.lane.b32.xlu0 %v2506_v19, %s4031_s0 }
 0x8a1   : > { %3831 = vset.pattern.permute.xlu1 %v6967_v39  ;;  %v2558_v62 = vpop.permute.xlu1 %2557  ;;  %v5677_v39 = vpop.permute.xlu0 %3048 }
 0x8a2   : > { %3190 = vperm.xlu1 %3831, %v4482_v8   ;;  %v2503_v8 = vmul.f32 %v5597_v9, %v4660_v21  ;;  %6972 = vst [vmem:[#allocation172_spill] sm:$0xff] %v5677_v39  ;;  %v2438_v39 = vmul.f32 %v2428_v28, %v4963_v53  ;;  %v2572_v28 = vmul.f32 %v2558_v62, %v4660_v21 }
 0x8a3   : > { %2460 = vrot.lane.b32.xlu0 %v2439_v6, %s4030_s25  ;;  %v2573_v6 = vmul.f32 %v2558_v62, %v4672_v30 }
 0x8a6   : > { %2454 = vrot.lane.b32.xlu1 %v2436_v14, %s4030_s25  ;;  %v2497_v19 = vpop.permute.xlu1 %2496  ;;  %v2505_v14 = vmul.f32 %v2493_v45, %v4530_v15  ;;  %v2440_v45 = vmul.f32 %v5591_v44, %v4811_v22  ;;  %v2574_v44 = vmul.f32 %v5620_v26, %v4530_v15 }
 0x8a7   : > { %2464 = vrot.lane.b32.xlu0 %v2441_v47, %s4030_s25  ;;  %3832 = vset.pattern.permute.xlu1 %v6952_v33  ;;  %v2575_v47 = vmul.f32 %v5620_v26, %v4539_v20  ;;  %v5686_v33 = vpop.permute.xlu0 %3182 }
 0x8a8   : > { %6973 = vst [vmem:[#allocation173_spill] sm:$0xff] %v5686_v33 }
 0x8aa   : > { %2519 = vrot.lane.b32.xlu1 %v2503_v8, %s4031_s0  ;;  %v2501_v60 = vpop.permute.xlu1 %2500  ;;  %v2508_v8 = vmul.f32 %v2497_v19, %v4977_v13 }
 0x8ab   : > { %2590 = vrot.lane.b32.xlu0 %v2573_v6, %s4035_s10  ;;  %v5695_v23 = vpop.permute.xlu0 %3186  ;;  %v2509_v26 = vmul.f32 %v2501_v60, %v4811_v22 }
 0x8ac   : > { %6974 = vst [vmem:[#allocation174_spill] sm:$0xff] %v5695_v23 }
 0x8ae   : > { %2523 = vrot.lane.b32.xlu1 %v2505_v14, %s4031_s0  ;;  %v2510_v14 = vmul.f32 %v2501_v60, %v4825_v31 }
 0x8af   : > { %2594 = vrot.lane.b32.xlu0 %v2575_v47, %s4035_s10  ;;  %v2631_v9 = vpop.permute.xlu1 %2630  ;;  %v2642_v47 = vmul.f32 %v5628_v63, %v4672_v30 }
 0x8b2   : > { %2458 = vrot.lane.b32.xlu1 %v2438_v39, %s4030_s25 }
 0x8b3   : > { %2529 = vrot.lane.b32.xlu0 %v2508_v8, %s4031_s0  ;;  %v5704_v8 = vpop.permute.xlu0 %810 }
 0x8b4   : > { %v2566_v6 = vpop.permute.xlu1 %2565  ;;  %v826_v62 = vmul.f32 %v5704_v8, %v4539_v20 }
 0x8b6   : > { %2462 = vrot.lane.b32.xlu1 %v2440_v45, %s4030_s25  ;;  %v2644_v45 = vmul.f32 %v2631_v9, %v4539_v20  ;;  %v902_v33 = vadd.f32 %v5020_v4, %v826_v62  ;;  %v2641_v62 = vmul.f32 %v5628_v63, %v4660_v21  ;;  %s3511_s25 = sshll.u32 %s4235_s26, 6 }
 0x8b7   : > { %2533 = vrot.lane.b32.xlu0 %v2510_v14, %s4031_s0  ;;  %v2507_v14 = vmul.f32 %v2497_v19, %v4963_v53  ;;  %v5726_v19 = vpop.permute.xlu0 %820 }
 0x8b9   : > { %v2696_v39 = vpop.permute.xlu1 %2695 }
 0x8ba   : > { %2588 = vrot.lane.b32.xlu1 %v2572_v28, %s4035_s10  ;;  %v2577_v28 = vmul.f32 %v2566_v6, %v4977_v13 }
 0x8bb   : > { %2659 = vrot.lane.b32.xlu0 %v2642_v47, %s4036_s20 }
 0x8bd   : > { %v2700_v23 = vpop.permute.xlu1 %2699 }
 0x8be   : > { %2592 = vrot.lane.b32.xlu1 %v2574_v44, %s4035_s10  ;;  %v970_v44 = vadd.f32 %v4801_v10, %v902_v33  ;;  %v2643_v33 = vmul.f32 %v2631_v9, %v4530_v15 }
 0x8bf   : > { %2663 = vrot.lane.b32.xlu0 %v2644_v45, %s4036_s20 }
 0x8c0   : > { %v1039_v60 = vadd.f32 %v5040_v7, %v970_v44  ;;  %v2576_v44 = vmul.f32 %v2566_v6, %v4963_v53 }
 0x8c2   : > { %2527 = vrot.lane.b32.xlu1 %v2507_v14, %s4031_s0  ;;  %v5718_v47 = vpop.permute.xlu1 %2638  ;;  %v2711_v14 = vmul.f32 %v2696_v39, %v4672_v30  ;;  %v1108_v63 = vadd.f32 %v4827_v17, %v1039_v60  ;;  %v2578_v60 = vmul.f32 %v5624_v54, %v4811_v22 }
 0x8c3   : > { %2598 = vrot.lane.b32.xlu0 %v2577_v28, %s4035_s10  ;;  %v830_v28 = vmul.f32 %v5726_v19, %v4825_v31 }
 0x8c4   : > { %v1177_v9 = vadd.f32 %v5058_v48, %v1108_v63  ;;  %v2710_v63 = vmul.f32 %v2696_v39, %v4660_v21 }
 0x8c5   : > { %v906_v56 = vadd.f32 %v5257_v1, %v830_v28  ;;  %v2648_v28 = vmul.f32 %v5718_v47, %v4825_v31 }
 0x8c6   : > { %2531 = vrot.lane.b32.xlu1 %v2509_v26, %s4031_s0  ;;  %v2713_v26 = vmul.f32 %v2700_v23, %v4539_v20  ;;  %s358_s0 = scalar_lea.vmem [#allocation8], %s3511_s25 }
 0x8c7   : > { %2602 = vrot.lane.b32.xlu0 %v2579_v18, %s4035_s10  ;;  %v5729_v45 = vpop.permute.xlu1 %2764  ;;  %v974_v16 = vadd.f32 %v5172_v40, %v906_v56  ;;  %v824_v56 = vmul.f32 %v4614_v35, %v4672_v30 }
 0x8c9   : > { %v900_v54 = vadd.f32 %v5157_v25, %v824_v56  ;;  %v825_v56 = vmul.f32 %v5704_v8, %v4530_v15 }
 0x8ca   : > { %2657 = vrot.lane.b32.xlu1 %v2641_v62, %s4036_s20 }
 0x8cb   : > { %2728 = vrot.lane.b32.xlu0 %v2711_v14, %s4037_s19  ;;  %v2646_v14 = vmul.f32 %v5632_v37, %v4977_v13  ;;  %v968_v39 = vadd.f32 %v4967_v3, %v900_v54  ;;  %v2645_v54 = vmul.f32 %v5632_v37, %v4963_v53  ;;  %v2647_v37 = vmul.f32 %v5718_v47, %v4811_v22 }
 0x8cc   : > { %v5740_v18 = vpop.permute.xlu1 %2703  ;;  %v887_v47 = vsel %vm560_vm4, %v4953_v43, %v5157_v25  ;;  %v890_v43 = vsel %vm560_vm4, %v5162_v41, %v5257_v1  ;;  %v6975_v25 = vld [vmem:[#allocation55_spill] sm:$0xff] }
 0x8ce   : > { %2661 = vrot.lane.b32.xlu1 %v2643_v33, %s4036_s20  ;;  %v1245_v33 = vadd.f32 %v4845_v42, %v1177_v9 }
 0x8cf   : > { %2732 = vrot.lane.b32.xlu0 %v2713_v26, %s4037_s19  ;;  %v1043_v26 = vadd.f32 %v5265_v52, %v974_v16 }
 0x8d0   : > { %v5748_v62 = vpop.permute.xlu1 %2707 }
 0x8d1   : > { %v1112_v9 = vadd.f32 %v5191_v59, %v1043_v26 }
 0x8d2   : > { %2596 = vrot.lane.b32.xlu1 %v2576_v44, %s4035_s10  ;;  %v2780_v44 = vmul.f32 %v5729_v45, %v4672_v30 }
 0x8d3   : > { %2667 = vrot.lane.b32.xlu0 %v2646_v14, %s4036_s20  ;;  %v1313_v14 = vadd.f32 %v5076_v38, %v1245_v33  ;;  %v1181_v26 = vadd.f32 %v5272_v51, %v1112_v9 }
 0x8d5   : > { %v5760_v6 = vpop.permute.xlu1 %2837  ;;  %v1381_v33 = vadd.f32 %v4865_v46, %v1313_v14  ;;  %v2715_v14 = vmul.f32 %v5740_v18, %v4977_v13 }
 0x8d6   : > { %2600 = vrot.lane.b32.xlu1 %v2578_v60, %s4035_s10  ;;  %v2712_v60 = vmul.f32 %v2700_v23, %v4530_v15  ;;  %v888_v23 = vsel %vm560_vm4, %v4789_v32, %v5020_v4  ;;  %v956_v4 = vsel %vm573_vm5, %v5030_v12, %v4801_v10  ;;  %v829_v10 = vmul.f32 %v5726_v19, %v4811_v22  ;;  %s3407_s10 = sshll.u32 %s358_s0, 4  ;;  %s6593_s10 = int_to_ptr.vmem [resolvable:$true] %s3407_s10 }
 0x8d7   : > { %2671 = vrot.lane.b32.xlu0 %v2648_v28, %s4036_s20  ;;  %v2782_v28 = vmul.f32 %v5636_v55, %v4539_v20  ;;  %v901_v8 = vadd.f32 %v888_v23, %v825_v56  ;;  %v1450_v9 = vadd.f32 %v5096_v27, %v1381_v33  ;;  %v1025_v12 = vsel %vm1023_vm12, %v4815_v5, %v5040_v7 }
 0x8d8   : > { %v823_v5 = vmul.f32 %v4614_v35, %v4660_v21  ;;  %v6979_v35 = vld [vmem:[#allocation25_spill] sm:$0xff] }
 0x8d9   : > { %v1519_v23 = vadd.f32 %v4883_v49, %v1450_v9  ;;  %v1094_v41 = vsel %vm1092_vm13, %v6979_v35, %v4827_v17  ;;  %v6986_v35 = vld [vmem:[#allocation77_spill] sm:$0xff] }
 0x8da   : > { %2726 = vrot.lane.b32.xlu1 %v2710_v63, %s4037_s19  ;;  %v5775_v16 = vpop.permute.xlu1 %2772  ;;  %v1037_v63 = vadd.f32 %v5169_v29, %v968_v39  ;;  %v828_v39 = vmul.f32 %v4808_v58, %v4977_v13  ;;  %v899_v1 = vadd.f32 %v887_v47, %v823_v5 }
 0x8db   : > { %2797 = vrot.lane.b32.xlu0 %v2780_v44, %s4038_s15  ;;  %v1588_v7 = vadd.f32 %v5114_v36, %v1519_v23  ;;  %v2781_v23 = vmul.f32 %v5636_v55, %v4530_v15  ;;  %v6981_v55 = vld [vmem:[#allocation63_spill] sm:$0xff] }
 0x8dc   : > { %v904_v33 = vadd.f32 %v5310_v24, %v828_v39 }
 0x8de   : > { %2730 = vrot.lane.b32.xlu1 %v2712_v60, %s4037_s19  ;;  %v1249_v60 = vadd.f32 %v5210_v2, %v1181_v26  ;;  %v969_v26 = vadd.f32 %v956_v4, %v901_v8  ;;  %v2779_v8 = vmul.f32 %v5729_v45, %v4660_v21  ;;  %v972_v19 = vadd.f32 %v5288_v0, %v904_v33  ;;  %v6978_v33 = vld [vmem:[#allocation85_spill] sm:$0xff] }
 0x8df   : > { %2801 = vrot.lane.b32.xlu0 %v2782_v28, %s4038_s15  ;;  %v5789_v44 = vpop.permute.xlu1 %2902  ;;  %v1106_v28 = vadd.f32 %v4995_v34, %v1037_v63  ;;  %v2717_v63 = vmul.f32 %v5748_v62, %v4825_v31 }
 0x8e0   : > { %v1038_v39 = vadd.f32 %v1025_v12, %v969_v26  ;;  %v1041_v26 = vadd.f32 %v6978_v33, %v972_v19 }
 0x8e1   : > { %v1175_v56 = vadd.f32 %v5183_v61, %v1106_v28  ;;  %v6976_v28 = vld [vmem:[#allocation43_spill] sm:$0xff] }
 0x8e2   : > { %2665 = vrot.lane.b32.xlu1 %v2645_v54, %s4036_s20  ;;  %v1317_v54 = vadd.f32 %v5280_v50, %v1249_v60  ;;  %v2849_v60 = vmul.f32 %v5644_v11, %v4672_v30  ;;  %v955_v4 = vsel %vm573_vm5, %v6976_v28, %v4967_v3  ;;  %v5857_v3 = vmul.f32 %v4808_v58, %v4963_v53  ;;  %v6982_v58 = vld [vmem:[#allocation72_spill] sm:$0xff] }
 0x8e3   : > { %2736 = vrot.lane.b32.xlu0 %v2715_v14, %s4037_s19  ;;  %v5805_v32 = vpop.permute.xlu1 %2906  ;;  %v1243_v9 = vadd.f32 %v5023_v57, %v1175_v56  ;;  %v1107_v12 = vadd.f32 %v1094_v41, %v1038_v39  ;;  %v967_v47 = vadd.f32 %v955_v4, %v899_v1  ;;  %v1110_v41 = vadd.f32 %v6986_v35, %v1041_v26  ;;  %v6987_v4 = vld [vmem:[#allocation13_spill] sm:$0xff] }
 0x8e4   : > { %v1385_v45 = vadd.f32 %v6975_v25, %v1317_v54  ;;  %v6980_v54 = vld [vmem:[#allocation22_spill] sm:$0xff] }
 0x8e6   : > { %2669 = vrot.lane.b32.xlu1 %v2647_v37, %s4036_s20  ;;  %v6977_v37 = vld [vmem:[#allocation47_spill] sm:$0xff]  ;;  %v1454_v19 = vadd.f32 %v6982_v58, %v1385_v45  ;;  %s3532_s20 = sshll.u32 %s4114_s9, 10  ;;  %s3394_s9 = scalar_lea.sflag [#allocation5], %s4235_s26 }
 0x8e7   : > { %2740 = vrot.lane.b32.xlu0 %v2717_v63, %s4037_s19  ;;  %v1311_v56 = vadd.f32 %v6977_v37, %v1243_v9  ;;  %v905_v63 = vadd.f32 %v890_v43, %v829_v10  ;;  %v1024_v10 = vsel %vm1023_vm12, %v6980_v54, %v5169_v29  ;;  %v958_v9 = vsel %vm573_vm5, %v6981_v55, %v5172_v40  ;;  %v6984_v29 = vld [vmem:[#allocation44_spill] sm:$0xff]  ;;  %v6985_v43 = vld [vmem:[#allocation26_spill] sm:$0xff] }
 0x8e8   : > { %v5830_v14 = vpop.permute.xlu1 %2845  ;;  %v1093_v39 = vsel %vm1092_vm13, %v6984_v29, %v4995_v34  ;;  %v1163_v40 = vsel %vm1161_vm14, %v6987_v4, %v5058_v48  ;;  %v1036_v45 = vadd.f32 %v1024_v10, %v967_v47  ;;  %v6989_v34 = vld [vmem:[#allocation50_spill] sm:$0xff]  ;;  %v6992_v10 = vld [vmem:[#allocation60_spill] sm:$0xff] }
 0x8e9   : > { %v1379_v28 = vadd.f32 %v6985_v43, %v1311_v56  ;;  %v973_v54 = vadd.f32 %v958_v9, %v905_v63  ;;  %v6990_v56 = vld [vmem:[#allocation88_spill] sm:$0xff]  ;;  %v1176_v26 = vadd.f32 %v1163_v40, %v1107_v12  ;;  %v2784_v63 = vmul.f32 %v5775_v16, %v4977_v13  ;;  %v6991_v9 = vld [vmem:[#allocation45_spill] sm:$0xff]  ;;  %v6997_v40 = vld [vmem:[#allocation46_spill] sm:$0xff] }
 0x8ea   : > { %2795 = vrot.lane.b32.xlu1 %v2779_v8, %s4038_s15  ;;  %v2851_v8 = vmul.f32 %v5760_v6, %v4539_v20  ;;  %v1179_v29 = vadd.f32 %v6990_v56, %v1110_v41  ;;  %v1027_v48 = vsel %vm1023_vm12, %v6991_v9, %v5265_v52  ;;  %v1523_v47 = vadd.f32 %v6992_v10, %v1454_v19  ;;  %v6993_v4 = vld [vmem:[#allocation36_spill] sm:$0xff]  ;;  %v6996_v41 = vld [vmem:[#allocation14_spill] sm:$0xff]  ;;  %v7000_v9 = vld [vmem:[#allocation29_spill] sm:$0xff] }
 0x8eb   : > { %2866 = vrot.lane.b32.xlu0 %v2849_v60, %s4039_s16  ;;  %v6983_v60 = vld [vmem:[#allocation17_spill] sm:$0xff]  ;;  %v1448_v55 = vadd.f32 %v6989_v34, %v1379_v28  ;;  %v6995_v28 = vld [vmem:[#allocation28_spill] sm:$0xff]  ;;  %v1230_v52 = vsel %vm586_vm6, %v6997_v40, %v5023_v57  ;;  %v6998_v19 = vld [vmem:[#allocation30_spill] sm:$0xff] }
 0x8ec   : > { %v1656_v5 = vadd.f32 %v6983_v60, %v1588_v7  ;;  %v6988_v7 = vld [vmem:[#allocation23_spill] sm:$0xff]  ;;  %v1231_v12 = vsel %vm586_vm6, %v6995_v28, %v4845_v42 }
 0x8ed   : > { %v5864_v17 = vpop.permute.xlu1 %2971  ;;  %v1162_v1 = vsel %vm1161_vm14, %v6988_v7, %v5183_v61  ;;  %v1517_v28 = vadd.f32 %v7000_v9, %v1448_v55  ;;  %v7006_v55 = vld [vmem:[#allocation49_spill] sm:$0xff] }
 0x8ee   : > { %2799 = vrot.lane.b32.xlu1 %v2781_v23, %s4038_s15  ;;  %v2714_v23 = vmul.f32 %v5740_v18, %v4963_v53  ;;  %v1724_v61 = vadd.f32 %v6993_v4, %v1656_v5  ;;  %v1367_v5 = vsel %vm612_vm8, %v6998_v19, %v4865_v46  ;;  %v7003_v46 = vld [vmem:[#allocation66_spill] sm:$0xff] }
 0x8ef   : > { %2870 = vrot.lane.b32.xlu0 %v2851_v8, %s4039_s16  ;;  %v1105_v8 = vadd.f32 %v1093_v39, %v1036_v45  ;;  %v1299_v39 = vsel %vm599_vm7, %v6996_v41, %v5076_v38  ;;  %v1042_v45 = vadd.f32 %v1027_v48, %v973_v54  ;;  %v2716_v38 = vmul.f32 %v5748_v62, %v4811_v22  ;;  %v7001_v41 = vld [vmem:[#allocation82_spill] sm:$0xff] }
 0x8f0   : > { %v1247_v57 = vadd.f32 %v7001_v41, %v1179_v29  ;;  %v7002_v54 = vld [vmem:[#allocation166_spill] sm:$0xff]  ;;  %v1244_v48 = vadd.f32 %v1231_v12, %v1176_v26  ;;  %v1366_v29 = vsel %vm612_vm8, %v7006_v55, %v6985_v43  ;;  %v7008_v26 = vld [vmem:[#allocation92_spill] sm:$0xff]  ;;  %v2848_v43 = vmul.f32 %v5644_v11, %v4660_v21 }
 0x8f1   : > { %v1174_v7 = vadd.f32 %v1162_v1, %v1105_v8  ;;  %v1096_v1 = vsel %vm1092_vm13, %v7003_v46, %v5191_v59  ;;  %v7004_v8 = vld [vmem:[#allocation74_spill] sm:$0xff]  ;;  %v7009_v59 = vld [vmem:[#allocation15_spill] sm:$0xff]  ;;  %v2918_v46 = vmul.f32 %v5789_v44, %v4672_v30  ;;  %v7015_v55 = vld [vmem:[#allocation64_spill] sm:$0xff] }
 0x8f2   : > { %2734 = vrot.lane.b32.xlu1 %v2714_v23, %s4037_s19  ;;  %v5896_v18 = vpop.permute.xlu1 %2910  ;;  %v6999_v23 = vld [vmem:[#allocation24_spill] sm:$0xff]  ;;  %v1592_v19 = vadd.f32 %v7004_v8, %v1523_v47  ;;  %v1315_v12 = vadd.f32 %v7008_v26, %v1247_v57  ;;  %v1436_v47 = vsel %vm1434_vm15, %v7009_v59, %v5096_v27  ;;  %v7012_v57 = vld [vmem:[#allocation27_spill] sm:$0xff]  ;;  %v1312_v27 = vadd.f32 %v1299_v39, %v1244_v48  ;;  %v7018_v48 = vld [vmem:[#allocation86_spill] sm:$0xff] }
 0x8f3   : > { %6994 = vst [vmem:[#allocation55_spill] sm:$0xff] %v5896_v18  ;;  %2805 = vrot.lane.b32.xlu0 %v2784_v63, %s4038_s15  ;;  %v1298_v42 = vsel %vm599_vm7, %v6999_v23, %v6977_v37  ;;  %v2786_v63 = vmul.f32 %v7002_v54, %v4825_v31  ;;  %v1242_v40 = vadd.f32 %v1230_v52, %v1174_v7  ;;  %v7005_v18 = vld [vmem:[#allocation19_spill] sm:$0xff]  ;;  %v7007_v23 = vld [vmem:[#allocation53_spill] sm:$0xff] }
 0x8f4   : > { %v1792_v37 = vadd.f32 %v7005_v18, %v1724_v61  ;;  %v1586_v41 = vadd.f32 %v7007_v23, %v1517_v28  ;;  %v1111_v52 = vadd.f32 %v1096_v1, %v1042_v45  ;;  %v7010_v61 = vld [vmem:[#allocation32_spill] sm:$0xff]  ;;  %v7016_v59 = vld [vmem:[#allocation51_spill] sm:$0xff] }
 0x8f5   : > { %v5940_v7 = vsel %vm1503_vm0, %v7010_v61, %v4883_v49  ;;  %v7011_v28 = vld [vmem:[#allocation16_spill] sm:$0xff]  ;;  %v1504_v61 = vsel %vm1503_vm0, %v7016_v59, %v7000_v9 }
 0x8f6   : > { %2738 = vrot.lane.b32.xlu1 %v2716_v38, %s4037_s19  ;;  %v5926_v62 = vpop.permute.xlu1 %2914  ;;  %v1310_v38 = vadd.f32 %v1298_v42, %v1242_v40  ;;  %v5947_v45 = vsel %vm1572_vm1, %v7011_v28, %v5114_v36  ;;  %v7013_v1 = vld [vmem:[#allocation48_spill] sm:$0xff]  ;;  %v1660_v36 = vadd.f32 %v7015_v55, %v1592_v19  ;;  %v1383_v28 = vadd.f32 %v7018_v48, %v1315_v12 }
 0x8f7   : > { %2809 = vrot.lane.b32.xlu0 %v2786_v63, %s4038_s15  ;;  %v1435_v63 = vsel %vm1434_vm15, %v7012_v57, %v6989_v34  ;;  %v1165_v42 = vsel %vm1161_vm14, %v7013_v1, %v5272_v51  ;;  %v7014_v40 = vld [vmem:[#allocation40_spill] sm:$0xff]  ;;  %v7017_v34 = vld [vmem:[#allocation33_spill] sm:$0xff]  ;;  %v7020_v51 = vld [vmem:[#allocation35_spill] sm:$0xff] }
 0x8f8   : > { %v1378_v49 = vadd.f32 %v1366_v29, %v1310_v38  ;;  %v1861_v11 = vadd.f32 %v7014_v40, %v1792_v37  ;;  %v1654_v39 = vadd.f32 %v7017_v34, %v1586_v41  ;;  %v1180_v57 = vadd.f32 %v1165_v42, %v1111_v52  ;;  %v7021_v38 = vld [vmem:[#allocation31_spill] sm:$0xff]  ;;  %v7022_v12 = vld [vmem:[#allocation56_spill] sm:$0xff] }
 0x8f9   : > { %v5971_v37 = vsel %vm625_vm9, %v7020_v51, %v6983_v60  ;;  %v1573_v9 = vsel %vm1572_vm1, %v7021_v38, %v7007_v23  ;;  %v2850_v41 = vmul.f32 %v5760_v6, %v4530_v15  ;;  %v2920_v42 = vmul.f32 %v5805_v32, %v4539_v20  ;;  %v7024_v60 = vld [vmem:[#allocation68_spill] sm:$0xff]  ;;  %v7026_v23 = vld [vmem:[#allocation78_spill] sm:$0xff] }
 0x8fa   : > { %2864 = vrot.lane.b32.xlu1 %v2848_v43, %s4039_s16  ;;  %v1447_v19 = vadd.f32 %v1435_v63, %v1378_v49  ;;  %v1722_v52 = vadd.f32 %v7022_v12, %v1654_v39  ;;  %v7023_v43 = vld [vmem:[#allocation95_spill] sm:$0xff]  ;;  %v1233_v63 = vsel %vm586_vm6, %v7024_v60, %v5210_v2  ;;  %v7025_v49 = vld [vmem:[#allocation21_spill] sm:$0xff]  ;;  %v1728_v38 = vadd.f32 %v7026_v23, %v1660_v36  ;;  %v7027_v6 = vld [vmem:[#allocation18_spill] sm:$0xff] }
 0x8fb   : > { %2935 = vrot.lane.b32.xlu0 %v2918_v46, %s4040_s24  ;;  %v5966_v29 = vpop.permute.xlu1 %3044  ;;  %v1452_v1 = vadd.f32 %v7023_v43, %v1383_v28  ;;  %v1380_v46 = vadd.f32 %v1367_v5, %v1312_v27  ;;  %v1930_v51 = vadd.f32 %v7025_v49, %v1861_v11  ;;  %v5991_v39 = vsel %vm638_vm10, %v7027_v6, %v6993_v4  ;;  %v7028_v5 = vld [vmem:[#allocation38_spill] sm:$0xff]  ;;  %v7034_v6 = vld [vmem:[#allocation37_spill] sm:$0xff] }
 0x8fc   : > { %7019 = vst [vmem:[#allocation43_spill] sm:$0xff] %v5966_v29  ;;  %v1516_v59 = vadd.f32 %v1504_v61, %v1447_v19  ;;  %v5996_v27 = vsel %vm651_vm11, %v7028_v5, %v7005_v18  ;;  %v7029_v61 = vld [vmem:[#allocation20_spill] sm:$0xff]  ;;  %v1248_v11 = vadd.f32 %v1233_v63, %v1180_v57  ;;  %v7031_v36 = vld [vmem:[#allocation54_spill] sm:$0xff]  ;;  %v2783_v18 = vmul.f32 %v5775_v16, %v4963_v53  ;;  %v7035_v5 = vld [vmem:[#allocation91_spill] sm:$0xff]  ;;  %v6018_v63 = vpop.permute.xlu0 %2452 }
 0x8fd   : > { %v6001_v2 = vsel %vm1845_vm2, %v7029_v61, %v7014_v40  ;;  %v1641_v19 = vsel %vm625_vm9, %v7031_v36, %v7017_v34  ;;  %v7032_v4 = vld [vmem:[#allocation34_spill] sm:$0xff]  ;;  %v1790_v40 = vadd.f32 %v7034_v6, %v1722_v52  ;;  %v1521_v57 = vadd.f32 %v7035_v5, %v1452_v1  ;;  %7037 = vst [vmem:[#allocation25_spill] sm:$0xff] %v6018_v63  ;;  %v7038_v34 = vld [vmem:[#allocation52_spill] sm:$0xff]  ;;  %v7040_v36 = vld [vmem:[#allocation113_spill] sm:$0xff] }
 0x8fe   : > { %2868 = vrot.lane.b32.xlu1 %v2850_v41, %s4039_s16  ;;  %7030 = vst [vmem:[#allocation47_spill] sm:$0xff] %v6001_v2  ;;  %v1585_v28 = vadd.f32 %v1573_v9, %v1516_v59  ;;  %v1709_v41 = vsel %vm638_vm10, %v7032_v4, %v7022_v12  ;;  %v1449_v59 = vadd.f32 %v1436_v47, %v1380_v46  ;;  %v7039_v12 = vld [vmem:[#allocation71_spill] sm:$0xff]  ;;  %v7043_v29 = vld [vmem:[#allocation98_spill] sm:$0xff] }
 0x8ff   : > { %2939 = vrot.lane.b32.xlu0 %v2920_v42, %s4040_s24  ;;  %v7036_v42 = vld [vmem:[#allocation167_spill] sm:$0xff]  ;;  %v1301_v61 = vsel %vm599_vm7, %v7038_v34, %v5280_v50  ;;  %v889_v16 = vsel %vm560_vm4, %v7039_v12, %v5310_v24  ;;  %v1999_v4 = vadd.f32 %v7040_v36, %v1930_v51  ;;  %v1590_v63 = vadd.f32 %v7043_v29, %v1521_v57  ;;  %v7044_v50 = vld [vmem:[#allocation58_spill] sm:$0xff]  ;;  %v7052_v12 = vld [vmem:[#allocation96_spill] sm:$0xff] }
 0x900   : > { %v6012_v60 = vpop.permute.xlu1 %2979  ;;  %v2853_v9 = vmul.f32 %v7036_v42, %v4977_v13  ;;  %v7041_v52 = vld [vmem:[#allocation67_spill] sm:$0xff]  ;;  %v1653_v46 = vadd.f32 %v1641_v19, %v1585_v28  ;;  %v1316_v2 = vadd.f32 %v1301_v61, %v1248_v11  ;;  %v1777_v24 = vsel %vm651_vm11, %v7044_v50, %v7034_v6  ;;  %v7048_v6 = vld [vmem:[#allocation70_spill] sm:$0xff]  ;;  %v7050_v61 = vld [vmem:[#allocation121_spill] sm:$0xff]  ;;  %v6061_v50 = vpop.permute.xlu0 %2456 }
 0x901   : > { %7033 = vst [vmem:[#allocation85_spill] sm:$0xff] %v6012_v60  ;;  %v1796_v1 = vadd.f32 %v7041_v52, %v1728_v38  ;;  %v7042_v60 = vld [vmem:[#allocation41_spill] sm:$0xff]  ;;  %v7045_v51 = vld [vmem:[#allocation59_spill] sm:$0xff]  ;;  %v903_v28 = vadd.f32 %v889_v16, %v5857_v3  ;;  %v1518_v11 = vadd.f32 %v5940_v7, %v1449_v59  ;;  %v2855_v19 = vmul.f32 %v5830_v14, %v4825_v31 }
 0x902   : > { %2803 = vrot.lane.b32.xlu1 %v2783_v18, %s4038_s15  ;;  %v6032_v47 = vsel %vm1914_vm3, %v7042_v60, %v7025_v49  ;;  %v1859_v34 = vadd.f32 %v7045_v51, %v1790_v40  ;;  %v7046_v18 = vld [vmem:[#allocation83_spill] sm:$0xff]  ;;  %v2785_v49 = vmul.f32 %v7002_v54, %v4811_v22  ;;  %v1721_v60 = vadd.f32 %v1709_v41, %v1653_v46  ;;  %v7051_v3 = vld [vmem:[#allocation81_spill] sm:$0xff] }
 0x903   : > { %2874 = vrot.lane.b32.xlu0 %v2853_v9, %s4039_s16  ;;  %v957_v38 = vsel %vm573_vm5, %v7046_v18, %v5288_v0  ;;  %v1369_v40 = vsel %vm612_vm8, %v7048_v6, %v6975_v25  ;;  %v7049_v9 = vld [vmem:[#allocation75_spill] sm:$0xff]  ;;  %v2068_v54 = vadd.f32 %v7050_v61, %v1999_v4  ;;  %v1865_v41 = vadd.f32 %v7051_v3, %v1796_v1 }
 0x904   : > { %v1026_v0 = vsel %vm1023_vm12, %v7049_v9, %v6978_v33  ;;  %v1789_v7 = vadd.f32 %v1777_v24, %v1721_v60  ;;  %v971_v59 = vadd.f32 %v957_v38, %v903_v28  ;;  %v1658_v16 = vadd.f32 %v7052_v12, %v1590_v63  ;;  %v7053_v25 = vld [vmem:[#allocation39_spill] sm:$0xff]  ;;  %v7056_v63 = vld [vmem:[#allocation102_spill] sm:$0xff] }
 0x905   : > { %v6049_v57 = vpop.permute.xlu1 %3109  ;;  %v1384_v46 = vadd.f32 %v1369_v40, %v1316_v2  ;;  %v1846_v18 = vsel %vm1845_vm2, %v7053_v25, %v7045_v51  ;;  %v7054_v33 = vld [vmem:[#allocation87_spill] sm:$0xff]  ;;  %v2917_v1 = vmul.f32 %v5789_v44, %v4660_v21  ;;  %v1587_v38 = vadd.f32 %v5947_v45, %v1518_v11  ;;  %v7058_v51 = vld [vmem:[#allocation57_spill] sm:$0xff]  ;;  %v7061_v9 = vld [vmem:[#allocation106_spill] sm:$0xff] }
 0x906   : > { %7047 = vst [vmem:[#allocation22_spill] sm:$0xff] %v6049_v57  ;;  %2807 = vrot.lane.b32.xlu1 %v2785_v49, %s4038_s15  ;;  %v1095_v4 = vsel %vm1092_vm13, %v7054_v33, %v6986_v35  ;;  %v7055_v49 = vld [vmem:[#allocation42_spill] sm:$0xff]  ;;  %v1040_v24 = vadd.f32 %v1026_v0, %v971_v59  ;;  %v1726_v2 = vadd.f32 %v7056_v63, %v1658_v16  ;;  %v7059_v35 = vld [vmem:[#allocation80_spill] sm:$0xff]  ;;  %v7060_v40 = vld [vmem:[#allocation129_spill] sm:$0xff]  ;;  %vm1983_vm4 = vcmask 744448  }
 0x907   : > { %2878 = vrot.lane.b32.xlu0 %v2855_v19, %s4039_s16  ;;  %v1928_v6 = vadd.f32 %v7055_v49, %v1859_v34  ;;  %v2987_v60 = vmul.f32 %v5864_v17, %v4672_v30  ;;  %v1438_v19 = vsel %vm1434_vm15, %v7058_v51, %v6982_v58  ;;  %v1164_v34 = vsel %vm1161_vm14, %v7059_v35, %v6990_v56  ;;  %v7062_v11 = vld [vmem:[#allocation61_spill] sm:$0xff]  ;;  %v7064_v33 = vld [vmem:[#allocation82_spill] sm:$0xff]  ;;  %v7066_v51 = vld [vmem:[#allocation111_spill] sm:$0xff] }
 0x908   : > { %v2137_v44 = vadd.f32 %v7060_v40, %v2068_v54  ;;  %v1934_v0 = vadd.f32 %v7061_v9, %v1865_v41  ;;  %v1858_v45 = vadd.f32 %v1846_v18, %v1789_v7  ;;  %v1915_v59 = vsel %vm1914_vm3, %v7062_v11, %v7055_v49  ;;  %v7063_v58 = vld [vmem:[#allocation73_spill] sm:$0xff]  ;;  %v7065_v54 = vld [vmem:[#allocation90_spill] sm:$0xff]  ;;  %v7070_v11 = vld [vmem:[#allocation119_spill] sm:$0xff] }
 0x909   : > { %v6077_v28 = vpop.permute.xlu1 %3113  ;;  %v1109_v16 = vadd.f32 %v1095_v4, %v1040_v24  ;;  %v1453_v25 = vadd.f32 %v1438_v19, %v1384_v46  ;;  %v1507_v56 = vsel %vm1503_vm0, %v7063_v58, %v6992_v10  ;;  %v1997_v41 = vadd.f32 %v7066_v51, %v1928_v6  ;;  %v7067_v49 = vld [vmem:[#allocation101_spill] sm:$0xff]  ;;  %v7068_v46 = vld [vmem:[#allocation168_spill] sm:$0xff] }
 0x90a   : > { %7057 = vst [vmem:[#allocation63_spill] sm:$0xff] %v6077_v28  ;;  %2933 = vrot.lane.b32.xlu1 %v2917_v1, %s4040_s24  ;;  %v1232_v1 = vsel %vm586_vm6, %v7065_v54, %v7064_v33  ;;  %v2919_v7 = vmul.f32 %v5805_v32, %v4530_v15  ;;  %v1794_v4 = vadd.f32 %v7067_v49, %v1726_v2  ;;  %v7069_v10 = vld [vmem:[#allocation84_spill] sm:$0xff]  ;;  %v7071_v6 = vld [vmem:[#allocation137_spill] sm:$0xff]  ;;  %vm2052_vm5 = vcmask 654336  }
 0x90b   : > { %3004 = vrot.lane.b32.xlu0 %v2987_v60, %s4041_s22  ;;  %v1178_v18 = vadd.f32 %v1164_v34, %v1109_v16  ;;  %v2989_v24 = vmul.f32 %v7068_v46, %v4539_v20  ;;  %v6104_v60 = vpop.permute.xlu0 %2521  ;;  %v1655_v19 = vadd.f32 %v5971_v37, %v1587_v38  ;;  %v1300_v35 = vsel %vm599_vm7, %v7069_v10, %v7008_v26  ;;  %v7073_v2 = vld [vmem:[#allocation117_spill] sm:$0xff]  ;;  %v7075_v37 = vld [vmem:[#allocation62_spill] sm:$0xff] }
 0x90c   : > { %v2066_v58 = vadd.f32 %v7070_v11, %v1997_v41  ;;  %v2206_v33 = vadd.f32 %v7071_v6, %v2137_v44  ;;  %v2003_v34 = vadd.f32 %v7073_v2, %v1934_v0  ;;  %v1927_v16 = vadd.f32 %v1915_v59, %v1858_v45  ;;  %v7074_v28 = vld [vmem:[#allocation105_spill] sm:$0xff]  ;;  %v7077_v41 = vld [vmem:[#allocation127_spill] sm:$0xff] }
 0x90d   : > { %v1246_v54 = vadd.f32 %v1232_v1, %v1178_v18  ;;  %v1863_v49 = vadd.f32 %v7074_v28, %v1794_v4  ;;  %v1522_v57 = vadd.f32 %v1507_v56, %v1453_v25  ;;  %v1576_v26 = vsel %vm1572_vm1, %v7075_v37, %v7004_v8  ;;  %v7076_v38 = vld [vmem:[#allocation93_spill] sm:$0xff]  ;;  %v7078_v59 = vld [vmem:[#allocation55_spill] sm:$0xff]  ;;  %v7079_v8 = vld [vmem:[#allocation76_spill] sm:$0xff] }
 0x90e   : > { %2937 = vrot.lane.b32.xlu1 %v2919_v7, %s4040_s24  ;;  %v6113_v32 = vpop.permute.xlu1 %3052  ;;  %v1368_v44 = vsel %vm612_vm8, %v7076_v38, %v7018_v48  ;;  %v2135_v7 = vadd.f32 %v7077_v41, %v2066_v58  ;;  %v2852_v0 = vmul.f32 %v7036_v42, %v4963_v53  ;;  %v2922_v25 = vmul.f32 %v7078_v59, %v4977_v13  ;;  %v7080_v4 = vld [vmem:[#allocation135_spill] sm:$0xff]  ;;  %v7082_v42 = vld [vmem:[#allocation125_spill] sm:$0xff] }
 0x90f   : > { %7072 = vst [vmem:[#allocation72_spill] sm:$0xff] %v6113_v32  ;;  %3008 = vrot.lane.b32.xlu0 %v2989_v24, %s4041_s22  ;;  %v1314_v45 = vadd.f32 %v1300_v35, %v1246_v54  ;;  %v1723_v1 = vadd.f32 %v5991_v39, %v1655_v19  ;;  %v1644_v18 = vsel %vm625_vm9, %v7079_v8, %v7015_v55  ;;  %v7081_v24 = vld [vmem:[#allocation145_spill] sm:$0xff]  ;;  %vm2121_vm6 = vcmask 646144  }
 0x910   : > { %v2204_v48 = vadd.f32 %v7080_v4, %v2135_v7  ;;  %v2275_v10 = vadd.f32 %v7081_v24, %v2206_v33  ;;  %v2072_v35 = vadd.f32 %v7082_v42, %v2003_v34  ;;  %v7083_v58 = vld [vmem:[#allocation65_spill] sm:$0xff]  ;;  %v1591_v39 = vadd.f32 %v1576_v26, %v1522_v57  ;;  %v7087_v7 = vld [vmem:[#allocation110_spill] sm:$0xff] }
 0x911   : > { %v6129_v56 = vpop.permute.xlu0 %2525  ;;  %v1712_v54 = vsel %vm638_vm10, %v7083_v58, %v7026_v23  ;;  %v1382_v37 = vadd.f32 %v1368_v44, %v1314_v45  ;;  %v7084_v38 = vld [vmem:[#allocation109_spill] sm:$0xff]  ;;  %v1984_v34 = vsel %vm1983_vm4, %v7087_v7, %v7066_v51  ;;  %v2854_v23 = vmul.f32 %v5830_v14, %v4811_v22  ;;  %v7089_v44 = vld [vmem:[#allocation115_spill] sm:$0xff] }
 0x912   : > { %2872 = vrot.lane.b32.xlu1 %v2852_v0, %s4039_s16  ;;  %v1932_v32 = vadd.f32 %v7084_v38, %v1863_v49  ;;  %v7086_v55 = vld [vmem:[#allocation89_spill] sm:$0xff]  ;;  %v7088_v0 = vld [vmem:[#allocation143_spill] sm:$0xff]  ;;  %v2924_v57 = vmul.f32 %v5926_v62, %v4825_v31  ;;  %v1791_v45 = vadd.f32 %v5996_v27, %v1723_v1  ;;  %v1659_v27 = vadd.f32 %v1644_v18, %v1591_v39 }
 0x913   : > { %2943 = vrot.lane.b32.xlu0 %v2922_v25, %s4040_s24  ;;  %v6144_v19 = vpop.permute.xlu1 %3178  ;;  %v1437_v33 = vsel %vm1434_vm15, %v7086_v55, %v7023_v43  ;;  %v2273_v8 = vadd.f32 %v7088_v0, %v2204_v48  ;;  %v7090_v43 = vld [vmem:[#allocation79_spill] sm:$0xff]  ;;  %v7092_v48 = vld [vmem:[#allocation153_spill] sm:$0xff]  ;;  %v1996_v1 = vadd.f32 %v1984_v34, %v1927_v16  ;;  %vm2190_vm7 = vcmask 637952  }
 0x914   : > { %7085 = vst [vmem:[#allocation17_spill] sm:$0xff] %v6144_v19  ;;  %v2001_v49 = vadd.f32 %v7089_v44, %v1932_v32  ;;  %v1780_v25 = vsel %vm651_vm11, %v7090_v43, %v7041_v52  ;;  %v7091_v51 = vld [vmem:[#allocation151_spill] sm:$0xff]  ;;  %v2344_v55 = vadd.f32 %v7092_v48, %v2275_v10  ;;  %v7093_v14 = vld [vmem:[#allocation133_spill] sm:$0xff]  ;;  %v1451_v7 = vadd.f32 %v1437_v33, %v1382_v37  ;;  %v7096_v52 = vld [vmem:[#allocation118_spill] sm:$0xff] }
 0x915   : > { %v6158_v26 = vpop.permute.xlu0 %2460  ;;  %v2342_v58 = vadd.f32 %v7091_v51, %v2273_v8  ;;  %v2141_v32 = vadd.f32 %v7093_v14, %v2072_v35  ;;  %v7094_v19 = vld [vmem:[#allocation97_spill] sm:$0xff]  ;;  %v7095_v44 = vld [vmem:[#allocation123_spill] sm:$0xff]  ;;  %v2053_v8 = vsel %vm2052_vm5, %v7096_v52, %v7070_v11  ;;  %v2986_v35 = vmul.f32 %v5864_v17, %v4660_v21 }
 0x916   : > { %2876 = vrot.lane.b32.xlu1 %v2854_v23, %s4039_s16  ;;  %v1506_v24 = vsel %vm1503_vm0, %v7094_v19, %v7035_v5  ;;  %v2070_v42 = vadd.f32 %v7095_v44, %v2001_v49  ;;  %v7097_v10 = vld [vmem:[#allocation159_spill] sm:$0xff]  ;;  %v7102_v39 = vld [vmem:[#allocation25_spill] sm:$0xff]  ;;  %v2065_v48 = vadd.f32 %v2053_v8, %v1996_v1  ;;  %vm2259_vm8 = vcmask 629760   ;;  %s6599_s16 = scalar_lea.hbm %s6652_s8, %s3532_s20 }
 0x917   : > { %2947 = vrot.lane.b32.xlu0 %v2924_v57, %s4040_s24  ;;  %v2411_v43 = vadd.f32 %v7097_v10, %v2342_v58  ;;  %v7099_v33 = vld [vmem:[#allocation131_spill] sm:$0xff]  ;;  %v7103_v34 = vld [vmem:[#allocation161_spill] sm:$0xff]  ;;  %vm2328_vm12 = vcmask 621568   ;;  %vm2397_vm13 = vcmask 613376   ;;  %vm2466_vm14 = vcmask 523264  }
 0x918   : > { %v6179_v37 = vpop.permute.xlu1 %3117  ;;  %v2139_v5 = vadd.f32 %v7099_v33, %v2070_v42  ;;  %v7100_v19 = vld [vmem:[#allocation171_spill] sm:$0xff]  ;;  %v2413_v57 = vadd.f32 %v7103_v34, %v2344_v55  ;;  %v7104_v58 = vld [vmem:[#allocation141_spill] sm:$0xff]  ;;  %v1727_v33 = vadd.f32 %v1712_v54, %v1659_v27  ;;  %vm2742_vm15 = vcmask 490496  }
 0x919   : > { %7098 = vst [vmem:[#allocation44_spill] sm:$0xff] %v6179_v37  ;;  %v3056_v23 = vmul.f32 %v7100_v19, %v4672_v30  ;;  %v6184_v49 = vpop.permute.xlu0 %2464  ;;  %v7101_v16 = vld [vmem:[#allocation47_spill] sm:$0xff]  ;;  %v2480_v11 = vadd.f32 %v7102_v39, %v2411_v43  ;;  %v2210_v52 = vadd.f32 %v7104_v58, %v2141_v32  ;;  %v7105_v17 = vld [vmem:[#allocation69_spill] sm:$0xff]  ;;  %v1520_v37 = vadd.f32 %v1506_v24, %v1451_v7 }
 0x91a   : > { %v1860_v18 = vadd.f32 %v7101_v16, %v1791_v45  ;;  %3002 = vrot.lane.b32.xlu1 %v2986_v35, %s4041_s22  ;;  %v1849_v42 = vsel %vm1845_vm2, %v7105_v17, %v7051_v3  ;;  %v7106_v45 = vld [vmem:[#allocation126_spill] sm:$0xff]  ;;  %v7107_v16 = vld [vmem:[#allocation139_spill] sm:$0xff]  ;;  %v2988_v32 = vmul.f32 %v7068_v46, %v4530_v15  ;;  %v2482_v46 = vadd.f32 %v6061_v50, %v2413_v57 }
 0x91b   : > { %3073 = vrot.lane.b32.xlu0 %v3056_v23, %s4042_s13  ;;  %v2122_v43 = vsel %vm2121_vm6, %v7106_v45, %v7077_v41  ;;  %v2208_v55 = vadd.f32 %v7107_v16, %v2139_v5  ;;  %v2549_v35 = vadd.f32 %v6104_v60, %v2480_v11  ;;  %v7109_v3 = vld [vmem:[#allocation134_spill] sm:$0xff]  ;;  %v7110_v54 = vld [vmem:[#allocation43_spill] sm:$0xff]  ;;  %v7112_v5 = vld [vmem:[#allocation149_spill] sm:$0xff]  ;;  %vm2811_vm0 = vcmask 482304  }
 0x91c   : > { %v6202_v34 = vpop.permute.xlu1 %3121  ;;  %v2191_v24 = vsel %vm2190_vm7, %v7109_v3, %v7080_v4  ;;  %v3058_v7 = vmul.f32 %v7110_v54, %v4539_v20  ;;  %v1929_v41 = vadd.f32 %v6032_v47, %v1860_v18  ;;  %v7111_v1 = vld [vmem:[#allocation147_spill] sm:$0xff]  ;;  %v2279_v23 = vadd.f32 %v7112_v5, %v2210_v52  ;;  %v7113_v4 = vld [vmem:[#allocation112_spill] sm:$0xff]  ;;  %v7114_v18 = vld [vmem:[#allocation142_spill] sm:$0xff] }
 0x91d   : > { %7108 = vst [vmem:[#allocation26_spill] sm:$0xff] %v6202_v34  ;;  %v6209_v27 = vpop.permute.xlu0 %2590  ;;  %v2277_v8 = vadd.f32 %v7111_v1, %v2208_v55  ;;  %v1985_v17 = vsel %vm1983_vm4, %v7113_v4, %v7040_v36  ;;  %v2134_v45 = vadd.f32 %v2122_v43, %v2065_v48  ;;  %v1795_v47 = vadd.f32 %v1780_v25, %v1727_v33  ;;  %v7115_v55 = vld [vmem:[#allocation155_spill] sm:$0xff]  ;;  %v7116_v36 = vld [vmem:[#allocation85_spill] sm:$0xff]  ;;  %v7117_v33 = vld [vmem:[#allocation150_spill] sm:$0xff] }
 0x91e   : > { %v6216_v11 = vadd.f32 %v6209_v27, %v2549_v35  ;;  %3006 = vrot.lane.b32.xlu1 %v2988_v32, %s4041_s22  ;;  %v2260_v57 = vsel %vm2259_vm8, %v7114_v18, %v7088_v0  ;;  %v2921_v35 = vmul.f32 %v7078_v59, %v4963_v53  ;;  %v2551_v32 = vadd.f32 %v6129_v56, %v2482_v46  ;;  %v7119_v18 = vld [vmem:[#allocation157_spill] sm:$0xff] }
 0x91f   : > { %3077 = vrot.lane.b32.xlu0 %v3058_v7, %s4042_s13  ;;  %v2346_v52 = vadd.f32 %v7115_v55, %v2277_v8  ;;  %v2203_v3 = vadd.f32 %v2191_v24, %v2134_v45  ;;  %v2991_v48 = vmul.f32 %v7116_v36, %v4977_v13  ;;  %v1998_v25 = vadd.f32 %v1985_v17, %v1929_v41  ;;  %v7118_v8 = vld [vmem:[#allocation163_spill] sm:$0xff]  ;;  %v7120_v24 = vld [vmem:[#allocation94_spill] sm:$0xff] }
 0x920   : > { %v2329_v0 = vsel %vm2328_vm12, %v7117_v33, %v7091_v51  ;;  %v2348_v59 = vadd.f32 %v7119_v18, %v2279_v23  ;;  %v1575_v45 = vsel %vm1572_vm1, %v7120_v24, %v7043_v29  ;;  %v1864_v41 = vadd.f32 %v1849_v42, %v1795_v47  ;;  %v7121_v51 = vld [vmem:[#allocation120_spill] sm:$0xff]  ;;  %v7122_v23 = vld [vmem:[#allocation158_spill] sm:$0xff] }
 0x921   : > { %v6232_v43 = vpop.permute.xlu0 %2594  ;;  %v6234_v7 = vpop.permute.xlu1 %3190  ;;  %v2415_v4 = vadd.f32 %v7118_v8, %v2346_v52  ;;  %v2272_v34 = vadd.f32 %v2260_v57, %v2203_v3  ;;  %v2054_v17 = vsel %vm2052_vm5, %v7121_v51, %v7050_v61  ;;  %v2398_v52 = vsel %vm2397_vm13, %v7122_v23, %v7097_v10  ;;  %v7123_v29 = vld [vmem:[#allocation100_spill] sm:$0xff]  ;;  %v7124_v42 = vld [vmem:[#allocation170_spill] sm:$0xff]  ;;  %v7127_v51 = vld [vmem:[#allocation165_spill] sm:$0xff] }
 0x922   : > { %v6242_v46 = vadd.f32 %v6232_v43, %v2551_v32  ;;  %2941 = vrot.lane.b32.xlu1 %v2921_v35, %s4040_s24  ;;  %v2923_v35 = vmul.f32 %v5926_v62, %v4811_v22  ;;  %v1643_v57 = vsel %vm625_vm9, %v7123_v29, %v7052_v12  ;;  %v2993_v47 = vmul.f32 %v7124_v42, %v4825_v31  ;;  %v7125_v10 = vld [vmem:[#allocation108_spill] sm:$0xff]  ;;  %v7126_v62 = vld [vmem:[#allocation169_spill] sm:$0xff] }
 0x923   : > { %3012 = vrot.lane.b32.xlu0 %v2991_v48, %s4041_s22  ;;  %v2484_v32 = vadd.f32 %v6158_v26, %v2415_v4  ;;  %v2341_v3 = vadd.f32 %v2329_v0, %v2272_v34  ;;  %v2067_v61 = vadd.f32 %v2054_v17, %v1998_v25  ;;  %v1918_v24 = vsel %vm1914_vm3, %v7125_v10, %v7061_v9  ;;  %v7128_v17 = vld [vmem:[#allocation99_spill] sm:$0xff]  ;;  %v7129_v29 = vld [vmem:[#allocation128_spill] sm:$0xff]  ;;  %v7131_v10 = vld [vmem:[#allocation101_spill] sm:$0xff] }
 0x924   : > { %v2467_v4 = vsel %vm2466_vm14, %v7126_v62, %v7102_v39  ;;  %v2417_v23 = vadd.f32 %v7127_v51, %v2348_v59  ;;  %v1589_v34 = vadd.f32 %v1575_v45, %v1520_v37  ;;  %vm2535_vm9 = vcmask 515072   ;;  %v7130_v45 = vld [vmem:[#allocation22_spill] sm:$0xff] }
 0x925   : > { %v6263_v48 = vpop.permute.xlu0 %2529  ;;  %v6265_v33 = vpop.permute.xlu1 %2454  ;;  %v2410_v0 = vadd.f32 %v2398_v52, %v2341_v3  ;;  %v1933_v25 = vadd.f32 %v1918_v24, %v1864_v41  ;;  %v1711_v9 = vsel %vm638_vm10, %v7128_v17, %v7056_v63  ;;  %v2123_v39 = vsel %vm2121_vm6, %v7129_v29, %v7060_v40  ;;  %v7132_v63 = vld [vmem:[#allocation103_spill] sm:$0xff]  ;;  %v7133_v40 = vld [vmem:[#allocation116_spill] sm:$0xff] }
 0x926   : > { %v6275_v12 = vadd.f32 %v6263_v48, %v2484_v32  ;;  %2945 = vrot.lane.b32.xlu1 %v2923_v35, %s4040_s24  ;;  %v3055_v59 = vmul.f32 %v7100_v19, %v4660_v21  ;;  %v2486_v32 = vadd.f32 %v6184_v49, %v2417_v23  ;;  %v1657_v35 = vadd.f32 %v1643_v57, %v1589_v34  ;;  %v7134_v34 = vld [vmem:[#allocation104_spill] sm:$0xff]  ;;  %s3896_s24 = scalar_lea.vmem %s6593_s10, 1024 }
 0x927   : > { %3016 = vrot.lane.b32.xlu0 %v2993_v47, %s4041_s22  ;;  %v2479_v37 = vadd.f32 %v2467_v4, %v2410_v0  ;;  %v3125_v52 = vmul.f32 %v7130_v45, %v4672_v30  ;;  %v2136_v3 = vadd.f32 %v2123_v39, %v2067_v61  ;;  %v1779_v24 = vsel %vm651_vm11, %v7132_v63, %v7131_v10  ;;  %v7140_v63 = vld [vmem:[#allocation115_spill] sm:$0xff]  ;;  %p3897_p6 = scmp.ne.s32.totalorder %s6593_s10, %s3896_s24 }
 0x928   : > { %v1987_v62 = vsel %vm1983_vm4, %v7133_v40, %v7073_v2  ;;  %v1725_v61 = vadd.f32 %v1711_v9, %v1657_v35  ;;  %v1848_v0 = vsel %vm1845_vm2, %v7134_v34, %v7074_v28  ;;  %v7135_v2 = vld [vmem:[#allocation136_spill] sm:$0xff]  ;;  %v7136_v9 = vld [vmem:[#allocation63_spill] sm:$0xff]  ;;  %v7138_v28 = vld [vmem:[#allocation125_spill] sm:$0xff]  ;;  %vm2604_vm10 = vcmask 506880  }
 0x929   : > { %v6290_v41 = vpop.permute.xlu0 %2533  ;;  %v2520_v47 = vpop.permute.xlu1 %2519  ;;  %v2002_v23 = vadd.f32 %v1987_v62, %v1933_v25  ;;  %v2192_v17 = vsel %vm2190_vm7, %v7135_v2, %v7071_v6  ;;  %v3127_v39 = vmul.f32 %v7136_v9, %v4539_v20  ;;  %v7137_v25 = vld [vmem:[#allocation107_spill] sm:$0xff]  ;;  %v7142_v40 = vld [vmem:[#allocation145_spill] sm:$0xff]  ;;  %v7143_v62 = vld [vmem:[#allocation144_spill] sm:$0xff]  ;;  %vm2673_vm11 = vcmask 498688   ;;  %p3898_p7 = pnand %p3897_p6, %p7168_p13 }
 0x92a   : > { %v6299_v19 = vadd.f32 %v6290_v41, %v2486_v32  ;;  %v2536_v57 = vsel %vm2535_vm9, %v2520_v47, %v6104_v60  ;;  %3071 = vrot.lane.b32.xlu1 %v3055_v59, %s4042_s13  ;;  %v3057_v60 = vmul.f32 %v7110_v54, %v4530_v15  ;;  %v1793_v29 = vadd.f32 %v1779_v24, %v1725_v61  ;;  %v7141_v24 = vld [vmem:[#allocation114_spill] sm:$0xff] }
 0x92b   : > { %v6304_v4 = vadd.f32 %v2536_v57, %v2479_v37  ;;  %3142 = vrot.lane.b32.xlu0 %v3125_v52, %s4043_s23  ;;  %v2205_v59 = vadd.f32 %v2192_v17, %v2136_v3  ;;  %v1917_v37 = vsel %vm1914_vm3, %v7137_v25, %v7084_v38  ;;  %v7139_v52 = vld [vmem:[#allocation124_spill] sm:$0xff]  ;;  %v1986_v38 = vsel %vm1983_vm4, %v7141_v24, %v7140_v63  ;;  %p3899_p5 = pneg %p3898_p7 }
 0x92c   : > { %v2056_v47 = vsel %vm2052_vm5, %v7139_v52, %v7138_v28  ;;  %v1862_v3 = vadd.f32 %v1848_v0, %v1793_v29  ;;  %v2261_v57 = vsel %vm2259_vm8, %v7143_v62, %v7142_v40  ;;  %v7146_v29 = vld [vmem:[#allocation132_spill] sm:$0xff]  ;;  %v7148_v28 = vld [vmem:[#allocation130_spill] sm:$0xff]  ;;  %v7149_v52 = vld [vmem:[#allocation153_spill] sm:$0xff]  ;;  %vm2880_vm1 = vcmask 392192  }
 0x92d   : > { %v6317_v32 = vpop.permute.xlu0 %2659  ;;  %v2524_v35 = vpop.permute.xlu1 %2523  ;;  %v2071_v10 = vadd.f32 %v2056_v47, %v2002_v23  ;;  %v2274_v2 = vadd.f32 %v2261_v57, %v2205_v59  ;;  %v7145_v23 = vld [vmem:[#allocation122_spill] sm:$0xff]  ;;  %v7150_v47 = vld [vmem:[#allocation152_spill] sm:$0xff]  ;;  %vm2949_vm2 = vcmask 384000   ;;  %vm3018_vm3 = vcmask 375808  }
 0x92e   : > { %v6327_v6 = vadd.f32 %v6317_v32, %v6216_v11  ;;  %v2537_v54 = vsel %vm2535_vm9, %v2524_v35, %v6129_v56  ;;  %3075 = vrot.lane.b32.xlu1 %v3057_v60, %s4042_s13  ;;  %v2990_v11 = vmul.f32 %v7116_v36, %v4963_v53  ;;  %v1931_v61 = vadd.f32 %v1917_v37, %v1862_v3  ;;  %v7144_v56 = vld [vmem:[#allocation172_spill] sm:$0xff]  ;;  %v7147_v37 = vld [vmem:[#allocation131_spill] sm:$0xff] }
 0x92f   : > { %3146 = vrot.lane.b32.xlu0 %v3127_v39, %s4043_s23  ;;  %v3060_v34 = vmul.f32 %v7144_v56, %v4977_v13  ;;  %v2055_v60 = vsel %vm2052_vm5, %v7145_v23, %v7095_v44  ;;  %v2125_v39 = vsel %vm2121_vm6, %v7146_v29, %v7093_v14  ;;  %v2124_v44 = vsel %vm2121_vm6, %v7148_v28, %v7147_v37  ;;  %v7153_v57 = vld [vmem:[#allocation140_spill] sm:$0xff]  ;;  %v7155_v23 = vld [vmem:[#allocation161_spill] sm:$0xff] }
 0x930   : > { %v2000_v59 = vadd.f32 %v1986_v38, %v1931_v61  ;;  %v2140_v25 = vadd.f32 %v2125_v39, %v2071_v10  ;;  %v2330_v14 = vsel %vm2328_vm12, %v7150_v47, %v7149_v52  ;;  %v7152_v10 = vld [vmem:[#allocation138_spill] sm:$0xff]  ;;  %v7157_v39 = vld [vmem:[#allocation17_spill] sm:$0xff]  ;;  %vm3087_vm4 = vcmask 367616  }
 0x931   : > { %v6343_v0 = vpop.permute.xlu0 %2663  ;;  %v2459_v17 = vpop.permute.xlu1 %2458  ;;  %v2343_v24 = vadd.f32 %v2330_v14, %v2274_v2  ;;  %v2193_v62 = vsel %vm2190_vm7, %v7152_v10, %v7107_v16  ;;  %v7159_v52 = vld [vmem:[#allocation154_spill] sm:$0xff]  ;;  %vm3156_vm5 = vcmask 359424   ;;  %vm3225_vm6 = vcmask 351232  }
 0x932   : > { %v6353_v35 = vadd.f32 %v6343_v0, %v6242_v46  ;;  %v2469_v36 = vsel %vm2466_vm14, %v2459_v17, %v6158_v26  ;;  %3010 = vrot.lane.b32.xlu1 %v2990_v11, %s4041_s22  ;;  %v2992_v46 = vmul.f32 %v7124_v42, %v4811_v22  ;;  %v2069_v3 = vadd.f32 %v2055_v60, %v2000_v59  ;;  %v7151_v26 = vld [vmem:[#allocation72_spill] sm:$0xff]  ;;  %v7154_v17 = vld [vmem:[#allocation146_spill] sm:$0xff] }
 0x933   : > { %3081 = vrot.lane.b32.xlu0 %v3060_v34, %s4042_s13  ;;  %v3062_v63 = vmul.f32 %v7151_v26, %v4825_v31  ;;  %v2194_v11 = vsel %vm2190_vm7, %v7153_v57, %v7104_v58  ;;  %v2262_v16 = vsel %vm2259_vm8, %v7154_v17, %v7111_v1  ;;  %v7156_v60 = vld [vmem:[#allocation160_spill] sm:$0xff]  ;;  %v3194_v59 = vmul.f32 %v7157_v39, %v4672_v30 }
 0x934   : > { %v2138_v34 = vadd.f32 %v2124_v44, %v2069_v3  ;;  %v2209_v2 = vadd.f32 %v2194_v11, %v2140_v25  ;;  %v2399_v58 = vsel %vm2397_vm13, %v7156_v60, %v7155_v23  ;;  %v7158_v1 = vld [vmem:[#allocation148_spill] sm:$0xff]  ;;  %vm3274_vm7 = vcmask 261120  }
 0x935   : > { %v6369_v38 = vpop.permute.xlu0 %2598  ;;  %v2463_v40 = vpop.permute.xlu1 %2462  ;;  %v2412_v25 = vadd.f32 %v2399_v58, %v2343_v24  ;;  %v2263_v44 = vsel %vm2259_vm8, %v7158_v1, %v7112_v5  ;;  %v7160_v5 = vld [vmem:[#allocation162_spill] sm:$0xff]  ;;  %vm3385_vm8 = vcmask 130048  }
 0x936   : > { %v2622_v61 = vadd.f32 %v6369_v38, %v6275_v12  ;;  %v2470_v42 = vsel %vm2466_vm14, %v2463_v40, %v6184_v49  ;;  %3014 = vrot.lane.b32.xlu1 %v2992_v46, %s4041_s22  ;;  %v3124_v12 = vmul.f32 %v7130_v45, %v4660_v21  ;;  %v2468_v49 = vsel %vm2466_vm14, %v6265_v33, %v6061_v50  ;;  %s4045_s22 = smov [#allocation8]  }
 0x937   : > { %3085 = vrot.lane.b32.xlu0 %v3062_v63, %s4042_s13  ;;  %v2207_v29 = vadd.f32 %v2193_v62, %v2138_v34  ;;  %v2331_v45 = vsel %vm2328_vm12, %v7159_v52, %v7115_v55  ;;  %v2481_v33 = vadd.f32 %v2468_v49, %v2412_v25  ;;  %v2278_v14 = vadd.f32 %v2263_v44, %v2209_v2 }
 0x938   : > { %v2400_v55 = vsel %vm2397_vm13, %v7160_v5, %v7118_v8 }
 0x939   : > { %v6396_v37 = vpop.permute.xlu0 %2602  ;;  %v2589_v28 = vpop.permute.xlu1 %2588  ;;  %v2276_v30 = vadd.f32 %v2262_v16, %v2207_v29  ;;  %v2550_v24 = vadd.f32 %v2537_v54, %v2481_v33  ;;  %v7163_v54 = vld [vmem:[#allocation44_spill] sm:$0xff] }
 0x93a   : > { %v2624_v47 = vadd.f32 %v6396_v37, %v6299_v19  ;;  %v2605_v50 = vsel %vm2604_vm10, %v2589_v28, %v6209_v27  ;;  %3140 = vrot.lane.b32.xlu1 %v3124_v12, %s4043_s23  ;;  %v3126_v19 = vmul.f32 %v7136_v9, %v4530_v15  ;;  %v7161_v27 = vld [vmem:[#allocation173_spill] sm:$0xff]  ;;  %v3129_v2 = vmul.f32 %v7163_v54, %v4977_v13  ;;  %v7164_v16 = vld [vmem:[#allocation164_spill] sm:$0xff]  ;;  %v7165_v12 = vld [vmem:[#allocation26_spill] sm:$0xff] }
 0x93b   : > { %v2617_v46 = vadd.f32 %v2605_v50, %v6304_v4  ;;  %3211 = vrot.lane.b32.xlu0 %v3194_v59, %s4044_s21  ;;  %v2345_v3 = vadd.f32 %v2331_v45, %v2276_v30  ;;  %v3196_v63 = vmul.f32 %v7161_v27, %v4539_v20  ;;  %v7162_v4 = vld [vmem:[#allocation156_spill] sm:$0xff]  ;;  %v3059_v20 = vmul.f32 %v7144_v56, %v4963_v53 }
 0x93c   : > { %v2332_v62 = vsel %vm2328_vm12, %v7162_v4, %v7119_v18  ;;  %v3131_v49 = vmul.f32 %v7165_v12, %v4825_v31  ;;  %v3193_v28 = vmul.f32 %v7157_v39, %v4660_v21  ;;  %v3195_v45 = vmul.f32 %v7161_v27, %v4530_v15  ;;  %v3251_v15 = vld [vmem:[%s6651_s7 + $0x8] sm:$0xff] }
 0x93d   : > { %v6418_v40 = vpop.permute.xlu0 %2728  ;;  %v2593_v10 = vpop.permute.xlu1 %2592  ;;  %v2414_v9 = vadd.f32 %v2400_v55, %v2345_v3  ;;  %v2347_v11 = vadd.f32 %v2332_v62, %v2278_v14  ;;  %v3200_v21 = vmul.f32 %v6234_v7, %v4825_v31  ;;  %v3128_v30 = vmul.f32 %v7163_v54, %v4963_v53 }
 0x93e   : > { %v2756_v57 = vadd.f32 %v6418_v40, %v6327_v6  ;;  %v2606_v8 = vsel %vm2604_vm10, %v2593_v10, %v6232_v43  ;;  %3144 = vrot.lane.b32.xlu1 %v3126_v19, %s4043_s23  ;;  %v2401_v43 = vsel %vm2397_vm13, %v7164_v16, %v7127_v51  ;;  %v3130_v5 = vmul.f32 %v7165_v12, %v4811_v22 }
 0x93f   : > { %v2619_v34 = vadd.f32 %v2606_v8, %v2550_v24  ;;  %3215 = vrot.lane.b32.xlu0 %v3196_v63, %s4044_s21  ;;  %v2483_v18 = vadd.f32 %v2469_v36, %v2414_v9  ;;  %v2416_v56 = vadd.f32 %v2401_v43, %v2347_v11  ;;  %v3061_v36 = vmul.f32 %v7151_v26, %v4811_v22  ;;  %v7166_v26 = vld [vmem:[#allocation174_spill] sm:$0xff] }
 0x940   : > { %v3198_v1 = vmul.f32 %v7166_v26, %v4977_v13  ;;  %v3199_v8 = vmul.f32 %v6234_v7, %v4811_v22 }
 0x941   : > { %v6433_v17 = vpop.permute.xlu0 %2732  ;;  %v2528_v6 = vpop.permute.xlu1 %2527  ;;  %v2485_v29 = vadd.f32 %v2470_v42, %v2416_v56 }
 0x942   : > { %v2758_v23 = vadd.f32 %v6433_v17, %v6353_v35  ;;  %v2538_v60 = vsel %vm2535_vm9, %v2528_v6, %v6263_v48  ;;  %3079 = vrot.lane.b32.xlu1 %v3059_v20, %s4042_s13 }
 0x943   : > { %v2552_v58 = vadd.f32 %v2538_v60, %v2483_v18  ;;  %3150 = vrot.lane.b32.xlu0 %v3129_v2, %s4043_s23 }
 0x945   : > { %v2668_v51 = vpop.permute.xlu0 %2667  ;;  %v2532_v59 = vpop.permute.xlu1 %2531 }
 0x946   : > { %v2691_v25 = vadd.f32 %v2668_v51, %v2622_v61  ;;  %v2539_v35 = vsel %vm2535_vm9, %v2532_v59, %v6290_v41  ;;  %3083 = vrot.lane.b32.xlu1 %v3061_v36, %s4042_s13  ;;  %v3252_v59 = vld [vmem:[%s6651_s7 + $0x10] sm:$0xff]  ;;  %s3900_s13 = sshll.u32 %s4045_s22, 4  ;;  %s3901_s13 = int_to_ptr.vmem [resolvable:$false] %s3900_s13 }
 0x947   : > { %v2554_v48 = vadd.f32 %v2539_v35, %v2485_v29  ;;  %3154 = vrot.lane.b32.xlu0 %v3131_v49, %s4043_s23  ;;  %v3250_v29 = vld [vmem:[%s6651_s7] sm:$0xff]  ;;  %p3903_p8 = scmp.lt.s32.totalorder %s6593_s10, %s3901_s13 }
 0x949   : > { %v2672_v44 = vpop.permute.xlu0 %2671  ;;  %v2658_v42 = vpop.permute.xlu1 %2657 }
 0x94a   : > { %v2693_v52 = vadd.f32 %v2672_v44, %v2624_v47  ;;  %v2674_v61 = vsel %vm2673_vm11, %v2658_v42, %v6317_v32  ;;  %3209 = vrot.lane.b32.xlu1 %v3193_v28, %s4044_s21 }
 0x94b   : > { %v2686_v41 = vadd.f32 %v2674_v61, %v2617_v46  ;;  %3219 = vrot.lane.b32.xlu0 %v3198_v1, %s4044_s21 }
 0x94d   : > { %v2798_v39 = vpop.permute.xlu0 %2797  ;;  %v2662_v50 = vpop.permute.xlu1 %2661 }
 0x94e   : > { %v2825_v13 = vadd.f32 %v2798_v39, %v2756_v57  ;;  %v2675_v47 = vsel %vm2673_vm11, %v2662_v50, %v6343_v0  ;;  %3213 = vrot.lane.b32.xlu1 %v3195_v45, %s4044_s21 }
 0x94f   : > { %v2688_v32 = vadd.f32 %v2675_v47, %v2619_v34  ;;  %3223 = vrot.lane.b32.xlu0 %v3200_v21, %s4044_s21 }
 0x951   : > { %v2802_v33 = vpop.permute.xlu0 %2801  ;;  %v2597_v31 = vpop.permute.xlu1 %2596 }
 0x952   : > { %v2827_v14 = vadd.f32 %v2802_v33, %v2758_v23  ;;  %v2607_v46 = vsel %vm2604_vm10, %v2597_v31, %v6369_v38  ;;  %3148 = vrot.lane.b32.xlu1 %v3128_v30, %s4043_s23  ;;  %v3197_v38 = vmul.f32 %v7166_v26, %v4963_v53  ;;  %v3253_v26 = vld [vmem:[%s6651_s7 + $0x18] sm:$0xff] }
 0x953   : > { %v2621_v0 = vadd.f32 %v2607_v46, %v2552_v58  ;;  %3261 = vperm.xlu0 %3830, %v3251_v15  }
 0x955   : > { %v2737_v55 = vpop.permute.xlu0 %2736  ;;  %v2601_v19 = vpop.permute.xlu1 %2600 }
 0x956   : > { %v2760_v3 = vadd.f32 %v2737_v55, %v2691_v25  ;;  %v2608_v27 = vsel %vm2604_vm10, %v2601_v19, %v6396_v37  ;;  %3152 = vrot.lane.b32.xlu1 %v3130_v5, %s4043_s23  ;;  %s3902_s23 = scalar_lea.vmem %s3901_s13, 2048 }
 0x957   : > { %v2623_v63 = vadd.f32 %v2608_v27, %v2554_v48  ;;  %p3904_p9 = scmp.lt.s32.totalorder %s3902_s23, %s3896_s24 }
 0x959   : > { %v2741_v24 = vpop.permute.xlu0 %2740  ;;  %v2727_v10 = vpop.permute.xlu1 %2726  ;;  %p3905_p0 = por %p3904_p9, %p3903_p8 }
 0x95a   : > { %v2762_v4 = vadd.f32 %v2741_v24, %v2693_v52  ;;  %v2743_v62 = vsel %vm2742_vm15, %v2727_v10, %v6418_v40  ;;  %3217 = vrot.lane.b32.xlu1 %v3197_v38, %s4044_s21 }
 0x95b   : > { %v2755_v57 = vadd.f32 %v2743_v62, %v2686_v41  ;;  %p3906_p1 = pnand %p3905_p0, %p3899_p5 }
 0x95d   : > { %v2867_v37 = vpop.permute.xlu0 %2866  ;;  %v2731_v9 = vpop.permute.xlu1 %2730 }
 0x95e   : > { %v6488_v11 = vadd.f32 %v2867_v37, %v2825_v13  ;;  %v2744_v34 = vsel %vm2742_vm15, %v2731_v9, %v6433_v17  ;;  %3221 = vrot.lane.b32.xlu1 %v3199_v8, %s4044_s21 }
 0x95f   : > { %v2757_v53 = vadd.f32 %v2744_v34, %v2688_v32 }
 0x961   : > { %v2871_v20 = vpop.permute.xlu0 %2870  ;;  %v2666_v54 = vpop.permute.xlu1 %2665 }
 0x962   : > { %v6493_v2 = vadd.f32 %v2871_v20, %v2827_v14  ;;  %v2676_v40 = vsel %vm2673_vm11, %v2666_v54, %v2668_v51  ;;  %3256 = vperm.xlu1 %3832, %v3250_v29  }
 0x963   : > { %v2690_v18 = vadd.f32 %v2676_v40, %v2621_v0 }
 0x965   : > { %v2806_v6 = vpop.permute.xlu0 %2805  ;;  %v2670_v16 = vpop.permute.xlu1 %2669 }
 0x966   : > { %v2829_v22 = vadd.f32 %v2806_v6, %v2760_v3  ;;  %v2677_v7 = vsel %vm2673_vm11, %v2670_v16, %v2672_v44  ;;  %3266 = vperm.xlu1 %3832, %v3252_v59  }
 0x967   : > { %v2692_v43 = vadd.f32 %v2677_v7, %v2623_v63 }
 0x969   : > { %v2810_v23 = vpop.permute.xlu0 %2809  ;;  %v2796_v60 = vpop.permute.xlu1 %2795 }
 0x96a   : > { %v2831_v17 = vadd.f32 %v2810_v23, %v2762_v4  ;;  %v2812_v56 = vsel %vm2811_vm0, %v2796_v60, %v2798_v39  ;;  %3271 = vperm.xlu1 %3832, %v3253_v26  }
 0x96b   : > { %v2824_v58 = vadd.f32 %v2812_v56, %v2755_v57 }
 0x96d   : > { %v6498_v36 = vpop.permute.xlu0 %2935  ;;  %v2800_v12 = vpop.permute.xlu1 %2799 }
 0x96e   : > { %v2813_v49 = vsel %vm2811_vm0, %v2800_v12, %v2802_v33 }
 0x96f   : > { %v2826_v51 = vadd.f32 %v2813_v49, %v2757_v53 }
 0x971   : > { %v6507_v25 = vpop.permute.xlu0 %2939  ;;  %v2735_v35 = vpop.permute.xlu1 %2734 }
 0x972   : > { %v2745_v48 = vsel %vm2742_vm15, %v2735_v35, %v2737_v55 }
 0x973   : > { %v2759_v28 = vadd.f32 %v2745_v48, %v2690_v18  ;;  %v2963_v48 = vadd.f32 %v6498_v36, %v6488_v11 }
 0x975   : > { %v2875_v1 = vpop.permute.xlu0 %2874  ;;  %v2739_v44 = vpop.permute.xlu1 %2738 }
 0x976   : > { %v2898_v42 = vadd.f32 %v2875_v1, %v2829_v22  ;;  %v2746_v52 = vsel %vm2742_vm15, %v2739_v44, %v2741_v24 }
 0x977   : > { %v2761_v61 = vadd.f32 %v2746_v52, %v2692_v43 }
 0x979   : > { %v2879_v41 = vpop.permute.xlu0 %2878  ;;  %v2865_v45 = vpop.permute.xlu1 %2864 }
 0x97a   : > { %v6514_v21 = vadd.f32 %v2879_v41, %v2831_v17  ;;  %v2881_v39 = vsel %vm2880_vm1, %v2865_v45, %v2867_v37 }
 0x97b   : > { %v2893_v50 = vadd.f32 %v2881_v39, %v2824_v58 }
 0x97d   : > { %v3005_v13 = vpop.permute.xlu0 %3004  ;;  %v2869_v47 = vpop.permute.xlu1 %2868 }
 0x97e   : > { %v2882_v32 = vsel %vm2880_vm1, %v2869_v47, %v2871_v20  ;;  %v3032_v26 = vadd.f32 %v3005_v13, %v2963_v48 }
 0x97f   : > { %v2895_v30 = vadd.f32 %v2882_v32, %v2826_v51 }
 0x981   : > { %v3009_v15 = vpop.permute.xlu0 %3008  ;;  %v2804_v33 = vpop.permute.xlu1 %2803 }
 0x982   : > { %v2814_v31 = vsel %vm2811_vm0, %v2804_v33, %v2806_v6 }
 0x983   : > { %v2828_v14 = vadd.f32 %v2814_v31, %v2759_v28  ;;  %v2965_v28 = vadd.f32 %v6507_v25, %v6493_v2 }
 0x985   : > { %v2944_v46 = vpop.permute.xlu0 %2943  ;;  %v2808_v0 = vpop.permute.xlu1 %2807 }
 0x986   : > { %v6519_v5 = vadd.f32 %v2944_v46, %v2898_v42  ;;  %v2815_v55 = vsel %vm2811_vm0, %v2808_v0, %v2810_v23 }
 0x987   : > { %v2830_v19 = vadd.f32 %v2815_v55, %v2761_v61 }
 0x989   : > { %v2948_v3 = vpop.permute.xlu0 %2947  ;;  %v2934_v27 = vpop.permute.xlu1 %2933 }
 0x98a   : > { %v2950_v63 = vsel %vm2949_vm2, %v2934_v27, %v6498_v36 }
 0x98b   : > { %v2962_v38 = vadd.f32 %v2950_v63, %v2893_v50 }
 0x98d   : > { %v6524_v24 = vpop.permute.xlu0 %3073  ;;  %v2938_v10 = vpop.permute.xlu1 %2937 }
 0x98e   : > { %v2951_v4 = vsel %vm2949_vm2, %v2938_v10, %v6507_v25  ;;  %v3101_v52 = vadd.f32 %v6524_v24, %v3032_v26 }
 0x98f   : > { %v2964_v62 = vadd.f32 %v2951_v4, %v2895_v30 }
 0x991   : > { %v6528_v57 = vpop.permute.xlu0 %3077  ;;  %v2873_v8 = vpop.permute.xlu1 %2872 }
 0x992   : > { %v2883_v37 = vsel %vm2880_vm1, %v2873_v8, %v2875_v1  ;;  %v3034_v1 = vadd.f32 %v3009_v15, %v2965_v28 }
 0x993   : > { %v2897_v9 = vadd.f32 %v2883_v37, %v2828_v14 }
 0x994   : > { %v3103_v61 = vadd.f32 %v6528_v57, %v3034_v1 }
 0x995   : > { %v3013_v34 = vpop.permute.xlu0 %3012  ;;  %v2877_v53 = vpop.permute.xlu1 %2876 }
 0x996   : > { %v2884_v20 = vsel %vm2880_vm1, %v2877_v53, %v2879_v41  ;;  %v3036_v31 = vadd.f32 %v3013_v34, %v6519_v5 }
 0x997   : > { %v2899_v54 = vadd.f32 %v2884_v20, %v2830_v19 }
 0x999   : > { %v6532_v40 = vpop.permute.xlu0 %3016  ;;  %v3003_v18 = vpop.permute.xlu1 %3002 }
 0x99a   : > { %v3019_v6 = vsel %vm3018_vm3, %v3003_v18, %v3005_v13 }
 0x99b   : > { %v3031_v16 = vadd.f32 %v3019_v6, %v2962_v38 }
 0x99d   : > { %v3143_v22 = vpop.permute.xlu0 %3142  ;;  %v3007_v7 = vpop.permute.xlu1 %3006 }
 0x99e   : > { %v3020_v43 = vsel %vm3018_vm3, %v3007_v7, %v3009_v15  ;;  %v3170_v41 = vadd.f32 %v3143_v22, %v3101_v52  ;;  %v2969_v15 = vadd.f32 %v2948_v3, %v6514_v21 }
 0x99f   : > { %v3033_v23 = vadd.f32 %v3020_v43, %v2964_v62 }
 0x9a0   : > { %v3038_v14 = vadd.f32 %v6532_v40, %v2969_v15 }
 0x9a1   : > { %v3147_v60 = vpop.permute.xlu0 %3146  ;;  %v2942_v17 = vpop.permute.xlu1 %2941 }
 0x9a2   : > { %v2952_v56 = vsel %vm2949_vm2, %v2942_v17, %v2944_v46  ;;  %v3172_v45 = vadd.f32 %v3147_v60, %v3103_v61 }
 0x9a3   : > { %v2966_v58 = vadd.f32 %v2952_v56, %v2897_v9 }
 0x9a5   : > { %v6537_v12 = vpop.permute.xlu0 %3081  ;;  %v2946_v49 = vpop.permute.xlu1 %2945 }
 0x9a6   : > { %v2953_v29 = vsel %vm2949_vm2, %v2946_v49, %v2948_v3  ;;  %v3105_v55 = vadd.f32 %v6537_v12, %v3036_v31 }
 0x9a7   : > { %v6540_v51 = vadd.f32 %v2953_v29, %v2899_v54 }
 0x9a9   : > { %v6542_v59 = vpop.permute.xlu0 %3085  ;;  %v3072_v35 = vpop.permute.xlu1 %3071 }
 0x9aa   : > { %v3107_v19 = vadd.f32 %v6542_v59, %v3038_v14  ;;  %v3088_v21 = vsel %vm3087_vm4, %v3072_v35, %v6524_v24 }
 0x9ab   : > { %v3100_v53 = vadd.f32 %v3088_v21, %v3031_v16 }
 0x9ad   : > { %v3212_v44 = vpop.permute.xlu0 %3211  ;;  %v3076_v42 = vpop.permute.xlu1 %3075 }
 0x9ae   : > { %v3239_v47 = vadd.f32 %v3212_v44, %v3170_v41  ;;  %v3089_v5 = vsel %vm3087_vm4, %v3076_v42, %v6528_v57  ;;  %v7167_v41 = vmov 0.0  }
 0x9af   : > { %v3102_v20 = vadd.f32 %v3089_v5, %v3033_v23 }
 0x9b1   : > { %v3216_v39 = vpop.permute.xlu0 %3215  ;;  %v3011_v50 = vpop.permute.xlu1 %3010 }
 0x9b2   : > { %v3241_v32 = vadd.f32 %v3216_v39, %v3172_v45  ;;  %v3021_v30 = vsel %vm3018_vm3, %v3011_v50, %v3013_v34  ;;  %v3247_v45 = vld [vmem:[%s6648_s4 + $0x8] sm:$0xff] }
 0x9b3   : > { %v3035_v11 = vadd.f32 %v3021_v30, %v2966_v58 }
 0x9b4   : > { %v3574_v36 = vpack.c.bf16 %v3241_v32, %v3239_v47 }
 0x9b5   : > { %v3151_v33 = vpop.permute.xlu0 %3150  ;;  %v3015_v2 = vpop.permute.xlu1 %3014 }
 0x9b6   : > { %3575 = vmatprep.subr.bf16.mxu0 %v3574_v36  ;;  %3582 = vmatprep.subr.bf16.mxu1 %v3574_v36  ;;  %v3174_v27 = vadd.f32 %v3151_v33, %v3105_v55  ;;  %v3022_v16 = vsel %vm3018_vm3, %v3015_v2, %v6532_v40 }
 0x9b9   : > { %v3155_v25 = vpop.permute.xlu0 %3154  ;;  %v3141_v13 = vpop.permute.xlu1 %3140 }
 0x9ba   : > { %v3176_v63 = vadd.f32 %v3155_v25, %v3107_v19  ;;  %v3157_v9 = vsel %vm3156_vm5, %v3141_v13, %v3143_v22 }
 0x9bb   : > { %v3169_v18 = vadd.f32 %v3157_v9, %v3100_v53 }
 0x9bd   : > { %v3220_v46 = vpop.permute.xlu0 %3219  ;;  %v3145_v0 = vpop.permute.xlu1 %3144 }
 0x9be   : > { %v3243_v4 = vadd.f32 %v3220_v46, %v3174_v27  ;;  %v3158_v34 = vsel %vm3156_vm5, %v3145_v0, %v3147_v60  ;;  %v3037_v60 = vadd.f32 %v3022_v16, %v6540_v51  ;;  %v3246_v51 = vld [vmem:[%s6648_s4] sm:$0xff] }
 0x9bf   : > { %v3171_v6 = vadd.f32 %v3158_v34, %v3102_v20 }
 0x9c1   : > { %v3224_v38 = vpop.permute.xlu0 %3223  ;;  %v3080_v10 = vpop.permute.xlu1 %3079 }
 0x9c2   : > { %v3245_v62 = vadd.f32 %v3224_v38, %v3176_v63  ;;  %v3090_v22 = vsel %vm3087_vm4, %v3080_v10, %v6537_v12 }
 0x9c3   : > { %v3104_v48 = vadd.f32 %v3090_v22, %v3035_v11 }
 0x9c4   : > { %v3578_v8 = vpack.c.bf16 %v3245_v62, %v3243_v4 }
 0x9c5   : > { %v3084_v37 = vpop.permute.xlu1 %3083 }
 0x9c6   : > { %v3091_v23 = vsel %vm3087_vm4, %v3084_v37, %v6542_v59  ;;  %v3249_v59 = vld [vmem:[%s6648_s4 + $0x18] sm:$0xff] }
 0x9c7   : > { %v3106_v28 = vadd.f32 %v3091_v23, %v3037_v60 }
 0x9c9   : > { %v3210_v3 = vpop.permute.xlu1 %3209 }
 0x9ca   : > { %v3226_v54 = vsel %vm3225_vm6, %v3210_v3, %v3212_v44 }
 0x9cb   : > { %v3238_v17 = vadd.f32 %v3226_v54, %v3169_v18 }
 0x9cd   : > { %v3214_v7 = vpop.permute.xlu1 %3213 }
 0x9ce   : > { %v3227_v43 = vsel %vm3225_vm6, %v3214_v7, %v3216_v39  ;;  %v3248_v39 = vld [vmem:[%s6648_s4 + $0x10] sm:$0xff] }
 0x9cf   : > { %v3240_v24 = vadd.f32 %v3227_v43, %v3171_v6 }
 0x9d1   : > { %v3576_v56 = vpack.c.bf16 %v3240_v24, %v3238_v17  ;;  %v3149_v58 = vpop.permute.xlu1 %3148 }
 0x9d2   : > { %v3159_v29 = vsel %vm3156_vm5, %v3149_v58, %v3151_v33 }
 0x9d3   : > { %3577 = vmatpush1.bf16.msra.mxu0 %v3576_v56  ;;  %3584 = vmatpush1.bf16.msra.mxu1 %v3576_v56  ;;  %v3173_v1 = vadd.f32 %v3159_v29, %v3104_v48 }
 0x9d4   : > { %3579 = vmatprep.subr.bf16.mxu0 %v3578_v8  ;;  %3583 = vmatprep.subr.bf16.mxu1 %v3578_v8 }
 0x9d5   : > { %v3153_v57 = vpop.permute.xlu1 %3152 }
 0x9d6   : > { %v3160_v35 = vsel %vm3156_vm5, %v3153_v57, %v3155_v25 }
 0x9d7   : > { %v3175_v44 = vadd.f32 %v3160_v35, %v3106_v28 }
 0x9d9   : > { %v3218_v49 = vpop.permute.xlu1 %3217 }
 0x9da   : > { %v3228_v26 = vsel %vm3225_vm6, %v3218_v49, %v3220_v46  ;;  %v3262_v46 = vpop.permute.xlu0 %3261 }
 0x9db   : > { %v3242_v12 = vadd.f32 %v3228_v26, %v3173_v1 }
 0x9dd   : > { %v3222_v40 = vpop.permute.xlu1 %3221 }
 0x9de   : > { %v3229_v42 = vsel %vm3225_vm6, %v3222_v40, %v3224_v38 }
 0x9df   : > { %v3244_v52 = vadd.f32 %v3229_v42, %v3175_v44 }
 0x9e1   : > { %v3580_v61 = vpack.c.bf16 %v3244_v52, %v3242_v12  ;;  %v3257_v50 = vpop.permute.xlu1 %3256 }
 0x9e3   : > { %3581 = vmatpush1.bf16.msra.mxu0 %v3580_v61  ;;  %3585 = vmatpush1.bf16.msra.mxu1 %v3580_v61 }
 0x9e5   : > { %v3267_v47 = vpop.permute.xlu1 %3266 }
 0x9e6   : > { %3523 = vmatmul.mubr.msk.f32.vlgmr.msra.gmra.mrb[4].mxu0 %vm3274_vm7, %v3246_v51  ;;  %3526 = vmatmul.mubr.msk.f32.vlgmr.msra.gmra.mrb[8].mxu1 %vm3274_vm7, %v3249_v59 }
 0x9e7   : > { %3357 = vmatprep.mubr.f32.mxu0 %v7167_v41 }
 0x9e9   : > { %v3272_v32 = vpop.permute.xlu1 %3271 }
 0x9ea   : > { %3524 = vmatmul.mubr.msk.f32.gmra.mrb[6].mxu0 %vm3274_vm7, %v3247_v45 }
 0x9eb   : > { %3363 = vmatprep.mubr.f32.mxu0 %v7167_v41 }
 0x9ee   : > { %3525 = vmatmul.mubr.msk.f32.gmra.mrb[8].mxu0 %vm3274_vm7, %v3248_v39 }
 0xab9   : > { %v3353_v30 = vpop.f32.mrb[4].mxu0  ;;  %v3371_v11 = vpop.f32.mrb[8].mxu1 }
 0xaba   : > { %v3354_v36 = vadd.f32 %v3353_v30, %v3257_v50  ;;  %v3355_v33 = vpop.f32.mrb[5].mxu0  ;;  %v3373_v2 = vpop.f32.mrb[9].mxu1  ;;  %v3372_v25 = vadd.f32 %v3371_v11, %v3272_v32 }
 0xabb   : > { %v3356_v13 = vadd.f32 %v3355_v33, %v3257_v50  ;;  %v3374_v15 = vadd.f32 %v3373_v2, %v3272_v32 }
 0xabc   : > { %v3376_v31 = vmax.f32 %v3354_v36, 0.0  ;;  %v3382_v14 = vmax.f32 %v3372_v25, 0.0 }
 0xabd   : > { %v3377_v0 = vmax.f32 %v3356_v13, 0.0  ;;  %v3383_v55 = vmax.f32 %v3374_v15, 0.0  ;;  %v3359_v19 = vpop.f32.mrb[6].mxu0 }
 0xabe   : > { %3384 = vst [vmem:[%s358_s0] sm:$0xff] %v3376_v31  ;;  %3391 = vst [vmem:[%s358_s0 + $0x30] sm:$0xff] %v3382_v14  ;;  %v3360_v27 = vadd.f32 %v3359_v19, %v3262_v46  ;;  %v3361_v63 = vpop.f32.mrb[7].mxu0 }
 0xabf   : > { %3386 = vst.msk [vmem:[%s358_s0 + $0x8] sm:$0xff] %vm3385_vm8, %v3377_v0  ;;  %3392 = vst.msk [vmem:[%s358_s0 + $0x38] sm:$0xff] %vm3385_vm8, %v3383_v55  ;;  %v3362_v38 = vadd.f32 %v3361_v63, %v3262_v46 }
 0xac0   : > { %v3378_v10 = vmax.f32 %v3360_v27, 0.0 }
 0xac1   : > { %v3379_v4 = vmax.f32 %v3362_v38, 0.0  ;;  %v3365_v62 = vpop.f32.mrb[8].mxu0 }
 0xac2   : > { %3387 = vst [vmem:[%s358_s0 + $0x10] sm:$0xff] %v3378_v10  ;;  %v3366_v8 = vadd.f32 %v3365_v62, %v3267_v47  ;;  %v3367_v37 = vpop.f32.mrb[9].mxu0 }
 0xac3   : > { %3388 = vst.msk [vmem:[%s358_s0 + $0x18] sm:$0xff] %vm3385_vm8, %v3379_v4  ;;  %v3368_v21 = vadd.f32 %v3367_v37, %v3267_v47 }
 0xac4   : > { %v3380_v5 = vmax.f32 %v3366_v8, 0.0 }
 0xac5   : > { %v3381_v3 = vmax.f32 %v3368_v21, 0.0 }
 0xac6   : > { %3389 = vst [vmem:[%s358_s0 + $0x20] sm:$0xff] %v3380_v5 }
 0xac7   : > { %3390 = vst.msk [vmem:[%s358_s0 + $0x28] sm:$0xff] %vm3385_vm8, %v3381_v3 }
 0xac8   : > { %3909 = shalt.err (!%p3906_p1)
}
 0xac9   : > { %s3910_s21 = scalar_lea.hbm %s6599_s16, 1024  ;;  %s3914_s25 = scalar_lea.hbm %s6652_s8, 2048 }
 0xaca   : > { %p3911_p11 = scmp.ne.s32.totalorder %s6599_s16, %s3910_s21  ;;  %p3915_p4 = scmp.lt.u32.totalorder %s6599_s16, %s6652_s8 }
 0xacb   : > { %p3916_p10 = scmp.lt.u32.totalorder %s3914_s25, %s3910_s21  ;;  %p3918_p6 = scmp.lt.u32.totalorder %s3910_s21, %s6599_s16 }
 0xacc   : > { %p3912_p12 = pnand %p3911_p11, %p7168_p13 }
 0xacd   : > { %p3917_p3 = por %p3916_p10, %p3915_p4 }
 0xace   : > { %p3913_p2 = pneg %p3912_p12 }
 0xacf   : > { %p3919_p7 = por %p3918_p6, %p3917_p3 }
 0xad1   : > { %p3920_p5 = pnand %p3919_p7, %p3913_p2 }
 0xad3   : > { %3923 = shalt.err (!%p3920_p5)
}
 0xad4   : > { %s4046_s19 = smov 256   ;;  %s4047_s15 = smov 16  }
 0xad5   : > { %3593 = dma.vmem_to_hbm [thread:$0]  (%p7168_p13), %s6593_s10, 1024, %s6599_s16, %s3394_s9, %s4046_s19, %s4046_s19, %s4047_s15  }
 0xad6 PF: > { %s3422_s24 = sand.u32 1, %s3954_s27   ;;  %p7169_p8 = scmp.ne.s32.totalorder %s6784_s18, 0 }
 0xad7   : > { %p7170_p9 = scmp.ge.s32.totalorder %s3966_s30, 2  ;;  %s3423_s22 = scalar_lea.sflag [#allocation5], %s3422_s24 }
 0xad9   : > { %p3603_p0 = pnand %p7170_p9, %p7169_p8 }
 0xadb   : > { %3949 = dma.done.wait (!%p3603_p0), %s3423_s22, 1024  }
 0xadc   : > { %3951 = vsyncadd (!%p3603_p0), %s3423_s22, 4294966272  ;;  %s7171_s13 = sld [smem:[#allocation12_spill]]  ;;  %p24_p1 = scmp.ge.s32.totalorder %s4118_s11, 4  }
 0xadd   : > { %s7172_s27 = smov %s3958_s28  ;;  %s7173_s28 = smov %s3962_s29 }
 0xade   : > { %s7175_s30 = smov %s4118_s11  ;;  %26 = sbr.rel (!%p24_p1) target bundleno = 9 (0x9), region = 110 }
 0xae2   : > { %s7174_s29 = smov %s7171_s13 }
 0xae5   :  { %3428 = vsyncpa [#allocation4], 1 }
 0xae6   :  { %3430 = vsyncpa [#allocation4 + $0x1], 1 }
 0xae7   :  { %3431 = vsyncpa [#allocation7], 1 }
 0xae8   :  { %3433 = vsyncpa [#allocation7 + $0x1], 1 }
 0xae9   :  { %3434 = vsyncpa [#allocation5], 1 }
 0xaea   :  { %3436 = vsyncpa [#allocation5 + $0x1], 1 }

</bundles_post_ra>
